<compile_context>
chip_gen: v7x
topology: tpu7x:2x2x1
jax: 0.10.0
libtpu: 0.0.40
codegen_flags: <defaults>
</compile_context>

<pallas_src>
import jax
import jax.numpy as jnp
from jax import lax
from jax.experimental import pallas as pl
from jax.experimental.pallas import tpu as pltpu


N_LAYERS = 3
TIME_CHUNK = 128        # max time steps whose input gates are hoisted at once


def _sigmoid(x):
    # Exact identity sigmoid(x) = 0.5 * (tanh(x / 2) + 1): one EUP op per gate
    # (vs exp + reciprocal), and no approximation error on the recurrent path.
    return 0.5 * (jnp.tanh(0.5 * x) + 1.0)


# ----------------------------- fused Pallas kernel --------------------------

def ge2e_fused_kernel(x_ref,
                      wih0_ref, whh0_ref, b0_ref,
                      wih1_ref, whh1_ref, b1_ref,
                      wih2_ref, whh2_ref, b2_ref,
                      wp_ref, bp_ref,
                      out_ref,
                      gates_scr, hseq_scr):
    """Fused 3-layer LSTM + Linear + ReLU + L2-normalize.

    x_ref     : (T*B, D_pad) f32  time-major rows (row index = t*B + b)
    w*_ref    : LSTM / projection weights (bf16) and biases (f32, b = b_ih+b_hh)
    out_ref   : (B, E)       f32  L2-normalized speaker embedding
    gates_scr : (TC*B, 4H)   f32  hoisted input-to-hidden gates of one chunk
    hseq_scr  : (T*B, H)     f32  hidden sequence feeding the next layer
    """
    B, _ = out_ref.shape
    H = hseq_scr.shape[1]
    T = hseq_scr.shape[0] // B
    TC = gates_scr.shape[0] // B

    lstm = [(wih0_ref, whh0_ref, b0_ref),
            (wih1_ref, whh1_ref, b1_ref),
            (wih2_ref, whh2_ref, b2_ref)]

    h = jnp.zeros((B, H), jnp.float32)
    for layer, (wih_ref, whh_ref, b_ref) in enumerate(lstm):
        last_layer = layer == N_LAYERS - 1
        h = jnp.zeros((B, H), jnp.float32)
        c = jnp.zeros((B, H), jnp.float32)
        bias = b_ref[...]

        for t0 in range(0, T, TC):            # static chunk schedule
            tc = min(TC, T - t0)
            row0 = t0 * B                     # static, multiple of B
            nrows = tc * B

            # ---- Hoisted input-to-hidden GEMM for this chunk (one MXU call,
            # off the serial critical path; bias folded in once). ----
            inp = (x_ref[pl.ds(row0, nrows), :] if layer == 0
                   else hseq_scr[pl.ds(row0, nrows), :].astype(jnp.bfloat16))
            gates_scr[pl.ds(0, nrows), :] = (
                jnp.dot(inp, wih_ref[...], preferred_element_type=jnp.float32)
                + bias)

            # ---- Serial recurrence: only h @ W_hh + gate nonlinearities per
            # step; h/c stay in registers as loop carries. ----
            def step(t, carry):
                h_t, c_t = carry
                if isinstance(t, int):
                    local = t * B
                else:
                    local = pl.multiple_of(t * B, B)   # B is a multiple of 8
                gates = (gates_scr[pl.ds(local, B), :]
                         + jnp.dot(h_t.astype(jnp.bfloat16), whh_ref[...],
                                   preferred_element_type=jnp.float32))
                i_g = _sigmoid(gates[:, 0 * H:1 * H])
                f_g = _sigmoid(gates[:, 1 * H:2 * H])
                g_g = jnp.tanh(gates[:, 2 * H:3 * H])
                o_g = _sigmoid(gates[:, 3 * H:4 * H])
                c_n = f_g * c_t + i_g * g_g
                h_n = o_g * jnp.tanh(c_n)
                if not last_layer:            # last layer: only h[T-1] is used
                    hseq_scr[pl.ds(row0 + local, B), :] = h_n
                return h_n, c_n

            if tc <= 32:
                # Fully hand-unrolled: straight-line code for short chunks.
                carry = (h, c)
                for t in range(tc):
                    carry = step(t, carry)
                h, c = carry
            else:
                h, c = lax.fori_loop(0, tc, step, (h, c), unroll=8)

    # ---- Projection + ReLU + exact GE2E L2 normalization on final h state ----
    z = (jnp.dot(h.astype(jnp.bfloat16), wp_ref[...],
                 preferred_element_type=jnp.float32) + bp_ref[...])
    z = jnp.maximum(z, 0.0)                                          # ReLU
    norm = jnp.sqrt(jnp.sum(z * z, axis=-1, keepdims=True)) + 1e-5   # eps on norm
    out_ref[...] = z / norm                                          # exact divide


def _full_spec(shape):
    n = len(shape)
    return pl.BlockSpec(shape, lambda *_: (0,) * n)


def ge2e_embed(frames, params):
    """frames: (B, T, n_mels) f32 -> (B, E) f32 L2-normalized speaker embeddings."""
    B, T, D = frames.shape
    H = params["lstm"][0]["w_hh"].shape[0]
    E = params["proj"]["w"].shape[1]
    B_pad = max(8, -(-B // 8) * 8)           # fill the 8 vreg sublanes
    D_pad = -(-D // 128) * 128               # lane-dense layer-0 GEMM input
    TC = min(T, TIME_CHUNK)

    x = jnp.transpose(frames, (1, 0, 2))     # time-major (T, B, D)
    x = jnp.pad(x, ((0, 0), (0, B_pad - B), (0, D_pad - D)))
    x_flat = x.reshape(T * B_pad, D_pad)     # kept f32 (power-mel dynamic range)

    flat_args = [x_flat]
    in_specs = [_full_spec(x_flat.shape)]
    for i, lp in enumerate(params["lstm"]):
        w_ih = lp["w_ih"]
        if i == 0:                           # zero-pad input rows to D_pad
            w_ih = jnp.pad(w_ih, ((0, D_pad - D), (0, 0)))
        for arr in (w_ih.astype(jnp.bfloat16),
                    lp["w_hh"].astype(jnp.bfloat16),
                    lp["b"]):                # b stands for b_ih + b_hh (f32)
            flat_args.append(arr)
            in_specs.append(_full_spec(arr.shape))
    for arr in (params["proj"]["w"].astype(jnp.bfloat16), params["proj"]["b"]):
        flat_args.append(arr)
        in_specs.append(_full_spec(arr.shape))

    scratch_shapes = [
        pltpu.VMEM((TC * B_pad, 4 * H), jnp.float32),   # per-chunk hoisted gates
        pltpu.VMEM((T * B_pad, H), jnp.float32),        # inter-layer h sequence
    ]

    # Explicit scoped-VMEM budget: inputs + scratch + output with 2x headroom.
    arg_bytes = sum(int(a.size) * a.dtype.itemsize for a in flat_args)
    scr_bytes = (TC * B_pad * 4 * H + T * B_pad * H + B_pad * E) * 4
    vmem_limit = int(min(100 * 2**20, max(32 * 2**20, 2 * (arg_bytes + scr_bytes))))

    out = pl.pallas_call(
        ge2e_fused_kernel,
        out_shape=jax.ShapeDtypeStruct((B_pad, E), jnp.float32),
        in_specs=in_specs,
        out_specs=_full_spec((B_pad, E)),
        scratch_shapes=scratch_shapes,
        compiler_params=pltpu.CompilerParams(vmem_limit_bytes=vmem_limit),
    )(*flat_args)
    return out[:B]


# ----------------------------- plain-JAX glue -------------------------------

def _mel_filterbank(sr, n_fft, n_mels):
    def hz_to_mel(f):
        return 2595.0 * jnp.log10(1.0 + f / 700.0)

    def mel_to_hz(m):
        return 700.0 * (jnp.power(10.0, m / 2595.0) - 1.0)

    n_bins = n_fft // 2 + 1
    fft_freqs = jnp.linspace(0.0, sr / 2.0, n_bins)
    mel_pts = jnp.linspace(hz_to_mel(0.0), hz_to_mel(sr / 2.0), n_mels + 2)
    hz_pts = mel_to_hz(mel_pts)
    lower = hz_pts[:-2][:, None]
    center = hz_pts[1:-1][:, None]
    upper = hz_pts[2:][:, None]
    up = (fft_freqs[None, :] - lower) / (center - lower)
    down = (upper - fft_freqs[None, :]) / (upper - center)
    return jnp.maximum(0.0, jnp.minimum(up, down))          # (n_mels, n_bins)


def mel_spectrogram(audio, sr=16000, win_ms=25, hop_ms=10, n_mels=40):
    # TODO(synk): librosa.feature.melspectrogram (center padding, Slaney mel scale)
    # has no Pallas equivalent; approximated with plain-JAX framing + rFFT + HTK mel bank.
    n_fft = int(sr * win_ms / 1000)
    hop = int(sr * hop_ms / 1000)
    T = (audio.shape[-1] - n_fft) // hop + 1
    idx = jnp.arange(T)[:, None] * hop + jnp.arange(n_fft)[None, :]
    frames = audio[..., idx]                                  # (B, T, n_fft)
    window = 0.5 - 0.5 * jnp.cos(2.0 * jnp.pi * jnp.arange(n_fft) / n_fft)
    spec = jnp.abs(jnp.fft.rfft(frames * window, axis=-1)) ** 2
    fb = _mel_filterbank(sr, n_fft, n_mels)
    return spec @ fb.T                                        # (B, T, n_mels)


def init_ge2e_params(key, n_mels=40, hidden=128, embed=128, n_layers=N_LAYERS,
                     scale=0.1):
    params = {"lstm": [], "proj": None}
    for layer in range(n_layers):
        d_in = n_mels if layer == 0 else hidden
        key, k1, k2, k3 = jax.random.split(key, 4)
        params["lstm"].append({
            "w_ih": scale * jax.random.normal(k1, (d_in, 4 * hidden), jnp.float32),
            "w_hh": scale * jax.random.normal(k2, (hidden, 4 * hidden), jnp.float32),
            # single bias standing for PyTorch's b_ih + b_hh
            "b":    scale * jax.random.normal(k3, (1, 4 * hidden), jnp.float32),
        })
    key, k1, k2 = jax.random.split(key, 3)
    params["proj"] = {
        "w": scale * jax.random.normal(k1, (hidden, embed), jnp.float32),
        "b": scale * jax.random.normal(k2, (1, embed), jnp.float32),
    }
    return params


def predefined_embedder_forward(audio, params):
    """PreDefinedEmbedder.forward (GE2E branch): raw audio -> speaker embedding."""
    frames = mel_spectrogram(audio)              # (B, T, n_mels) f32
    return ge2e_embed(frames, params)            # (B, E) f32, L2-normalized


# --------------------------------- main --------------------------------------

if __name__ == "__main__":
    # TODO(synk): checkpoint loading ('./ge2e/encoder.pt') and the DeepSpeaker
    # branch are not reproducible here; parameters are initialized deterministically.
    key = jax.random.PRNGKey(0)
    k_audio, k_params = jax.random.split(key)

    B = 2                 # module forward uses unsqueeze(0) -> B=1; 2 exercises batching
    sr = 16000
    audio_len = 1600      # -> 8 mel frames (small)
    n_mels = 40           # hardcoded in the module's forward
    hidden = 128          # small stand-in for GE2E hidden size 256
    embed = 128           # small stand-in for GE2E embedding size 256

    audio = jax.random.normal(k_audio, (B, audio_len), jnp.float32)
    params = init_ge2e_params(k_params, n_mels=n_mels, hidden=hidden, embed=embed)

    fwd = jax.jit(predefined_embedder_forward)
    spker_embed = jax.block_until_ready(fwd(audio, params))

    assert spker_embed.shape == (B, embed)
    assert bool(jnp.all(jnp.isfinite(spker_embed)))
    print("KERNEL_OK")
</pallas_src>

<mosaic_0001>
module attributes {stable_mosaic.version = 11 : i64} {
  func.func @ge2e_fused_kernel(%arg0: memref<64x128xf32, #tpu.memory_space<vmem>>, %arg1: memref<128x512xbf16, #tpu.memory_space<vmem>>, %arg2: memref<128x512xbf16, #tpu.memory_space<vmem>>, %arg3: memref<1x512xf32, #tpu.memory_space<vmem>>, %arg4: memref<128x512xbf16, #tpu.memory_space<vmem>>, %arg5: memref<128x512xbf16, #tpu.memory_space<vmem>>, %arg6: memref<1x512xf32, #tpu.memory_space<vmem>>, %arg7: memref<128x512xbf16, #tpu.memory_space<vmem>>, %arg8: memref<128x512xbf16, #tpu.memory_space<vmem>>, %arg9: memref<1x512xf32, #tpu.memory_space<vmem>>, %arg10: memref<128x128xbf16, #tpu.memory_space<vmem>>, %arg11: memref<1x128xf32, #tpu.memory_space<vmem>>, %arg12: memref<8x128xf32, #tpu.memory_space<vmem>>, %arg13: memref<64x512xf32, #tpu.memory_space<vmem>>, %arg14: memref<64x128xf32, #tpu.memory_space<vmem>>) attributes {dimension_semantics = [], scalar_prefetch = 0 : i64, scratch_operands = 2 : i64, tpu.core_type = #tpu.core_type<tc>} {
    %cst = arith.constant 0.000000e+00 : f32
    %0 = vector.broadcast %cst : f32 to vector<8x128xf32>
    %cst_0 = arith.constant 0.000000e+00 : f32
    %1 = vector.broadcast %cst_0 : f32 to vector<8x128xf32>
    %c0 = arith.constant 0 : index
    %c0_1 = arith.constant 0 : index
    %2 = vector.load %arg3[%c0, %c0_1] : memref<1x512xf32, #tpu.memory_space<vmem>>, vector<1x512xf32>
    %c0_2 = arith.constant 0 : index
    %c0_3 = arith.constant 0 : index
    %3 = vector.load %arg0[%c0_2, %c0_3] : memref<64x128xf32, #tpu.memory_space<vmem>>, vector<64x128xf32>
    %c0_4 = arith.constant 0 : index
    %c0_5 = arith.constant 0 : index
    %4 = vector.load %arg1[%c0_4, %c0_5] : memref<128x512xbf16, #tpu.memory_space<vmem>>, vector<128x512xbf16>
    %cst_6 = arith.constant dense<0.000000e+00> : vector<64x512xf32>
    %5 = tpu.matmul %3, %4, %cst_6 {dimension_numbers = #tpu.dot_dimension_numbers<[1], [0], [0], [1], [0, 0, 1, 1], [], []>} : vector<64x128xf32>, vector<128x512xbf16>, vector<64x512xf32> -> vector<64x512xf32>
    %6 = vector.broadcast %2 : vector<1x512xf32> to vector<64x512xf32>
    %7 = arith.addf %5, %6 : vector<64x512xf32>
    %c0_7 = arith.constant 0 : index
    %c0_8 = arith.constant 0 : index
    %8 = vector.load %arg13[%c0_7, %c0_8] : memref<64x512xf32, #tpu.memory_space<vmem>>, vector<64x512xf32>
    tpu.vector_store %arg13[%c0_7, %c0_8], %7 {strides = array<i32>} : memref<64x512xf32, #tpu.memory_space<vmem>>, vector<64x512xf32>,
    %c0_9 = arith.constant 0 : index
    %c0_10 = arith.constant 0 : index
    %9 = vector.load %arg13[%c0_9, %c0_10] : memref<64x512xf32, #tpu.memory_space<vmem>>, vector<8x512xf32>
    %10 = arith.truncf %0 : vector<8x128xf32> to vector<8x128xbf16>
    %c0_11 = arith.constant 0 : index
    %c0_12 = arith.constant 0 : index
    %11 = vector.load %arg2[%c0_11, %c0_12] : memref<128x512xbf16, #tpu.memory_space<vmem>>, vector<128x512xbf16>
    %cst_13 = arith.constant dense<0.000000e+00> : vector<8x512xf32>
    %12 = tpu.matmul %10, %11, %cst_13 {dimension_numbers = #tpu.dot_dimension_numbers<[1], [0], [0], [1], [0, 0, 1, 1], [], []>} : vector<8x128xbf16>, vector<128x512xbf16>, vector<8x512xf32> -> vector<8x512xf32>
    %13 = arith.addf %9, %12 : vector<8x512xf32>
    %14 = vector.extract_strided_slice %13 {offsets = [0, 0], sizes = [8, 128], strides = [1, 1]} : vector<8x512xf32> to vector<8x128xf32>
    %cst_14 = arith.constant 5.000000e-01 : f32
    %15 = vector.broadcast %cst_14 : f32 to vector<8x128xf32>
    %16 = arith.mulf %15, %14 : vector<8x128xf32>
    %17 = math.tanh %16 : vector<8x128xf32>
    %cst_15 = arith.constant 1.000000e+00 : f32
    %18 = vector.broadcast %cst_15 : f32 to vector<8x128xf32>
    %19 = arith.addf %17, %18 : vector<8x128xf32>
    %cst_16 = arith.constant 5.000000e-01 : f32
    %20 = vector.broadcast %cst_16 : f32 to vector<8x128xf32>
    %21 = arith.mulf %20, %19 : vector<8x128xf32>
    %22 = vector.extract_strided_slice %13 {offsets = [0, 128], sizes = [8, 128], strides = [1, 1]} : vector<8x512xf32> to vector<8x128xf32>
    %cst_17 = arith.constant 5.000000e-01 : f32
    %23 = vector.broadcast %cst_17 : f32 to vector<8x128xf32>
    %24 = arith.mulf %23, %22 : vector<8x128xf32>
    %25 = math.tanh %24 : vector<8x128xf32>
    %cst_18 = arith.constant 1.000000e+00 : f32
    %26 = vector.broadcast %cst_18 : f32 to vector<8x128xf32>
    %27 = arith.addf %25, %26 : vector<8x128xf32>
    %cst_19 = arith.constant 5.000000e-01 : f32
    %28 = vector.broadcast %cst_19 : f32 to vector<8x128xf32>
    %29 = arith.mulf %28, %27 : vector<8x128xf32>
    %30 = vector.extract_strided_slice %13 {offsets = [0, 256], sizes = [8, 128], strides = [1, 1]} : vector<8x512xf32> to vector<8x128xf32>
    %31 = math.tanh %30 : vector<8x128xf32>
    %32 = vector.extract_strided_slice %13 {offsets = [0, 384], sizes = [8, 128], strides = [1, 1]} : vector<8x512xf32> to vector<8x128xf32>
    %cst_20 = arith.constant 5.000000e-01 : f32
    %33 = vector.broadcast %cst_20 : f32 to vector<8x128xf32>
    %34 = arith.mulf %33, %32 : vector<8x128xf32>
    %35 = math.tanh %34 : vector<8x128xf32>
    %cst_21 = arith.constant 1.000000e+00 : f32
    %36 = vector.broadcast %cst_21 : f32 to vector<8x128xf32>
    %37 = arith.addf %35, %36 : vector<8x128xf32>
    %cst_22 = arith.constant 5.000000e-01 : f32
    %38 = vector.broadcast %cst_22 : f32 to vector<8x128xf32>
    %39 = arith.mulf %38, %37 : vector<8x128xf32>
    %40 = arith.mulf %29, %1 : vector<8x128xf32>
    %41 = arith.mulf %21, %31 : vector<8x128xf32>
    %42 = arith.addf %40, %41 : vector<8x128xf32>
    %43 = math.tanh %42 : vector<8x128xf32>
    %44 = arith.mulf %39, %43 : vector<8x128xf32>
    %c0_23 = arith.constant 0 : index
    %c0_24 = arith.constant 0 : index
    %45 = vector.load %arg14[%c0_23, %c0_24] : memref<64x128xf32, #tpu.memory_space<vmem>>, vector<8x128xf32>
    tpu.vector_store %arg14[%c0_23, %c0_24], %44 {strides = array<i32>} : memref<64x128xf32, #tpu.memory_space<vmem>>, vector<8x128xf32>,
    %c8 = arith.constant 8 : index
    %c0_25 = arith.constant 0 : index
    %46 = vector.load %arg13[%c8, %c0_25] : memref<64x512xf32, #tpu.memory_space<vmem>>, vector<8x512xf32>
    %47 = arith.truncf %44 : vector<8x128xf32> to vector<8x128xbf16>
    %c0_26 = arith.constant 0 : index
    %c0_27 = arith.constant 0 : index
    %48 = vector.load %arg2[%c0_26, %c0_27] : memref<128x512xbf16, #tpu.memory_space<vmem>>, vector<128x512xbf16>
    %cst_28 = arith.constant dense<0.000000e+00> : vector<8x512xf32>
    %49 = tpu.matmul %47, %48, %cst_28 {dimension_numbers = #tpu.dot_dimension_numbers<[1], [0], [0], [1], [0, 0, 1, 1], [], []>} : vector<8x128xbf16>, vector<128x512xbf16>, vector<8x512xf32> -> vector<8x512xf32>
    %50 = arith.addf %46, %49 : vector<8x512xf32>
    %51 = vector.extract_strided_slice %50 {offsets = [0, 0], sizes = [8, 128], strides = [1, 1]} : vector<8x512xf32> to vector<8x128xf32>
    %cst_29 = arith.constant 5.000000e-01 : f32
    %52 = vector.broadcast %cst_29 : f32 to vector<8x128xf32>
    %53 = arith.mulf %52, %51 : vector<8x128xf32>
    %54 = math.tanh %53 : vector<8x128xf32>
    %cst_30 = arith.constant 1.000000e+00 : f32
    %55 = vector.broadcast %cst_30 : f32 to vector<8x128xf32>
    %56 = arith.addf %54, %55 : vector<8x128xf32>
    %cst_31 = arith.constant 5.000000e-01 : f32
    %57 = vector.broadcast %cst_31 : f32 to vector<8x128xf32>
    %58 = arith.mulf %57, %56 : vector<8x128xf32>
    %59 = vector.extract_strided_slice %50 {offsets = [0, 128], sizes = [8, 128], strides = [1, 1]} : vector<8x512xf32> to vector<8x128xf32>
    %cst_32 = arith.constant 5.000000e-01 : f32
    %60 = vector.broadcast %cst_32 : f32 to vector<8x128xf32>
    %61 = arith.mulf %60, %59 : vector<8x128xf32>
    %62 = math.tanh %61 : vector<8x128xf32>
    %cst_33 = arith.constant 1.000000e+00 : f32
    %63 = vector.broadcast %cst_33 : f32 to vector<8x128xf32>
    %64 = arith.addf %62, %63 : vector<8x128xf32>
    %cst_34 = arith.constant 5.000000e-01 : f32
    %65 = vector.broadcast %cst_34 : f32 to vector<8x128xf32>
    %66 = arith.mulf %65, %64 : vector<8x128xf32>
    %67 = vector.extract_strided_slice %50 {offsets = [0, 256], sizes = [8, 128], strides = [1, 1]} : vector<8x512xf32> to vector<8x128xf32>
    %68 = math.tanh %67 : vector<8x128xf32>
    %69 = vector.extract_strided_slice %50 {offsets = [0, 384], sizes = [8, 128], strides = [1, 1]} : vector<8x512xf32> to vector<8x128xf32>
    %cst_35 = arith.constant 5.000000e-01 : f32
    %70 = vector.broadcast %cst_35 : f32 to vector<8x128xf32>
    %71 = arith.mulf %70, %69 : vector<8x128xf32>
    %72 = math.tanh %71 : vector<8x128xf32>
    %cst_36 = arith.constant 1.000000e+00 : f32
    %73 = vector.broadcast %cst_36 : f32 to vector<8x128xf32>
    %74 = arith.addf %72, %73 : vector<8x128xf32>
    %cst_37 = arith.constant 5.000000e-01 : f32
    %75 = vector.broadcast %cst_37 : f32 to vector<8x128xf32>
    %76 = arith.mulf %75, %74 : vector<8x128xf32>
    %77 = arith.mulf %66, %42 : vector<8x128xf32>
    %78 = arith.mulf %58, %68 : vector<8x128xf32>
    %79 = arith.addf %77, %78 : vector<8x128xf32>
    %80 = math.tanh %79 : vector<8x128xf32>
    %81 = arith.mulf %76, %80 : vector<8x128xf32>
    %c8_38 = arith.constant 8 : index
    %c0_39 = arith.constant 0 : index
    %82 = vector.load %arg14[%c8_38, %c0_39] : memref<64x128xf32, #tpu.memory_space<vmem>>, vector<8x128xf32>
    tpu.vector_store %arg14[%c8_38, %c0_39], %81 {strides = array<i32>} : memref<64x128xf32, #tpu.memory_space<vmem>>, vector<8x128xf32>,
    %c16 = arith.constant 16 : index
    %c0_40 = arith.constant 0 : index
    %83 = vector.load %arg13[%c16, %c0_40] : memref<64x512xf32, #tpu.memory_space<vmem>>, vector<8x512xf32>
    %84 = arith.truncf %81 : vector<8x128xf32> to vector<8x128xbf16>
    %c0_41 = arith.constant 0 : index
    %c0_42 = arith.constant 0 : index
    %85 = vector.load %arg2[%c0_41, %c0_42] : memref<128x512xbf16, #tpu.memory_space<vmem>>, vector<128x512xbf16>
    %cst_43 = arith.constant dense<0.000000e+00> : vector<8x512xf32>
    %86 = tpu.matmul %84, %85, %cst_43 {dimension_numbers = #tpu.dot_dimension_numbers<[1], [0], [0], [1], [0, 0, 1, 1], [], []>} : vector<8x128xbf16>, vector<128x512xbf16>, vector<8x512xf32> -> vector<8x512xf32>
    %87 = arith.addf %83, %86 : vector<8x512xf32>
    %88 = vector.extract_strided_slice %87 {offsets = [0, 0], sizes = [8, 128], strides = [1, 1]} : vector<8x512xf32> to vector<8x128xf32>
    %cst_44 = arith.constant 5.000000e-01 : f32
    %89 = vector.broadcast %cst_44 : f32 to vector<8x128xf32>
    %90 = arith.mulf %89, %88 : vector<8x128xf32>
    %91 = math.tanh %90 : vector<8x128xf32>
    %cst_45 = arith.constant 1.000000e+00 : f32
    %92 = vector.broadcast %cst_45 : f32 to vector<8x128xf32>
    %93 = arith.addf %91, %92 : vector<8x128xf32>
    %cst_46 = arith.constant 5.000000e-01 : f32
    %94 = vector.broadcast %cst_46 : f32 to vector<8x128xf32>
    %95 = arith.mulf %94, %93 : vector<8x128xf32>
    %96 = vector.extract_strided_slice %87 {offsets = [0, 128], sizes = [8, 128], strides = [1, 1]} : vector<8x512xf32> to vector<8x128xf32>
    %cst_47 = arith.constant 5.000000e-01 : f32
    %97 = vector.broadcast %cst_47 : f32 to vector<8x128xf32>
    %98 = arith.mulf %97, %96 : vector<8x128xf32>
    %99 = math.tanh %98 : vector<8x128xf32>
    %cst_48 = arith.constant 1.000000e+00 : f32
    %100 = vector.broadcast %cst_48 : f32 to vector<8x128xf32>
    %101 = arith.addf %99, %100 : vector<8x128xf32>
    %cst_49 = arith.constant 5.000000e-01 : f32
    %102 = vector.broadcast %cst_49 : f32 to vector<8x128xf32>
    %103 = arith.mulf %102, %101 : vector<8x128xf32>
    %104 = vector.extract_strided_slice %87 {offsets = [0, 256], sizes = [8, 128], strides = [1, 1]} : vector<8x512xf32> to vector<8x128xf32>
    %105 = math.tanh %104 : vector<8x128xf32>
    %106 = vector.extract_strided_slice %87 {offsets = [0, 384], sizes = [8, 128], strides = [1, 1]} : vector<8x512xf32> to vector<8x128xf32>
    %cst_50 = arith.constant 5.000000e-01 : f32
    %107 = vector.broadcast %cst_50 : f32 to vector<8x128xf32>
    %108 = arith.mulf %107, %106 : vector<8x128xf32>
    %109 = math.tanh %108 : vector<8x128xf32>
    %cst_51 = arith.constant 1.000000e+00 : f32
    %110 = vector.broadcast %cst_51 : f32 to vector<8x128xf32>
    %111 = arith.addf %109, %110 : vector<8x128xf32>
    %cst_52 = arith.constant 5.000000e-01 : f32
    %112 = vector.broadcast %cst_52 : f32 to vector<8x128xf32>
    %113 = arith.mulf %112, %111 : vector<8x128xf32>
    %114 = arith.mulf %103, %79 : vector<8x128xf32>
    %115 = arith.mulf %95, %105 : vector<8x128xf32>
    %116 = arith.addf %114, %115 : vector<8x128xf32>
    %117 = math.tanh %116 : vector<8x128xf32>
    %118 = arith.mulf %113, %117 : vector<8x128xf32>
    %c16_53 = arith.constant 16 : index
    %c0_54 = arith.constant 0 : index
    %119 = vector.load %arg14[%c16_53, %c0_54] : memref<64x128xf32, #tpu.memory_space<vmem>>, vector<8x128xf32>
    tpu.vector_store %arg14[%c16_53, %c0_54], %118 {strides = array<i32>} : memref<64x128xf32, #tpu.memory_space<vmem>>, vector<8x128xf32>,
    %c24 = arith.constant 24 : index
    %c0_55 = arith.constant 0 : index
    %120 = vector.load %arg13[%c24, %c0_55] : memref<64x512xf32, #tpu.memory_space<vmem>>, vector<8x512xf32>
    %121 = arith.truncf %118 : vector<8x128xf32> to vector<8x128xbf16>
    %c0_56 = arith.constant 0 : index
    %c0_57 = arith.constant 0 : index
    %122 = vector.load %arg2[%c0_56, %c0_57] : memref<128x512xbf16, #tpu.memory_space<vmem>>, vector<128x512xbf16>
    %cst_58 = arith.constant dense<0.000000e+00> : vector<8x512xf32>
    %123 = tpu.matmul %121, %122, %cst_58 {dimension_numbers = #tpu.dot_dimension_numbers<[1], [0], [0], [1], [0, 0, 1, 1], [], []>} : vector<8x128xbf16>, vector<128x512xbf16>, vector<8x512xf32> -> vector<8x512xf32>
    %124 = arith.addf %120, %123 : vector<8x512xf32>
    %125 = vector.extract_strided_slice %124 {offsets = [0, 0], sizes = [8, 128], strides = [1, 1]} : vector<8x512xf32> to vector<8x128xf32>
    %cst_59 = arith.constant 5.000000e-01 : f32
    %126 = vector.broadcast %cst_59 : f32 to vector<8x128xf32>
    %127 = arith.mulf %126, %125 : vector<8x128xf32>
    %128 = math.tanh %127 : vector<8x128xf32>
    %cst_60 = arith.constant 1.000000e+00 : f32
    %129 = vector.broadcast %cst_60 : f32 to vector<8x128xf32>
    %130 = arith.addf %128, %129 : vector<8x128xf32>
    %cst_61 = arith.constant 5.000000e-01 : f32
    %131 = vector.broadcast %cst_61 : f32 to vector<8x128xf32>
    %132 = arith.mulf %131, %130 : vector<8x128xf32>
    %133 = vector.extract_strided_slice %124 {offsets = [0, 128], sizes = [8, 128], strides = [1, 1]} : vector<8x512xf32> to vector<8x128xf32>
    %cst_62 = arith.constant 5.000000e-01 : f32
    %134 = vector.broadcast %cst_62 : f32 to vector<8x128xf32>
    %135 = arith.mulf %134, %133 : vector<8x128xf32>
    %136 = math.tanh %135 : vector<8x128xf32>
    %cst_63 = arith.constant 1.000000e+00 : f32
    %137 = vector.broadcast %cst_63 : f32 to vector<8x128xf32>
    %138 = arith.addf %136, %137 : vector<8x128xf32>
    %cst_64 = arith.constant 5.000000e-01 : f32
    %139 = vector.broadcast %cst_64 : f32 to vector<8x128xf32>
    %140 = arith.mulf %139, %138 : vector<8x128xf32>
    %141 = vector.extract_strided_slice %124 {offsets = [0, 256], sizes = [8, 128], strides = [1, 1]} : vector<8x512xf32> to vector<8x128xf32>
    %142 = math.tanh %141 : vector<8x128xf32>
    %143 = vector.extract_strided_slice %124 {offsets = [0, 384], sizes = [8, 128], strides = [1, 1]} : vector<8x512xf32> to vector<8x128xf32>
    %cst_65 = arith.constant 5.000000e-01 : f32
    %144 = vector.broadcast %cst_65 : f32 to vector<8x128xf32>
    %145 = arith.mulf %144, %143 : vector<8x128xf32>
    %146 = math.tanh %145 : vector<8x128xf32>
    %cst_66 = arith.constant 1.000000e+00 : f32
    %147 = vector.broadcast %cst_66 : f32 to vector<8x128xf32>
    %148 = arith.addf %146, %147 : vector<8x128xf32>
    %cst_67 = arith.constant 5.000000e-01 : f32
    %149 = vector.broadcast %cst_67 : f32 to vector<8x128xf32>
    %150 = arith.mulf %149, %148 : vector<8x128xf32>
    %151 = arith.mulf %140, %116 : vector<8x128xf32>
    %152 = arith.mulf %132, %142 : vector<8x128xf32>
    %153 = arith.addf %151, %152 : vector<8x128xf32>
    %154 = math.tanh %153 : vector<8x128xf32>
    %155 = arith.mulf %150, %154 : vector<8x128xf32>
    %c24_68 = arith.constant 24 : index
    %c0_69 = arith.constant 0 : index
    %156 = vector.load %arg14[%c24_68, %c0_69] : memref<64x128xf32, #tpu.memory_space<vmem>>, vector<8x128xf32>
    tpu.vector_store %arg14[%c24_68, %c0_69], %155 {strides = array<i32>} : memref<64x128xf32, #tpu.memory_space<vmem>>, vector<8x128xf32>,
    %c32 = arith.constant 32 : index
    %c0_70 = arith.constant 0 : index
    %157 = vector.load %arg13[%c32, %c0_70] : memref<64x512xf32, #tpu.memory_space<vmem>>, vector<8x512xf32>
    %158 = arith.truncf %155 : vector<8x128xf32> to vector<8x128xbf16>
    %c0_71 = arith.constant 0 : index
    %c0_72 = arith.constant 0 : index
    %159 = vector.load %arg2[%c0_71, %c0_72] : memref<128x512xbf16, #tpu.memory_space<vmem>>, vector<128x512xbf16>
    %cst_73 = arith.constant dense<0.000000e+00> : vector<8x512xf32>
    %160 = tpu.matmul %158, %159, %cst_73 {dimension_numbers = #tpu.dot_dimension_numbers<[1], [0], [0], [1], [0, 0, 1, 1], [], []>} : vector<8x128xbf16>, vector<128x512xbf16>, vector<8x512xf32> -> vector<8x512xf32>
    %161 = arith.addf %157, %160 : vector<8x512xf32>
    %162 = vector.extract_strided_slice %161 {offsets = [0, 0], sizes = [8, 128], strides = [1, 1]} : vector<8x512xf32> to vector<8x128xf32>
    %cst_74 = arith.constant 5.000000e-01 : f32
    %163 = vector.broadcast %cst_74 : f32 to vector<8x128xf32>
    %164 = arith.mulf %163, %162 : vector<8x128xf32>
    %165 = math.tanh %164 : vector<8x128xf32>
    %cst_75 = arith.constant 1.000000e+00 : f32
    %166 = vector.broadcast %cst_75 : f32 to vector<8x128xf32>
    %167 = arith.addf %165, %166 : vector<8x128xf32>
    %cst_76 = arith.constant 5.000000e-01 : f32
    %168 = vector.broadcast %cst_76 : f32 to vector<8x128xf32>
    %169 = arith.mulf %168, %167 : vector<8x128xf32>
    %170 = vector.extract_strided_slice %161 {offsets = [0, 128], sizes = [8, 128], strides = [1, 1]} : vector<8x512xf32> to vector<8x128xf32>
    %cst_77 = arith.constant 5.000000e-01 : f32
    %171 = vector.broadcast %cst_77 : f32 to vector<8x128xf32>
    %172 = arith.mulf %171, %170 : vector<8x128xf32>
    %173 = math.tanh %172 : vector<8x128xf32>
    %cst_78 = arith.constant 1.000000e+00 : f32
    %174 = vector.broadcast %cst_78 : f32 to vector<8x128xf32>
    %175 = arith.addf %173, %174 : vector<8x128xf32>
    %cst_79 = arith.constant 5.000000e-01 : f32
    %176 = vector.broadcast %cst_79 : f32 to vector<8x128xf32>
    %177 = arith.mulf %176, %175 : vector<8x128xf32>
    %178 = vector.extract_strided_slice %161 {offsets = [0, 256], sizes = [8, 128], strides = [1, 1]} : vector<8x512xf32> to vector<8x128xf32>
    %179 = math.tanh %178 : vector<8x128xf32>
    %180 = vector.extract_strided_slice %161 {offsets = [0, 384], sizes = [8, 128], strides = [1, 1]} : vector<8x512xf32> to vector<8x128xf32>
    %cst_80 = arith.constant 5.000000e-01 : f32
    %181 = vector.broadcast %cst_80 : f32 to vector<8x128xf32>
    %182 = arith.mulf %181, %180 : vector<8x128xf32>
    %183 = math.tanh %182 : vector<8x128xf32>
    %cst_81 = arith.constant 1.000000e+00 : f32
    %184 = vector.broadcast %cst_81 : f32 to vector<8x128xf32>
    %185 = arith.addf %183, %184 : vector<8x128xf32>
    %cst_82 = arith.constant 5.000000e-01 : f32
    %186 = vector.broadcast %cst_82 : f32 to vector<8x128xf32>
    %187 = arith.mulf %186, %185 : vector<8x128xf32>
    %188 = arith.mulf %177, %153 : vector<8x128xf32>
    %189 = arith.mulf %169, %179 : vector<8x128xf32>
    %190 = arith.addf %188, %189 : vector<8x128xf32>
    %191 = math.tanh %190 : vector<8x128xf32>
    %192 = arith.mulf %187, %191 : vector<8x128xf32>
    %c32_83 = arith.constant 32 : index
    %c0_84 = arith.constant 0 : index
    %193 = vector.load %arg14[%c32_83, %c0_84] : memref<64x128xf32, #tpu.memory_space<vmem>>, vector<8x128xf32>
    tpu.vector_store %arg14[%c32_83, %c0_84], %192 {strides = array<i32>} : memref<64x128xf32, #tpu.memory_space<vmem>>, vector<8x128xf32>,
    %c40 = arith.constant 40 : index
    %c0_85 = arith.constant 0 : index
    %194 = vector.load %arg13[%c40, %c0_85] : memref<64x512xf32, #tpu.memory_space<vmem>>, vector<8x512xf32>
    %195 = arith.truncf %192 : vector<8x128xf32> to vector<8x128xbf16>
    %c0_86 = arith.constant 0 : index
    %c0_87 = arith.constant 0 : index
    %196 = vector.load %arg2[%c0_86, %c0_87] : memref<128x512xbf16, #tpu.memory_space<vmem>>, vector<128x512xbf16>
    %cst_88 = arith.constant dense<0.000000e+00> : vector<8x512xf32>
    %197 = tpu.matmul %195, %196, %cst_88 {dimension_numbers = #tpu.dot_dimension_numbers<[1], [0], [0], [1], [0, 0, 1, 1], [], []>} : vector<8x128xbf16>, vector<128x512xbf16>, vector<8x512xf32> -> vector<8x512xf32>
    %198 = arith.addf %194, %197 : vector<8x512xf32>
    %199 = vector.extract_strided_slice %198 {offsets = [0, 0], sizes = [8, 128], strides = [1, 1]} : vector<8x512xf32> to vector<8x128xf32>
    %cst_89 = arith.constant 5.000000e-01 : f32
    %200 = vector.broadcast %cst_89 : f32 to vector<8x128xf32>
    %201 = arith.mulf %200, %199 : vector<8x128xf32>
    %202 = math.tanh %201 : vector<8x128xf32>
    %cst_90 = arith.constant 1.000000e+00 : f32
    %203 = vector.broadcast %cst_90 : f32 to vector<8x128xf32>
    %204 = arith.addf %202, %203 : vector<8x128xf32>
    %cst_91 = arith.constant 5.000000e-01 : f32
    %205 = vector.broadcast %cst_91 : f32 to vector<8x128xf32>
    %206 = arith.mulf %205, %204 : vector<8x128xf32>
    %207 = vector.extract_strided_slice %198 {offsets = [0, 128], sizes = [8, 128], strides = [1, 1]} : vector<8x512xf32> to vector<8x128xf32>
    %cst_92 = arith.constant 5.000000e-01 : f32
    %208 = vector.broadcast %cst_92 : f32 to vector<8x128xf32>
    %209 = arith.mulf %208, %207 : vector<8x128xf32>
    %210 = math.tanh %209 : vector<8x128xf32>
    %cst_93 = arith.constant 1.000000e+00 : f32
    %211 = vector.broadcast %cst_93 : f32 to vector<8x128xf32>
    %212 = arith.addf %210, %211 : vector<8x128xf32>
    %cst_94 = arith.constant 5.000000e-01 : f32
    %213 = vector.broadcast %cst_94 : f32 to vector<8x128xf32>
    %214 = arith.mulf %213, %212 : vector<8x128xf32>
    %215 = vector.extract_strided_slice %198 {offsets = [0, 256], sizes = [8, 128], strides = [1, 1]} : vector<8x512xf32> to vector<8x128xf32>
    %216 = math.tanh %215 : vector<8x128xf32>
    %217 = vector.extract_strided_slice %198 {offsets = [0, 384], sizes = [8, 128], strides = [1, 1]} : vector<8x512xf32> to vector<8x128xf32>
    %cst_95 = arith.constant 5.000000e-01 : f32
    %218 = vector.broadcast %cst_95 : f32 to vector<8x128xf32>
    %219 = arith.mulf %218, %217 : vector<8x128xf32>
    %220 = math.tanh %219 : vector<8x128xf32>
    %cst_96 = arith.constant 1.000000e+00 : f32
    %221 = vector.broadcast %cst_96 : f32 to vector<8x128xf32>
    %222 = arith.addf %220, %221 : vector<8x128xf32>
    %cst_97 = arith.constant 5.000000e-01 : f32
    %223 = vector.broadcast %cst_97 : f32 to vector<8x128xf32>
    %224 = arith.mulf %223, %222 : vector<8x128xf32>
    %225 = arith.mulf %214, %190 : vector<8x128xf32>
    %226 = arith.mulf %206, %216 : vector<8x128xf32>
    %227 = arith.addf %225, %226 : vector<8x128xf32>
    %228 = math.tanh %227 : vector<8x128xf32>
    %229 = arith.mulf %224, %228 : vector<8x128xf32>
    %c40_98 = arith.constant 40 : index
    %c0_99 = arith.constant 0 : index
    %230 = vector.load %arg14[%c40_98, %c0_99] : memref<64x128xf32, #tpu.memory_space<vmem>>, vector<8x128xf32>
    tpu.vector_store %arg14[%c40_98, %c0_99], %229 {strides = array<i32>} : memref<64x128xf32, #tpu.memory_space<vmem>>, vector<8x128xf32>,
    %c48 = arith.constant 48 : index
    %c0_100 = arith.constant 0 : index
    %231 = vector.load %arg13[%c48, %c0_100] : memref<64x512xf32, #tpu.memory_space<vmem>>, vector<8x512xf32>
    %232 = arith.truncf %229 : vector<8x128xf32> to vector<8x128xbf16>
    %c0_101 = arith.constant 0 : index
    %c0_102 = arith.constant 0 : index
    %233 = vector.load %arg2[%c0_101, %c0_102] : memref<128x512xbf16, #tpu.memory_space<vmem>>, vector<128x512xbf16>
    %cst_103 = arith.constant dense<0.000000e+00> : vector<8x512xf32>
    %234 = tpu.matmul %232, %233, %cst_103 {dimension_numbers = #tpu.dot_dimension_numbers<[1], [0], [0], [1], [0, 0, 1, 1], [], []>} : vector<8x128xbf16>, vector<128x512xbf16>, vector<8x512xf32> -> vector<8x512xf32>
    %235 = arith.addf %231, %234 : vector<8x512xf32>
    %236 = vector.extract_strided_slice %235 {offsets = [0, 0], sizes = [8, 128], strides = [1, 1]} : vector<8x512xf32> to vector<8x128xf32>
    %cst_104 = arith.constant 5.000000e-01 : f32
    %237 = vector.broadcast %cst_104 : f32 to vector<8x128xf32>
    %238 = arith.mulf %237, %236 : vector<8x128xf32>
    %239 = math.tanh %238 : vector<8x128xf32>
    %cst_105 = arith.constant 1.000000e+00 : f32
    %240 = vector.broadcast %cst_105 : f32 to vector<8x128xf32>
    %241 = arith.addf %239, %240 : vector<8x128xf32>
    %cst_106 = arith.constant 5.000000e-01 : f32
    %242 = vector.broadcast %cst_106 : f32 to vector<8x128xf32>
    %243 = arith.mulf %242, %241 : vector<8x128xf32>
    %244 = vector.extract_strided_slice %235 {offsets = [0, 128], sizes = [8, 128], strides = [1, 1]} : vector<8x512xf32> to vector<8x128xf32>
    %cst_107 = arith.constant 5.000000e-01 : f32
    %245 = vector.broadcast %cst_107 : f32 to vector<8x128xf32>
    %246 = arith.mulf %245, %244 : vector<8x128xf32>
    %247 = math.tanh %246 : vector<8x128xf32>
    %cst_108 = arith.constant 1.000000e+00 : f32
    %248 = vector.broadcast %cst_108 : f32 to vector<8x128xf32>
    %249 = arith.addf %247, %248 : vector<8x128xf32>
    %cst_109 = arith.constant 5.000000e-01 : f32
    %250 = vector.broadcast %cst_109 : f32 to vector<8x128xf32>
    %251 = arith.mulf %250, %249 : vector<8x128xf32>
    %252 = vector.extract_strided_slice %235 {offsets = [0, 256], sizes = [8, 128], strides = [1, 1]} : vector<8x512xf32> to vector<8x128xf32>
    %253 = math.tanh %252 : vector<8x128xf32>
    %254 = vector.extract_strided_slice %235 {offsets = [0, 384], sizes = [8, 128], strides = [1, 1]} : vector<8x512xf32> to vector<8x128xf32>
    %cst_110 = arith.constant 5.000000e-01 : f32
    %255 = vector.broadcast %cst_110 : f32 to vector<8x128xf32>
    %256 = arith.mulf %255, %254 : vector<8x128xf32>
    %257 = math.tanh %256 : vector<8x128xf32>
    %cst_111 = arith.constant 1.000000e+00 : f32
    %258 = vector.broadcast %cst_111 : f32 to vector<8x128xf32>
    %259 = arith.addf %257, %258 : vector<8x128xf32>
    %cst_112 = arith.constant 5.000000e-01 : f32
    %260 = vector.broadcast %cst_112 : f32 to vector<8x128xf32>
    %261 = arith.mulf %260, %259 : vector<8x128xf32>
    %262 = arith.mulf %251, %227 : vector<8x128xf32>
    %263 = arith.mulf %243, %253 : vector<8x128xf32>
    %264 = arith.addf %262, %263 : vector<8x128xf32>
    %265 = math.tanh %264 : vector<8x128xf32>
    %266 = arith.mulf %261, %265 : vector<8x128xf32>
    %c48_113 = arith.constant 48 : index
    %c0_114 = arith.constant 0 : index
    %267 = vector.load %arg14[%c48_113, %c0_114] : memref<64x128xf32, #tpu.memory_space<vmem>>, vector<8x128xf32>
    tpu.vector_store %arg14[%c48_113, %c0_114], %266 {strides = array<i32>} : memref<64x128xf32, #tpu.memory_space<vmem>>, vector<8x128xf32>,
    %c56 = arith.constant 56 : index
    %c0_115 = arith.constant 0 : index
    %268 = vector.load %arg13[%c56, %c0_115] : memref<64x512xf32, #tpu.memory_space<vmem>>, vector<8x512xf32>
    %269 = arith.truncf %266 : vector<8x128xf32> to vector<8x128xbf16>
    %c0_116 = arith.constant 0 : index
    %c0_117 = arith.constant 0 : index
    %270 = vector.load %arg2[%c0_116, %c0_117] : memref<128x512xbf16, #tpu.memory_space<vmem>>, vector<128x512xbf16>
    %cst_118 = arith.constant dense<0.000000e+00> : vector<8x512xf32>
    %271 = tpu.matmul %269, %270, %cst_118 {dimension_numbers = #tpu.dot_dimension_numbers<[1], [0], [0], [1], [0, 0, 1, 1], [], []>} : vector<8x128xbf16>, vector<128x512xbf16>, vector<8x512xf32> -> vector<8x512xf32>
    %272 = arith.addf %268, %271 : vector<8x512xf32>
    %273 = vector.extract_strided_slice %272 {offsets = [0, 0], sizes = [8, 128], strides = [1, 1]} : vector<8x512xf32> to vector<8x128xf32>
    %cst_119 = arith.constant 5.000000e-01 : f32
    %274 = vector.broadcast %cst_119 : f32 to vector<8x128xf32>
    %275 = arith.mulf %274, %273 : vector<8x128xf32>
    %276 = math.tanh %275 : vector<8x128xf32>
    %cst_120 = arith.constant 1.000000e+00 : f32
    %277 = vector.broadcast %cst_120 : f32 to vector<8x128xf32>
    %278 = arith.addf %276, %277 : vector<8x128xf32>
    %cst_121 = arith.constant 5.000000e-01 : f32
    %279 = vector.broadcast %cst_121 : f32 to vector<8x128xf32>
    %280 = arith.mulf %279, %278 : vector<8x128xf32>
    %281 = vector.extract_strided_slice %272 {offsets = [0, 128], sizes = [8, 128], strides = [1, 1]} : vector<8x512xf32> to vector<8x128xf32>
    %cst_122 = arith.constant 5.000000e-01 : f32
    %282 = vector.broadcast %cst_122 : f32 to vector<8x128xf32>
    %283 = arith.mulf %282, %281 : vector<8x128xf32>
    %284 = math.tanh %283 : vector<8x128xf32>
    %cst_123 = arith.constant 1.000000e+00 : f32
    %285 = vector.broadcast %cst_123 : f32 to vector<8x128xf32>
    %286 = arith.addf %284, %285 : vector<8x128xf32>
    %cst_124 = arith.constant 5.000000e-01 : f32
    %287 = vector.broadcast %cst_124 : f32 to vector<8x128xf32>
    %288 = arith.mulf %287, %286 : vector<8x128xf32>
    %289 = vector.extract_strided_slice %272 {offsets = [0, 256], sizes = [8, 128], strides = [1, 1]} : vector<8x512xf32> to vector<8x128xf32>
    %290 = math.tanh %289 : vector<8x128xf32>
    %291 = vector.extract_strided_slice %272 {offsets = [0, 384], sizes = [8, 128], strides = [1, 1]} : vector<8x512xf32> to vector<8x128xf32>
    %cst_125 = arith.constant 5.000000e-01 : f32
    %292 = vector.broadcast %cst_125 : f32 to vector<8x128xf32>
    %293 = arith.mulf %292, %291 : vector<8x128xf32>
    %294 = math.tanh %293 : vector<8x128xf32>
    %cst_126 = arith.constant 1.000000e+00 : f32
    %295 = vector.broadcast %cst_126 : f32 to vector<8x128xf32>
    %296 = arith.addf %294, %295 : vector<8x128xf32>
    %cst_127 = arith.constant 5.000000e-01 : f32
    %297 = vector.broadcast %cst_127 : f32 to vector<8x128xf32>
    %298 = arith.mulf %297, %296 : vector<8x128xf32>
    %299 = arith.mulf %288, %264 : vector<8x128xf32>
    %300 = arith.mulf %280, %290 : vector<8x128xf32>
    %301 = arith.addf %299, %300 : vector<8x128xf32>
    %302 = math.tanh %301 : vector<8x128xf32>
    %303 = arith.mulf %298, %302 : vector<8x128xf32>
    %c56_128 = arith.constant 56 : index
    %c0_129 = arith.constant 0 : index
    %304 = vector.load %arg14[%c56_128, %c0_129] : memref<64x128xf32, #tpu.memory_space<vmem>>, vector<8x128xf32>
    tpu.vector_store %arg14[%c56_128, %c0_129], %303 {strides = array<i32>} : memref<64x128xf32, #tpu.memory_space<vmem>>, vector<8x128xf32>,
    %cst_130 = arith.constant 0.000000e+00 : f32
    %305 = vector.broadcast %cst_130 : f32 to vector<8x128xf32>
    %cst_131 = arith.constant 0.000000e+00 : f32
    %306 = vector.broadcast %cst_131 : f32 to vector<8x128xf32>
    %c0_132 = arith.constant 0 : index
    %c0_133 = arith.constant 0 : index
    %307 = vector.load %arg6[%c0_132, %c0_133] : memref<1x512xf32, #tpu.memory_space<vmem>>, vector<1x512xf32>
    %c0_134 = arith.constant 0 : index
    %c0_135 = arith.constant 0 : index
    %308 = vector.load %arg14[%c0_134, %c0_135] : memref<64x128xf32, #tpu.memory_space<vmem>>, vector<64x128xf32>
    %309 = arith.truncf %308 : vector<64x128xf32> to vector<64x128xbf16>
    %c0_136 = arith.constant 0 : index
    %c0_137 = arith.constant 0 : index
    %310 = vector.load %arg4[%c0_136, %c0_137] : memref<128x512xbf16, #tpu.memory_space<vmem>>, vector<128x512xbf16>
    %cst_138 = arith.constant dense<0.000000e+00> : vector<64x512xf32>
    %311 = tpu.matmul %309, %310, %cst_138 {dimension_numbers = #tpu.dot_dimension_numbers<[1], [0], [0], [1], [0, 0, 1, 1], [], []>} : vector<64x128xbf16>, vector<128x512xbf16>, vector<64x512xf32> -> vector<64x512xf32>
    %312 = vector.broadcast %307 : vector<1x512xf32> to vector<64x512xf32>
    %313 = arith.addf %311, %312 : vector<64x512xf32>
    %c0_139 = arith.constant 0 : index
    %c0_140 = arith.constant 0 : index
    %314 = vector.load %arg13[%c0_139, %c0_140] : memref<64x512xf32, #tpu.memory_space<vmem>>, vector<64x512xf32>
    tpu.vector_store %arg13[%c0_139, %c0_140], %313 {strides = array<i32>} : memref<64x512xf32, #tpu.memory_space<vmem>>, vector<64x512xf32>,
    %c0_141 = arith.constant 0 : index
    %c0_142 = arith.constant 0 : index
    %315 = vector.load %arg13[%c0_141, %c0_142] : memref<64x512xf32, #tpu.memory_space<vmem>>, vector<8x512xf32>
    %316 = arith.truncf %305 : vector<8x128xf32> to vector<8x128xbf16>
    %c0_143 = arith.constant 0 : index
    %c0_144 = arith.constant 0 : index
    %317 = vector.load %arg5[%c0_143, %c0_144] : memref<128x512xbf16, #tpu.memory_space<vmem>>, vector<128x512xbf16>
    %cst_145 = arith.constant dense<0.000000e+00> : vector<8x512xf32>
    %318 = tpu.matmul %316, %317, %cst_145 {dimension_numbers = #tpu.dot_dimension_numbers<[1], [0], [0], [1], [0, 0, 1, 1], [], []>} : vector<8x128xbf16>, vector<128x512xbf16>, vector<8x512xf32> -> vector<8x512xf32>
    %319 = arith.addf %315, %318 : vector<8x512xf32>
    %320 = vector.extract_strided_slice %319 {offsets = [0, 0], sizes = [8, 128], strides = [1, 1]} : vector<8x512xf32> to vector<8x128xf32>
    %cst_146 = arith.constant 5.000000e-01 : f32
    %321 = vector.broadcast %cst_146 : f32 to vector<8x128xf32>
    %322 = arith.mulf %321, %320 : vector<8x128xf32>
    %323 = math.tanh %322 : vector<8x128xf32>
    %cst_147 = arith.constant 1.000000e+00 : f32
    %324 = vector.broadcast %cst_147 : f32 to vector<8x128xf32>
    %325 = arith.addf %323, %324 : vector<8x128xf32>
    %cst_148 = arith.constant 5.000000e-01 : f32
    %326 = vector.broadcast %cst_148 : f32 to vector<8x128xf32>
    %327 = arith.mulf %326, %325 : vector<8x128xf32>
    %328 = vector.extract_strided_slice %319 {offsets = [0, 128], sizes = [8, 128], strides = [1, 1]} : vector<8x512xf32> to vector<8x128xf32>
    %cst_149 = arith.constant 5.000000e-01 : f32
    %329 = vector.broadcast %cst_149 : f32 to vector<8x128xf32>
    %330 = arith.mulf %329, %328 : vector<8x128xf32>
    %331 = math.tanh %330 : vector<8x128xf32>
    %cst_150 = arith.constant 1.000000e+00 : f32
    %332 = vector.broadcast %cst_150 : f32 to vector<8x128xf32>
    %333 = arith.addf %331, %332 : vector<8x128xf32>
    %cst_151 = arith.constant 5.000000e-01 : f32
    %334 = vector.broadcast %cst_151 : f32 to vector<8x128xf32>
    %335 = arith.mulf %334, %333 : vector<8x128xf32>
    %336 = vector.extract_strided_slice %319 {offsets = [0, 256], sizes = [8, 128], strides = [1, 1]} : vector<8x512xf32> to vector<8x128xf32>
    %337 = math.tanh %336 : vector<8x128xf32>
    %338 = vector.extract_strided_slice %319 {offsets = [0, 384], sizes = [8, 128], strides = [1, 1]} : vector<8x512xf32> to vector<8x128xf32>
    %cst_152 = arith.constant 5.000000e-01 : f32
    %339 = vector.broadcast %cst_152 : f32 to vector<8x128xf32>
    %340 = arith.mulf %339, %338 : vector<8x128xf32>
    %341 = math.tanh %340 : vector<8x128xf32>
    %cst_153 = arith.constant 1.000000e+00 : f32
    %342 = vector.broadcast %cst_153 : f32 to vector<8x128xf32>
    %343 = arith.addf %341, %342 : vector<8x128xf32>
    %cst_154 = arith.constant 5.000000e-01 : f32
    %344 = vector.broadcast %cst_154 : f32 to vector<8x128xf32>
    %345 = arith.mulf %344, %343 : vector<8x128xf32>
    %346 = arith.mulf %335, %306 : vector<8x128xf32>
    %347 = arith.mulf %327, %337 : vector<8x128xf32>
    %348 = arith.addf %346, %347 : vector<8x128xf32>
    %349 = math.tanh %348 : vector<8x128xf32>
    %350 = arith.mulf %345, %349 : vector<8x128xf32>
    %c0_155 = arith.constant 0 : index
    %c0_156 = arith.constant 0 : index
    %351 = vector.load %arg14[%c0_155, %c0_156] : memref<64x128xf32, #tpu.memory_space<vmem>>, vector<8x128xf32>
    tpu.vector_store %arg14[%c0_155, %c0_156], %350 {strides = array<i32>} : memref<64x128xf32, #tpu.memory_space<vmem>>, vector<8x128xf32>,
    %c8_157 = arith.constant 8 : index
    %c0_158 = arith.constant 0 : index
    %352 = vector.load %arg13[%c8_157, %c0_158] : memref<64x512xf32, #tpu.memory_space<vmem>>, vector<8x512xf32>
    %353 = arith.truncf %350 : vector<8x128xf32> to vector<8x128xbf16>
    %c0_159 = arith.constant 0 : index
    %c0_160 = arith.constant 0 : index
    %354 = vector.load %arg5[%c0_159, %c0_160] : memref<128x512xbf16, #tpu.memory_space<vmem>>, vector<128x512xbf16>
    %cst_161 = arith.constant dense<0.000000e+00> : vector<8x512xf32>
    %355 = tpu.matmul %353, %354, %cst_161 {dimension_numbers = #tpu.dot_dimension_numbers<[1], [0], [0], [1], [0, 0, 1, 1], [], []>} : vector<8x128xbf16>, vector<128x512xbf16>, vector<8x512xf32> -> vector<8x512xf32>
    %356 = arith.addf %352, %355 : vector<8x512xf32>
    %357 = vector.extract_strided_slice %356 {offsets = [0, 0], sizes = [8, 128], strides = [1, 1]} : vector<8x512xf32> to vector<8x128xf32>
    %cst_162 = arith.constant 5.000000e-01 : f32
    %358 = vector.broadcast %cst_162 : f32 to vector<8x128xf32>
    %359 = arith.mulf %358, %357 : vector<8x128xf32>
    %360 = math.tanh %359 : vector<8x128xf32>
    %cst_163 = arith.constant 1.000000e+00 : f32
    %361 = vector.broadcast %cst_163 : f32 to vector<8x128xf32>
    %362 = arith.addf %360, %361 : vector<8x128xf32>
    %cst_164 = arith.constant 5.000000e-01 : f32
    %363 = vector.broadcast %cst_164 : f32 to vector<8x128xf32>
    %364 = arith.mulf %363, %362 : vector<8x128xf32>
    %365 = vector.extract_strided_slice %356 {offsets = [0, 128], sizes = [8, 128], strides = [1, 1]} : vector<8x512xf32> to vector<8x128xf32>
    %cst_165 = arith.constant 5.000000e-01 : f32
    %366 = vector.broadcast %cst_165 : f32 to vector<8x128xf32>
    %367 = arith.mulf %366, %365 : vector<8x128xf32>
    %368 = math.tanh %367 : vector<8x128xf32>
    %cst_166 = arith.constant 1.000000e+00 : f32
    %369 = vector.broadcast %cst_166 : f32 to vector<8x128xf32>
    %370 = arith.addf %368, %369 : vector<8x128xf32>
    %cst_167 = arith.constant 5.000000e-01 : f32
    %371 = vector.broadcast %cst_167 : f32 to vector<8x128xf32>
    %372 = arith.mulf %371, %370 : vector<8x128xf32>
    %373 = vector.extract_strided_slice %356 {offsets = [0, 256], sizes = [8, 128], strides = [1, 1]} : vector<8x512xf32> to vector<8x128xf32>
    %374 = math.tanh %373 : vector<8x128xf32>
    %375 = vector.extract_strided_slice %356 {offsets = [0, 384], sizes = [8, 128], strides = [1, 1]} : vector<8x512xf32> to vector<8x128xf32>
    %cst_168 = arith.constant 5.000000e-01 : f32
    %376 = vector.broadcast %cst_168 : f32 to vector<8x128xf32>
    %377 = arith.mulf %376, %375 : vector<8x128xf32>
    %378 = math.tanh %377 : vector<8x128xf32>
    %cst_169 = arith.constant 1.000000e+00 : f32
    %379 = vector.broadcast %cst_169 : f32 to vector<8x128xf32>
    %380 = arith.addf %378, %379 : vector<8x128xf32>
    %cst_170 = arith.constant 5.000000e-01 : f32
    %381 = vector.broadcast %cst_170 : f32 to vector<8x128xf32>
    %382 = arith.mulf %381, %380 : vector<8x128xf32>
    %383 = arith.mulf %372, %348 : vector<8x128xf32>
    %384 = arith.mulf %364, %374 : vector<8x128xf32>
    %385 = arith.addf %383, %384 : vector<8x128xf32>
    %386 = math.tanh %385 : vector<8x128xf32>
    %387 = arith.mulf %382, %386 : vector<8x128xf32>
    %c8_171 = arith.constant 8 : index
    %c0_172 = arith.constant 0 : index
    %388 = vector.load %arg14[%c8_171, %c0_172] : memref<64x128xf32, #tpu.memory_space<vmem>>, vector<8x128xf32>
    tpu.vector_store %arg14[%c8_171, %c0_172], %387 {strides = array<i32>} : memref<64x128xf32, #tpu.memory_space<vmem>>, vector<8x128xf32>,
    %c16_173 = arith.constant 16 : index
    %c0_174 = arith.constant 0 : index
    %389 = vector.load %arg13[%c16_173, %c0_174] : memref<64x512xf32, #tpu.memory_space<vmem>>, vector<8x512xf32>
    %390 = arith.truncf %387 : vector<8x128xf32> to vector<8x128xbf16>
    %c0_175 = arith.constant 0 : index
    %c0_176 = arith.constant 0 : index
    %391 = vector.load %arg5[%c0_175, %c0_176] : memref<128x512xbf16, #tpu.memory_space<vmem>>, vector<128x512xbf16>
    %cst_177 = arith.constant dense<0.000000e+00> : vector<8x512xf32>
    %392 = tpu.matmul %390, %391, %cst_177 {dimension_numbers = #tpu.dot_dimension_numbers<[1], [0], [0], [1], [0, 0, 1, 1], [], []>} : vector<8x128xbf16>, vector<128x512xbf16>, vector<8x512xf32> -> vector<8x512xf32>
    %393 = arith.addf %389, %392 : vector<8x512xf32>
    %394 = vector.extract_strided_slice %393 {offsets = [0, 0], sizes = [8, 128], strides = [1, 1]} : vector<8x512xf32> to vector<8x128xf32>
    %cst_178 = arith.constant 5.000000e-01 : f32
    %395 = vector.broadcast %cst_178 : f32 to vector<8x128xf32>
    %396 = arith.mulf %395, %394 : vector<8x128xf32>
    %397 = math.tanh %396 : vector<8x128xf32>
    %cst_179 = arith.constant 1.000000e+00 : f32
    %398 = vector.broadcast %cst_179 : f32 to vector<8x128xf32>
    %399 = arith.addf %397, %398 : vector<8x128xf32>
    %cst_180 = arith.constant 5.000000e-01 : f32
    %400 = vector.broadcast %cst_180 : f32 to vector<8x128xf32>
    %401 = arith.mulf %400, %399 : vector<8x128xf32>
    %402 = vector.extract_strided_slice %393 {offsets = [0, 128], sizes = [8, 128], strides = [1, 1]} : vector<8x512xf32> to vector<8x128xf32>
    %cst_181 = arith.constant 5.000000e-01 : f32
    %403 = vector.broadcast %cst_181 : f32 to vector<8x128xf32>
    %404 = arith.mulf %403, %402 : vector<8x128xf32>
    %405 = math.tanh %404 : vector<8x128xf32>
    %cst_182 = arith.constant 1.000000e+00 : f32
    %406 = vector.broadcast %cst_182 : f32 to vector<8x128xf32>
    %407 = arith.addf %405, %406 : vector<8x128xf32>
    %cst_183 = arith.constant 5.000000e-01 : f32
    %408 = vector.broadcast %cst_183 : f32 to vector<8x128xf32>
    %409 = arith.mulf %408, %407 : vector<8x128xf32>
    %410 = vector.extract_strided_slice %393 {offsets = [0, 256], sizes = [8, 128], strides = [1, 1]} : vector<8x512xf32> to vector<8x128xf32>
    %411 = math.tanh %410 : vector<8x128xf32>
    %412 = vector.extract_strided_slice %393 {offsets = [0, 384], sizes = [8, 128], strides = [1, 1]} : vector<8x512xf32> to vector<8x128xf32>
    %cst_184 = arith.constant 5.000000e-01 : f32
    %413 = vector.broadcast %cst_184 : f32 to vector<8x128xf32>
    %414 = arith.mulf %413, %412 : vector<8x128xf32>
    %415 = math.tanh %414 : vector<8x128xf32>
    %cst_185 = arith.constant 1.000000e+00 : f32
    %416 = vector.broadcast %cst_185 : f32 to vector<8x128xf32>
    %417 = arith.addf %415, %416 : vector<8x128xf32>
    %cst_186 = arith.constant 5.000000e-01 : f32
    %418 = vector.broadcast %cst_186 : f32 to vector<8x128xf32>
    %419 = arith.mulf %418, %417 : vector<8x128xf32>
    %420 = arith.mulf %409, %385 : vector<8x128xf32>
    %421 = arith.mulf %401, %411 : vector<8x128xf32>
    %422 = arith.addf %420, %421 : vector<8x128xf32>
    %423 = math.tanh %422 : vector<8x128xf32>
    %424 = arith.mulf %419, %423 : vector<8x128xf32>
    %c16_187 = arith.constant 16 : index
    %c0_188 = arith.constant 0 : index
    %425 = vector.load %arg14[%c16_187, %c0_188] : memref<64x128xf32, #tpu.memory_space<vmem>>, vector<8x128xf32>
    tpu.vector_store %arg14[%c16_187, %c0_188], %424 {strides = array<i32>} : memref<64x128xf32, #tpu.memory_space<vmem>>, vector<8x128xf32>,
    %c24_189 = arith.constant 24 : index
    %c0_190 = arith.constant 0 : index
    %426 = vector.load %arg13[%c24_189, %c0_190] : memref<64x512xf32, #tpu.memory_space<vmem>>, vector<8x512xf32>
    %427 = arith.truncf %424 : vector<8x128xf32> to vector<8x128xbf16>
    %c0_191 = arith.constant 0 : index
    %c0_192 = arith.constant 0 : index
    %428 = vector.load %arg5[%c0_191, %c0_192] : memref<128x512xbf16, #tpu.memory_space<vmem>>, vector<128x512xbf16>
    %cst_193 = arith.constant dense<0.000000e+00> : vector<8x512xf32>
    %429 = tpu.matmul %427, %428, %cst_193 {dimension_numbers = #tpu.dot_dimension_numbers<[1], [0], [0], [1], [0, 0, 1, 1], [], []>} : vector<8x128xbf16>, vector<128x512xbf16>, vector<8x512xf32> -> vector<8x512xf32>
    %430 = arith.addf %426, %429 : vector<8x512xf32>
    %431 = vector.extract_strided_slice %430 {offsets = [0, 0], sizes = [8, 128], strides = [1, 1]} : vector<8x512xf32> to vector<8x128xf32>
    %cst_194 = arith.constant 5.000000e-01 : f32
    %432 = vector.broadcast %cst_194 : f32 to vector<8x128xf32>
    %433 = arith.mulf %432, %431 : vector<8x128xf32>
    %434 = math.tanh %433 : vector<8x128xf32>
    %cst_195 = arith.constant 1.000000e+00 : f32
    %435 = vector.broadcast %cst_195 : f32 to vector<8x128xf32>
    %436 = arith.addf %434, %435 : vector<8x128xf32>
    %cst_196 = arith.constant 5.000000e-01 : f32
    %437 = vector.broadcast %cst_196 : f32 to vector<8x128xf32>
    %438 = arith.mulf %437, %436 : vector<8x128xf32>
    %439 = vector.extract_strided_slice %430 {offsets = [0, 128], sizes = [8, 128], strides = [1, 1]} : vector<8x512xf32> to vector<8x128xf32>
    %cst_197 = arith.constant 5.000000e-01 : f32
    %440 = vector.broadcast %cst_197 : f32 to vector<8x128xf32>
    %441 = arith.mulf %440, %439 : vector<8x128xf32>
    %442 = math.tanh %441 : vector<8x128xf32>
    %cst_198 = arith.constant 1.000000e+00 : f32
    %443 = vector.broadcast %cst_198 : f32 to vector<8x128xf32>
    %444 = arith.addf %442, %443 : vector<8x128xf32>
    %cst_199 = arith.constant 5.000000e-01 : f32
    %445 = vector.broadcast %cst_199 : f32 to vector<8x128xf32>
    %446 = arith.mulf %445, %444 : vector<8x128xf32>
    %447 = vector.extract_strided_slice %430 {offsets = [0, 256], sizes = [8, 128], strides = [1, 1]} : vector<8x512xf32> to vector<8x128xf32>
    %448 = math.tanh %447 : vector<8x128xf32>
    %449 = vector.extract_strided_slice %430 {offsets = [0, 384], sizes = [8, 128], strides = [1, 1]} : vector<8x512xf32> to vector<8x128xf32>
    %cst_200 = arith.constant 5.000000e-01 : f32
    %450 = vector.broadcast %cst_200 : f32 to vector<8x128xf32>
    %451 = arith.mulf %450, %449 : vector<8x128xf32>
    %452 = math.tanh %451 : vector<8x128xf32>
    %cst_201 = arith.constant 1.000000e+00 : f32
    %453 = vector.broadcast %cst_201 : f32 to vector<8x128xf32>
    %454 = arith.addf %452, %453 : vector<8x128xf32>
    %cst_202 = arith.constant 5.000000e-01 : f32
    %455 = vector.broadcast %cst_202 : f32 to vector<8x128xf32>
    %456 = arith.mulf %455, %454 : vector<8x128xf32>
    %457 = arith.mulf %446, %422 : vector<8x128xf32>
    %458 = arith.mulf %438, %448 : vector<8x128xf32>
    %459 = arith.addf %457, %458 : vector<8x128xf32>
    %460 = math.tanh %459 : vector<8x128xf32>
    %461 = arith.mulf %456, %460 : vector<8x128xf32>
    %c24_203 = arith.constant 24 : index
    %c0_204 = arith.constant 0 : index
    %462 = vector.load %arg14[%c24_203, %c0_204] : memref<64x128xf32, #tpu.memory_space<vmem>>, vector<8x128xf32>
    tpu.vector_store %arg14[%c24_203, %c0_204], %461 {strides = array<i32>} : memref<64x128xf32, #tpu.memory_space<vmem>>, vector<8x128xf32>,
    %c32_205 = arith.constant 32 : index
    %c0_206 = arith.constant 0 : index
    %463 = vector.load %arg13[%c32_205, %c0_206] : memref<64x512xf32, #tpu.memory_space<vmem>>, vector<8x512xf32>
    %464 = arith.truncf %461 : vector<8x128xf32> to vector<8x128xbf16>
    %c0_207 = arith.constant 0 : index
    %c0_208 = arith.constant 0 : index
    %465 = vector.load %arg5[%c0_207, %c0_208] : memref<128x512xbf16, #tpu.memory_space<vmem>>, vector<128x512xbf16>
    %cst_209 = arith.constant dense<0.000000e+00> : vector<8x512xf32>
    %466 = tpu.matmul %464, %465, %cst_209 {dimension_numbers = #tpu.dot_dimension_numbers<[1], [0], [0], [1], [0, 0, 1, 1], [], []>} : vector<8x128xbf16>, vector<128x512xbf16>, vector<8x512xf32> -> vector<8x512xf32>
    %467 = arith.addf %463, %466 : vector<8x512xf32>
    %468 = vector.extract_strided_slice %467 {offsets = [0, 0], sizes = [8, 128], strides = [1, 1]} : vector<8x512xf32> to vector<8x128xf32>
    %cst_210 = arith.constant 5.000000e-01 : f32
    %469 = vector.broadcast %cst_210 : f32 to vector<8x128xf32>
    %470 = arith.mulf %469, %468 : vector<8x128xf32>
    %471 = math.tanh %470 : vector<8x128xf32>
    %cst_211 = arith.constant 1.000000e+00 : f32
    %472 = vector.broadcast %cst_211 : f32 to vector<8x128xf32>
    %473 = arith.addf %471, %472 : vector<8x128xf32>
    %cst_212 = arith.constant 5.000000e-01 : f32
    %474 = vector.broadcast %cst_212 : f32 to vector<8x128xf32>
    %475 = arith.mulf %474, %473 : vector<8x128xf32>
    %476 = vector.extract_strided_slice %467 {offsets = [0, 128], sizes = [8, 128], strides = [1, 1]} : vector<8x512xf32> to vector<8x128xf32>
    %cst_213 = arith.constant 5.000000e-01 : f32
    %477 = vector.broadcast %cst_213 : f32 to vector<8x128xf32>
    %478 = arith.mulf %477, %476 : vector<8x128xf32>
    %479 = math.tanh %478 : vector<8x128xf32>
    %cst_214 = arith.constant 1.000000e+00 : f32
    %480 = vector.broadcast %cst_214 : f32 to vector<8x128xf32>
    %481 = arith.addf %479, %480 : vector<8x128xf32>
    %cst_215 = arith.constant 5.000000e-01 : f32
    %482 = vector.broadcast %cst_215 : f32 to vector<8x128xf32>
    %483 = arith.mulf %482, %481 : vector<8x128xf32>
    %484 = vector.extract_strided_slice %467 {offsets = [0, 256], sizes = [8, 128], strides = [1, 1]} : vector<8x512xf32> to vector<8x128xf32>
    %485 = math.tanh %484 : vector<8x128xf32>
    %486 = vector.extract_strided_slice %467 {offsets = [0, 384], sizes = [8, 128], strides = [1, 1]} : vector<8x512xf32> to vector<8x128xf32>
    %cst_216 = arith.constant 5.000000e-01 : f32
    %487 = vector.broadcast %cst_216 : f32 to vector<8x128xf32>
    %488 = arith.mulf %487, %486 : vector<8x128xf32>
    %489 = math.tanh %488 : vector<8x128xf32>
    %cst_217 = arith.constant 1.000000e+00 : f32
    %490 = vector.broadcast %cst_217 : f32 to vector<8x128xf32>
    %491 = arith.addf %489, %490 : vector<8x128xf32>
    %cst_218 = arith.constant 5.000000e-01 : f32
    %492 = vector.broadcast %cst_218 : f32 to vector<8x128xf32>
    %493 = arith.mulf %492, %491 : vector<8x128xf32>
    %494 = arith.mulf %483, %459 : vector<8x128xf32>
    %495 = arith.mulf %475, %485 : vector<8x128xf32>
    %496 = arith.addf %494, %495 : vector<8x128xf32>
    %497 = math.tanh %496 : vector<8x128xf32>
    %498 = arith.mulf %493, %497 : vector<8x128xf32>
    %c32_219 = arith.constant 32 : index
    %c0_220 = arith.constant 0 : index
    %499 = vector.load %arg14[%c32_219, %c0_220] : memref<64x128xf32, #tpu.memory_space<vmem>>, vector<8x128xf32>
    tpu.vector_store %arg14[%c32_219, %c0_220], %498 {strides = array<i32>} : memref<64x128xf32, #tpu.memory_space<vmem>>, vector<8x128xf32>,
    %c40_221 = arith.constant 40 : index
    %c0_222 = arith.constant 0 : index
    %500 = vector.load %arg13[%c40_221, %c0_222] : memref<64x512xf32, #tpu.memory_space<vmem>>, vector<8x512xf32>
    %501 = arith.truncf %498 : vector<8x128xf32> to vector<8x128xbf16>
    %c0_223 = arith.constant 0 : index
    %c0_224 = arith.constant 0 : index
    %502 = vector.load %arg5[%c0_223, %c0_224] : memref<128x512xbf16, #tpu.memory_space<vmem>>, vector<128x512xbf16>
    %cst_225 = arith.constant dense<0.000000e+00> : vector<8x512xf32>
    %503 = tpu.matmul %501, %502, %cst_225 {dimension_numbers = #tpu.dot_dimension_numbers<[1], [0], [0], [1], [0, 0, 1, 1], [], []>} : vector<8x128xbf16>, vector<128x512xbf16>, vector<8x512xf32> -> vector<8x512xf32>
    %504 = arith.addf %500, %503 : vector<8x512xf32>
    %505 = vector.extract_strided_slice %504 {offsets = [0, 0], sizes = [8, 128], strides = [1, 1]} : vector<8x512xf32> to vector<8x128xf32>
    %cst_226 = arith.constant 5.000000e-01 : f32
    %506 = vector.broadcast %cst_226 : f32 to vector<8x128xf32>
    %507 = arith.mulf %506, %505 : vector<8x128xf32>
    %508 = math.tanh %507 : vector<8x128xf32>
    %cst_227 = arith.constant 1.000000e+00 : f32
    %509 = vector.broadcast %cst_227 : f32 to vector<8x128xf32>
    %510 = arith.addf %508, %509 : vector<8x128xf32>
    %cst_228 = arith.constant 5.000000e-01 : f32
    %511 = vector.broadcast %cst_228 : f32 to vector<8x128xf32>
    %512 = arith.mulf %511, %510 : vector<8x128xf32>
    %513 = vector.extract_strided_slice %504 {offsets = [0, 128], sizes = [8, 128], strides = [1, 1]} : vector<8x512xf32> to vector<8x128xf32>
    %cst_229 = arith.constant 5.000000e-01 : f32
    %514 = vector.broadcast %cst_229 : f32 to vector<8x128xf32>
    %515 = arith.mulf %514, %513 : vector<8x128xf32>
    %516 = math.tanh %515 : vector<8x128xf32>
    %cst_230 = arith.constant 1.000000e+00 : f32
    %517 = vector.broadcast %cst_230 : f32 to vector<8x128xf32>
    %518 = arith.addf %516, %517 : vector<8x128xf32>
    %cst_231 = arith.constant 5.000000e-01 : f32
    %519 = vector.broadcast %cst_231 : f32 to vector<8x128xf32>
    %520 = arith.mulf %519, %518 : vector<8x128xf32>
    %521 = vector.extract_strided_slice %504 {offsets = [0, 256], sizes = [8, 128], strides = [1, 1]} : vector<8x512xf32> to vector<8x128xf32>
    %522 = math.tanh %521 : vector<8x128xf32>
    %523 = vector.extract_strided_slice %504 {offsets = [0, 384], sizes = [8, 128], strides = [1, 1]} : vector<8x512xf32> to vector<8x128xf32>
    %cst_232 = arith.constant 5.000000e-01 : f32
    %524 = vector.broadcast %cst_232 : f32 to vector<8x128xf32>
    %525 = arith.mulf %524, %523 : vector<8x128xf32>
    %526 = math.tanh %525 : vector<8x128xf32>
    %cst_233 = arith.constant 1.000000e+00 : f32
    %527 = vector.broadcast %cst_233 : f32 to vector<8x128xf32>
    %528 = arith.addf %526, %527 : vector<8x128xf32>
    %cst_234 = arith.constant 5.000000e-01 : f32
    %529 = vector.broadcast %cst_234 : f32 to vector<8x128xf32>
    %530 = arith.mulf %529, %528 : vector<8x128xf32>
    %531 = arith.mulf %520, %496 : vector<8x128xf32>
    %532 = arith.mulf %512, %522 : vector<8x128xf32>
    %533 = arith.addf %531, %532 : vector<8x128xf32>
    %534 = math.tanh %533 : vector<8x128xf32>
    %535 = arith.mulf %530, %534 : vector<8x128xf32>
    %c40_235 = arith.constant 40 : index
    %c0_236 = arith.constant 0 : index
    %536 = vector.load %arg14[%c40_235, %c0_236] : memref<64x128xf32, #tpu.memory_space<vmem>>, vector<8x128xf32>
    tpu.vector_store %arg14[%c40_235, %c0_236], %535 {strides = array<i32>} : memref<64x128xf32, #tpu.memory_space<vmem>>, vector<8x128xf32>,
    %c48_237 = arith.constant 48 : index
    %c0_238 = arith.constant 0 : index
    %537 = vector.load %arg13[%c48_237, %c0_238] : memref<64x512xf32, #tpu.memory_space<vmem>>, vector<8x512xf32>
    %538 = arith.truncf %535 : vector<8x128xf32> to vector<8x128xbf16>
    %c0_239 = arith.constant 0 : index
    %c0_240 = arith.constant 0 : index
    %539 = vector.load %arg5[%c0_239, %c0_240] : memref<128x512xbf16, #tpu.memory_space<vmem>>, vector<128x512xbf16>
    %cst_241 = arith.constant dense<0.000000e+00> : vector<8x512xf32>
    %540 = tpu.matmul %538, %539, %cst_241 {dimension_numbers = #tpu.dot_dimension_numbers<[1], [0], [0], [1], [0, 0, 1, 1], [], []>} : vector<8x128xbf16>, vector<128x512xbf16>, vector<8x512xf32> -> vector<8x512xf32>
    %541 = arith.addf %537, %540 : vector<8x512xf32>
    %542 = vector.extract_strided_slice %541 {offsets = [0, 0], sizes = [8, 128], strides = [1, 1]} : vector<8x512xf32> to vector<8x128xf32>
    %cst_242 = arith.constant 5.000000e-01 : f32
    %543 = vector.broadcast %cst_242 : f32 to vector<8x128xf32>
    %544 = arith.mulf %543, %542 : vector<8x128xf32>
    %545 = math.tanh %544 : vector<8x128xf32>
    %cst_243 = arith.constant 1.000000e+00 : f32
    %546 = vector.broadcast %cst_243 : f32 to vector<8x128xf32>
    %547 = arith.addf %545, %546 : vector<8x128xf32>
    %cst_244 = arith.constant 5.000000e-01 : f32
    %548 = vector.broadcast %cst_244 : f32 to vector<8x128xf32>
    %549 = arith.mulf %548, %547 : vector<8x128xf32>
    %550 = vector.extract_strided_slice %541 {offsets = [0, 128], sizes = [8, 128], strides = [1, 1]} : vector<8x512xf32> to vector<8x128xf32>
    %cst_245 = arith.constant 5.000000e-01 : f32
    %551 = vector.broadcast %cst_245 : f32 to vector<8x128xf32>
    %552 = arith.mulf %551, %550 : vector<8x128xf32>
    %553 = math.tanh %552 : vector<8x128xf32>
    %cst_246 = arith.constant 1.000000e+00 : f32
    %554 = vector.broadcast %cst_246 : f32 to vector<8x128xf32>
    %555 = arith.addf %553, %554 : vector<8x128xf32>
    %cst_247 = arith.constant 5.000000e-01 : f32
    %556 = vector.broadcast %cst_247 : f32 to vector<8x128xf32>
    %557 = arith.mulf %556, %555 : vector<8x128xf32>
    %558 = vector.extract_strided_slice %541 {offsets = [0, 256], sizes = [8, 128], strides = [1, 1]} : vector<8x512xf32> to vector<8x128xf32>
    %559 = math.tanh %558 : vector<8x128xf32>
    %560 = vector.extract_strided_slice %541 {offsets = [0, 384], sizes = [8, 128], strides = [1, 1]} : vector<8x512xf32> to vector<8x128xf32>
    %cst_248 = arith.constant 5.000000e-01 : f32
    %561 = vector.broadcast %cst_248 : f32 to vector<8x128xf32>
    %562 = arith.mulf %561, %560 : vector<8x128xf32>
    %563 = math.tanh %562 : vector<8x128xf32>
    %cst_249 = arith.constant 1.000000e+00 : f32
    %564 = vector.broadcast %cst_249 : f32 to vector<8x128xf32>
    %565 = arith.addf %563, %564 : vector<8x128xf32>
    %cst_250 = arith.constant 5.000000e-01 : f32
    %566 = vector.broadcast %cst_250 : f32 to vector<8x128xf32>
    %567 = arith.mulf %566, %565 : vector<8x128xf32>
    %568 = arith.mulf %557, %533 : vector<8x128xf32>
    %569 = arith.mulf %549, %559 : vector<8x128xf32>
    %570 = arith.addf %568, %569 : vector<8x128xf32>
    %571 = math.tanh %570 : vector<8x128xf32>
    %572 = arith.mulf %567, %571 : vector<8x128xf32>
    %c48_251 = arith.constant 48 : index
    %c0_252 = arith.constant 0 : index
    %573 = vector.load %arg14[%c48_251, %c0_252] : memref<64x128xf32, #tpu.memory_space<vmem>>, vector<8x128xf32>
    tpu.vector_store %arg14[%c48_251, %c0_252], %572 {strides = array<i32>} : memref<64x128xf32, #tpu.memory_space<vmem>>, vector<8x128xf32>,
    %c56_253 = arith.constant 56 : index
    %c0_254 = arith.constant 0 : index
    %574 = vector.load %arg13[%c56_253, %c0_254] : memref<64x512xf32, #tpu.memory_space<vmem>>, vector<8x512xf32>
    %575 = arith.truncf %572 : vector<8x128xf32> to vector<8x128xbf16>
    %c0_255 = arith.constant 0 : index
    %c0_256 = arith.constant 0 : index
    %576 = vector.load %arg5[%c0_255, %c0_256] : memref<128x512xbf16, #tpu.memory_space<vmem>>, vector<128x512xbf16>
    %cst_257 = arith.constant dense<0.000000e+00> : vector<8x512xf32>
    %577 = tpu.matmul %575, %576, %cst_257 {dimension_numbers = #tpu.dot_dimension_numbers<[1], [0], [0], [1], [0, 0, 1, 1], [], []>} : vector<8x128xbf16>, vector<128x512xbf16>, vector<8x512xf32> -> vector<8x512xf32>
    %578 = arith.addf %574, %577 : vector<8x512xf32>
    %579 = vector.extract_strided_slice %578 {offsets = [0, 0], sizes = [8, 128], strides = [1, 1]} : vector<8x512xf32> to vector<8x128xf32>
    %cst_258 = arith.constant 5.000000e-01 : f32
    %580 = vector.broadcast %cst_258 : f32 to vector<8x128xf32>
    %581 = arith.mulf %580, %579 : vector<8x128xf32>
    %582 = math.tanh %581 : vector<8x128xf32>
    %cst_259 = arith.constant 1.000000e+00 : f32
    %583 = vector.broadcast %cst_259 : f32 to vector<8x128xf32>
    %584 = arith.addf %582, %583 : vector<8x128xf32>
    %cst_260 = arith.constant 5.000000e-01 : f32
    %585 = vector.broadcast %cst_260 : f32 to vector<8x128xf32>
    %586 = arith.mulf %585, %584 : vector<8x128xf32>
    %587 = vector.extract_strided_slice %578 {offsets = [0, 128], sizes = [8, 128], strides = [1, 1]} : vector<8x512xf32> to vector<8x128xf32>
    %cst_261 = arith.constant 5.000000e-01 : f32
    %588 = vector.broadcast %cst_261 : f32 to vector<8x128xf32>
    %589 = arith.mulf %588, %587 : vector<8x128xf32>
    %590 = math.tanh %589 : vector<8x128xf32>
    %cst_262 = arith.constant 1.000000e+00 : f32
    %591 = vector.broadcast %cst_262 : f32 to vector<8x128xf32>
    %592 = arith.addf %590, %591 : vector<8x128xf32>
    %cst_263 = arith.constant 5.000000e-01 : f32
    %593 = vector.broadcast %cst_263 : f32 to vector<8x128xf32>
    %594 = arith.mulf %593, %592 : vector<8x128xf32>
    %595 = vector.extract_strided_slice %578 {offsets = [0, 256], sizes = [8, 128], strides = [1, 1]} : vector<8x512xf32> to vector<8x128xf32>
    %596 = math.tanh %595 : vector<8x128xf32>
    %597 = vector.extract_strided_slice %578 {offsets = [0, 384], sizes = [8, 128], strides = [1, 1]} : vector<8x512xf32> to vector<8x128xf32>
    %cst_264 = arith.constant 5.000000e-01 : f32
    %598 = vector.broadcast %cst_264 : f32 to vector<8x128xf32>
    %599 = arith.mulf %598, %597 : vector<8x128xf32>
    %600 = math.tanh %599 : vector<8x128xf32>
    %cst_265 = arith.constant 1.000000e+00 : f32
    %601 = vector.broadcast %cst_265 : f32 to vector<8x128xf32>
    %602 = arith.addf %600, %601 : vector<8x128xf32>
    %cst_266 = arith.constant 5.000000e-01 : f32
    %603 = vector.broadcast %cst_266 : f32 to vector<8x128xf32>
    %604 = arith.mulf %603, %602 : vector<8x128xf32>
    %605 = arith.mulf %594, %570 : vector<8x128xf32>
    %606 = arith.mulf %586, %596 : vector<8x128xf32>
    %607 = arith.addf %605, %606 : vector<8x128xf32>
    %608 = math.tanh %607 : vector<8x128xf32>
    %609 = arith.mulf %604, %608 : vector<8x128xf32>
    %c56_267 = arith.constant 56 : index
    %c0_268 = arith.constant 0 : index
    %610 = vector.load %arg14[%c56_267, %c0_268] : memref<64x128xf32, #tpu.memory_space<vmem>>, vector<8x128xf32>
    tpu.vector_store %arg14[%c56_267, %c0_268], %609 {strides = array<i32>} : memref<64x128xf32, #tpu.memory_space<vmem>>, vector<8x128xf32>,
    %cst_269 = arith.constant 0.000000e+00 : f32
    %611 = vector.broadcast %cst_269 : f32 to vector<8x128xf32>
    %cst_270 = arith.constant 0.000000e+00 : f32
    %612 = vector.broadcast %cst_270 : f32 to vector<8x128xf32>
    %c0_271 = arith.constant 0 : index
    %c0_272 = arith.constant 0 : index
    %613 = vector.load %arg9[%c0_271, %c0_272] : memref<1x512xf32, #tpu.memory_space<vmem>>, vector<1x512xf32>
    %c0_273 = arith.constant 0 : index
    %c0_274 = arith.constant 0 : index
    %614 = vector.load %arg14[%c0_273, %c0_274] : memref<64x128xf32, #tpu.memory_space<vmem>>, vector<64x128xf32>
    %615 = arith.truncf %614 : vector<64x128xf32> to vector<64x128xbf16>
    %c0_275 = arith.constant 0 : index
    %c0_276 = arith.constant 0 : index
    %616 = vector.load %arg7[%c0_275, %c0_276] : memref<128x512xbf16, #tpu.memory_space<vmem>>, vector<128x512xbf16>
    %cst_277 = arith.constant dense<0.000000e+00> : vector<64x512xf32>
    %617 = tpu.matmul %615, %616, %cst_277 {dimension_numbers = #tpu.dot_dimension_numbers<[1], [0], [0], [1], [0, 0, 1, 1], [], []>} : vector<64x128xbf16>, vector<128x512xbf16>, vector<64x512xf32> -> vector<64x512xf32>
    %618 = vector.broadcast %613 : vector<1x512xf32> to vector<64x512xf32>
    %619 = arith.addf %617, %618 : vector<64x512xf32>
    %c0_278 = arith.constant 0 : index
    %c0_279 = arith.constant 0 : index
    %620 = vector.load %arg13[%c0_278, %c0_279] : memref<64x512xf32, #tpu.memory_space<vmem>>, vector<64x512xf32>
    tpu.vector_store %arg13[%c0_278, %c0_279], %619 {strides = array<i32>} : memref<64x512xf32, #tpu.memory_space<vmem>>, vector<64x512xf32>,
    %c0_280 = arith.constant 0 : index
    %c0_281 = arith.constant 0 : index
    %621 = vector.load %arg13[%c0_280, %c0_281] : memref<64x512xf32, #tpu.memory_space<vmem>>, vector<8x512xf32>
    %622 = arith.truncf %611 : vector<8x128xf32> to vector<8x128xbf16>
    %c0_282 = arith.constant 0 : index
    %c0_283 = arith.constant 0 : index
    %623 = vector.load %arg8[%c0_282, %c0_283] : memref<128x512xbf16, #tpu.memory_space<vmem>>, vector<128x512xbf16>
    %cst_284 = arith.constant dense<0.000000e+00> : vector<8x512xf32>
    %624 = tpu.matmul %622, %623, %cst_284 {dimension_numbers = #tpu.dot_dimension_numbers<[1], [0], [0], [1], [0, 0, 1, 1], [], []>} : vector<8x128xbf16>, vector<128x512xbf16>, vector<8x512xf32> -> vector<8x512xf32>
    %625 = arith.addf %621, %624 : vector<8x512xf32>
    %626 = vector.extract_strided_slice %625 {offsets = [0, 0], sizes = [8, 128], strides = [1, 1]} : vector<8x512xf32> to vector<8x128xf32>
    %cst_285 = arith.constant 5.000000e-01 : f32
    %627 = vector.broadcast %cst_285 : f32 to vector<8x128xf32>
    %628 = arith.mulf %627, %626 : vector<8x128xf32>
    %629 = math.tanh %628 : vector<8x128xf32>
    %cst_286 = arith.constant 1.000000e+00 : f32
    %630 = vector.broadcast %cst_286 : f32 to vector<8x128xf32>
    %631 = arith.addf %629, %630 : vector<8x128xf32>
    %cst_287 = arith.constant 5.000000e-01 : f32
    %632 = vector.broadcast %cst_287 : f32 to vector<8x128xf32>
    %633 = arith.mulf %632, %631 : vector<8x128xf32>
    %634 = vector.extract_strided_slice %625 {offsets = [0, 128], sizes = [8, 128], strides = [1, 1]} : vector<8x512xf32> to vector<8x128xf32>
    %cst_288 = arith.constant 5.000000e-01 : f32
    %635 = vector.broadcast %cst_288 : f32 to vector<8x128xf32>
    %636 = arith.mulf %635, %634 : vector<8x128xf32>
    %637 = math.tanh %636 : vector<8x128xf32>
    %cst_289 = arith.constant 1.000000e+00 : f32
    %638 = vector.broadcast %cst_289 : f32 to vector<8x128xf32>
    %639 = arith.addf %637, %638 : vector<8x128xf32>
    %cst_290 = arith.constant 5.000000e-01 : f32
    %640 = vector.broadcast %cst_290 : f32 to vector<8x128xf32>
    %641 = arith.mulf %640, %639 : vector<8x128xf32>
    %642 = vector.extract_strided_slice %625 {offsets = [0, 256], sizes = [8, 128], strides = [1, 1]} : vector<8x512xf32> to vector<8x128xf32>
    %643 = math.tanh %642 : vector<8x128xf32>
    %644 = vector.extract_strided_slice %625 {offsets = [0, 384], sizes = [8, 128], strides = [1, 1]} : vector<8x512xf32> to vector<8x128xf32>
    %cst_291 = arith.constant 5.000000e-01 : f32
    %645 = vector.broadcast %cst_291 : f32 to vector<8x128xf32>
    %646 = arith.mulf %645, %644 : vector<8x128xf32>
    %647 = math.tanh %646 : vector<8x128xf32>
    %cst_292 = arith.constant 1.000000e+00 : f32
    %648 = vector.broadcast %cst_292 : f32 to vector<8x128xf32>
    %649 = arith.addf %647, %648 : vector<8x128xf32>
    %cst_293 = arith.constant 5.000000e-01 : f32
    %650 = vector.broadcast %cst_293 : f32 to vector<8x128xf32>
    %651 = arith.mulf %650, %649 : vector<8x128xf32>
    %652 = arith.mulf %641, %612 : vector<8x128xf32>
    %653 = arith.mulf %633, %643 : vector<8x128xf32>
    %654 = arith.addf %652, %653 : vector<8x128xf32>
    %655 = math.tanh %654 : vector<8x128xf32>
    %656 = arith.mulf %651, %655 : vector<8x128xf32>
    %c8_294 = arith.constant 8 : index
    %c0_295 = arith.constant 0 : index
    %657 = vector.load %arg13[%c8_294, %c0_295] : memref<64x512xf32, #tpu.memory_space<vmem>>, vector<8x512xf32>
    %658 = arith.truncf %656 : vector<8x128xf32> to vector<8x128xbf16>
    %c0_296 = arith.constant 0 : index
    %c0_297 = arith.constant 0 : index
    %659 = vector.load %arg8[%c0_296, %c0_297] : memref<128x512xbf16, #tpu.memory_space<vmem>>, vector<128x512xbf16>
    %cst_298 = arith.constant dense<0.000000e+00> : vector<8x512xf32>
    %660 = tpu.matmul %658, %659, %cst_298 {dimension_numbers = #tpu.dot_dimension_numbers<[1], [0], [0], [1], [0, 0, 1, 1], [], []>} : vector<8x128xbf16>, vector<128x512xbf16>, vector<8x512xf32> -> vector<8x512xf32>
    %661 = arith.addf %657, %660 : vector<8x512xf32>
    %662 = vector.extract_strided_slice %661 {offsets = [0, 0], sizes = [8, 128], strides = [1, 1]} : vector<8x512xf32> to vector<8x128xf32>
    %cst_299 = arith.constant 5.000000e-01 : f32
    %663 = vector.broadcast %cst_299 : f32 to vector<8x128xf32>
    %664 = arith.mulf %663, %662 : vector<8x128xf32>
    %665 = math.tanh %664 : vector<8x128xf32>
    %cst_300 = arith.constant 1.000000e+00 : f32
    %666 = vector.broadcast %cst_300 : f32 to vector<8x128xf32>
    %667 = arith.addf %665, %666 : vector<8x128xf32>
    %cst_301 = arith.constant 5.000000e-01 : f32
    %668 = vector.broadcast %cst_301 : f32 to vector<8x128xf32>
    %669 = arith.mulf %668, %667 : vector<8x128xf32>
    %670 = vector.extract_strided_slice %661 {offsets = [0, 128], sizes = [8, 128], strides = [1, 1]} : vector<8x512xf32> to vector<8x128xf32>
    %cst_302 = arith.constant 5.000000e-01 : f32
    %671 = vector.broadcast %cst_302 : f32 to vector<8x128xf32>
    %672 = arith.mulf %671, %670 : vector<8x128xf32>
    %673 = math.tanh %672 : vector<8x128xf32>
    %cst_303 = arith.constant 1.000000e+00 : f32
    %674 = vector.broadcast %cst_303 : f32 to vector<8x128xf32>
    %675 = arith.addf %673, %674 : vector<8x128xf32>
    %cst_304 = arith.constant 5.000000e-01 : f32
    %676 = vector.broadcast %cst_304 : f32 to vector<8x128xf32>
    %677 = arith.mulf %676, %675 : vector<8x128xf32>
    %678 = vector.extract_strided_slice %661 {offsets = [0, 256], sizes = [8, 128], strides = [1, 1]} : vector<8x512xf32> to vector<8x128xf32>
    %679 = math.tanh %678 : vector<8x128xf32>
    %680 = vector.extract_strided_slice %661 {offsets = [0, 384], sizes = [8, 128], strides = [1, 1]} : vector<8x512xf32> to vector<8x128xf32>
    %cst_305 = arith.constant 5.000000e-01 : f32
    %681 = vector.broadcast %cst_305 : f32 to vector<8x128xf32>
    %682 = arith.mulf %681, %680 : vector<8x128xf32>
    %683 = math.tanh %682 : vector<8x128xf32>
    %cst_306 = arith.constant 1.000000e+00 : f32
    %684 = vector.broadcast %cst_306 : f32 to vector<8x128xf32>
    %685 = arith.addf %683, %684 : vector<8x128xf32>
    %cst_307 = arith.constant 5.000000e-01 : f32
    %686 = vector.broadcast %cst_307 : f32 to vector<8x128xf32>
    %687 = arith.mulf %686, %685 : vector<8x128xf32>
    %688 = arith.mulf %677, %654 : vector<8x128xf32>
    %689 = arith.mulf %669, %679 : vector<8x128xf32>
    %690 = arith.addf %688, %689 : vector<8x128xf32>
    %691 = math.tanh %690 : vector<8x128xf32>
    %692 = arith.mulf %687, %691 : vector<8x128xf32>
    %c16_308 = arith.constant 16 : index
    %c0_309 = arith.constant 0 : index
    %693 = vector.load %arg13[%c16_308, %c0_309] : memref<64x512xf32, #tpu.memory_space<vmem>>, vector<8x512xf32>
    %694 = arith.truncf %692 : vector<8x128xf32> to vector<8x128xbf16>
    %c0_310 = arith.constant 0 : index
    %c0_311 = arith.constant 0 : index
    %695 = vector.load %arg8[%c0_310, %c0_311] : memref<128x512xbf16, #tpu.memory_space<vmem>>, vector<128x512xbf16>
    %cst_312 = arith.constant dense<0.000000e+00> : vector<8x512xf32>
    %696 = tpu.matmul %694, %695, %cst_312 {dimension_numbers = #tpu.dot_dimension_numbers<[1], [0], [0], [1], [0, 0, 1, 1], [], []>} : vector<8x128xbf16>, vector<128x512xbf16>, vector<8x512xf32> -> vector<8x512xf32>
    %697 = arith.addf %693, %696 : vector<8x512xf32>
    %698 = vector.extract_strided_slice %697 {offsets = [0, 0], sizes = [8, 128], strides = [1, 1]} : vector<8x512xf32> to vector<8x128xf32>
    %cst_313 = arith.constant 5.000000e-01 : f32
    %699 = vector.broadcast %cst_313 : f32 to vector<8x128xf32>
    %700 = arith.mulf %699, %698 : vector<8x128xf32>
    %701 = math.tanh %700 : vector<8x128xf32>
    %cst_314 = arith.constant 1.000000e+00 : f32
    %702 = vector.broadcast %cst_314 : f32 to vector<8x128xf32>
    %703 = arith.addf %701, %702 : vector<8x128xf32>
    %cst_315 = arith.constant 5.000000e-01 : f32
    %704 = vector.broadcast %cst_315 : f32 to vector<8x128xf32>
    %705 = arith.mulf %704, %703 : vector<8x128xf32>
    %706 = vector.extract_strided_slice %697 {offsets = [0, 128], sizes = [8, 128], strides = [1, 1]} : vector<8x512xf32> to vector<8x128xf32>
    %cst_316 = arith.constant 5.000000e-01 : f32
    %707 = vector.broadcast %cst_316 : f32 to vector<8x128xf32>
    %708 = arith.mulf %707, %706 : vector<8x128xf32>
    %709 = math.tanh %708 : vector<8x128xf32>
    %cst_317 = arith.constant 1.000000e+00 : f32
    %710 = vector.broadcast %cst_317 : f32 to vector<8x128xf32>
    %711 = arith.addf %709, %710 : vector<8x128xf32>
    %cst_318 = arith.constant 5.000000e-01 : f32
    %712 = vector.broadcast %cst_318 : f32 to vector<8x128xf32>
    %713 = arith.mulf %712, %711 : vector<8x128xf32>
    %714 = vector.extract_strided_slice %697 {offsets = [0, 256], sizes = [8, 128], strides = [1, 1]} : vector<8x512xf32> to vector<8x128xf32>
    %715 = math.tanh %714 : vector<8x128xf32>
    %716 = vector.extract_strided_slice %697 {offsets = [0, 384], sizes = [8, 128], strides = [1, 1]} : vector<8x512xf32> to vector<8x128xf32>
    %cst_319 = arith.constant 5.000000e-01 : f32
    %717 = vector.broadcast %cst_319 : f32 to vector<8x128xf32>
    %718 = arith.mulf %717, %716 : vector<8x128xf32>
    %719 = math.tanh %718 : vector<8x128xf32>
    %cst_320 = arith.constant 1.000000e+00 : f32
    %720 = vector.broadcast %cst_320 : f32 to vector<8x128xf32>
    %721 = arith.addf %719, %720 : vector<8x128xf32>
    %cst_321 = arith.constant 5.000000e-01 : f32
    %722 = vector.broadcast %cst_321 : f32 to vector<8x128xf32>
    %723 = arith.mulf %722, %721 : vector<8x128xf32>
    %724 = arith.mulf %713, %690 : vector<8x128xf32>
    %725 = arith.mulf %705, %715 : vector<8x128xf32>
    %726 = arith.addf %724, %725 : vector<8x128xf32>
    %727 = math.tanh %726 : vector<8x128xf32>
    %728 = arith.mulf %723, %727 : vector<8x128xf32>
    %c24_322 = arith.constant 24 : index
    %c0_323 = arith.constant 0 : index
    %729 = vector.load %arg13[%c24_322, %c0_323] : memref<64x512xf32, #tpu.memory_space<vmem>>, vector<8x512xf32>
    %730 = arith.truncf %728 : vector<8x128xf32> to vector<8x128xbf16>
    %c0_324 = arith.constant 0 : index
    %c0_325 = arith.constant 0 : index
    %731 = vector.load %arg8[%c0_324, %c0_325] : memref<128x512xbf16, #tpu.memory_space<vmem>>, vector<128x512xbf16>
    %cst_326 = arith.constant dense<0.000000e+00> : vector<8x512xf32>
    %732 = tpu.matmul %730, %731, %cst_326 {dimension_numbers = #tpu.dot_dimension_numbers<[1], [0], [0], [1], [0, 0, 1, 1], [], []>} : vector<8x128xbf16>, vector<128x512xbf16>, vector<8x512xf32> -> vector<8x512xf32>
    %733 = arith.addf %729, %732 : vector<8x512xf32>
    %734 = vector.extract_strided_slice %733 {offsets = [0, 0], sizes = [8, 128], strides = [1, 1]} : vector<8x512xf32> to vector<8x128xf32>
    %cst_327 = arith.constant 5.000000e-01 : f32
    %735 = vector.broadcast %cst_327 : f32 to vector<8x128xf32>
    %736 = arith.mulf %735, %734 : vector<8x128xf32>
    %737 = math.tanh %736 : vector<8x128xf32>
    %cst_328 = arith.constant 1.000000e+00 : f32
    %738 = vector.broadcast %cst_328 : f32 to vector<8x128xf32>
    %739 = arith.addf %737, %738 : vector<8x128xf32>
    %cst_329 = arith.constant 5.000000e-01 : f32
    %740 = vector.broadcast %cst_329 : f32 to vector<8x128xf32>
    %741 = arith.mulf %740, %739 : vector<8x128xf32>
    %742 = vector.extract_strided_slice %733 {offsets = [0, 128], sizes = [8, 128], strides = [1, 1]} : vector<8x512xf32> to vector<8x128xf32>
    %cst_330 = arith.constant 5.000000e-01 : f32
    %743 = vector.broadcast %cst_330 : f32 to vector<8x128xf32>
    %744 = arith.mulf %743, %742 : vector<8x128xf32>
    %745 = math.tanh %744 : vector<8x128xf32>
    %cst_331 = arith.constant 1.000000e+00 : f32
    %746 = vector.broadcast %cst_331 : f32 to vector<8x128xf32>
    %747 = arith.addf %745, %746 : vector<8x128xf32>
    %cst_332 = arith.constant 5.000000e-01 : f32
    %748 = vector.broadcast %cst_332 : f32 to vector<8x128xf32>
    %749 = arith.mulf %748, %747 : vector<8x128xf32>
    %750 = vector.extract_strided_slice %733 {offsets = [0, 256], sizes = [8, 128], strides = [1, 1]} : vector<8x512xf32> to vector<8x128xf32>
    %751 = math.tanh %750 : vector<8x128xf32>
    %752 = vector.extract_strided_slice %733 {offsets = [0, 384], sizes = [8, 128], strides = [1, 1]} : vector<8x512xf32> to vector<8x128xf32>
    %cst_333 = arith.constant 5.000000e-01 : f32
    %753 = vector.broadcast %cst_333 : f32 to vector<8x128xf32>
    %754 = arith.mulf %753, %752 : vector<8x128xf32>
    %755 = math.tanh %754 : vector<8x128xf32>
    %cst_334 = arith.constant 1.000000e+00 : f32
    %756 = vector.broadcast %cst_334 : f32 to vector<8x128xf32>
    %757 = arith.addf %755, %756 : vector<8x128xf32>
    %cst_335 = arith.constant 5.000000e-01 : f32
    %758 = vector.broadcast %cst_335 : f32 to vector<8x128xf32>
    %759 = arith.mulf %758, %757 : vector<8x128xf32>
    %760 = arith.mulf %749, %726 : vector<8x128xf32>
    %761 = arith.mulf %741, %751 : vector<8x128xf32>
    %762 = arith.addf %760, %761 : vector<8x128xf32>
    %763 = math.tanh %762 : vector<8x128xf32>
    %764 = arith.mulf %759, %763 : vector<8x128xf32>
    %c32_336 = arith.constant 32 : index
    %c0_337 = arith.constant 0 : index
    %765 = vector.load %arg13[%c32_336, %c0_337] : memref<64x512xf32, #tpu.memory_space<vmem>>, vector<8x512xf32>
    %766 = arith.truncf %764 : vector<8x128xf32> to vector<8x128xbf16>
    %c0_338 = arith.constant 0 : index
    %c0_339 = arith.constant 0 : index
    %767 = vector.load %arg8[%c0_338, %c0_339] : memref<128x512xbf16, #tpu.memory_space<vmem>>, vector<128x512xbf16>
    %cst_340 = arith.constant dense<0.000000e+00> : vector<8x512xf32>
    %768 = tpu.matmul %766, %767, %cst_340 {dimension_numbers = #tpu.dot_dimension_numbers<[1], [0], [0], [1], [0, 0, 1, 1], [], []>} : vector<8x128xbf16>, vector<128x512xbf16>, vector<8x512xf32> -> vector<8x512xf32>
    %769 = arith.addf %765, %768 : vector<8x512xf32>
    %770 = vector.extract_strided_slice %769 {offsets = [0, 0], sizes = [8, 128], strides = [1, 1]} : vector<8x512xf32> to vector<8x128xf32>
    %cst_341 = arith.constant 5.000000e-01 : f32
    %771 = vector.broadcast %cst_341 : f32 to vector<8x128xf32>
    %772 = arith.mulf %771, %770 : vector<8x128xf32>
    %773 = math.tanh %772 : vector<8x128xf32>
    %cst_342 = arith.constant 1.000000e+00 : f32
    %774 = vector.broadcast %cst_342 : f32 to vector<8x128xf32>
    %775 = arith.addf %773, %774 : vector<8x128xf32>
    %cst_343 = arith.constant 5.000000e-01 : f32
    %776 = vector.broadcast %cst_343 : f32 to vector<8x128xf32>
    %777 = arith.mulf %776, %775 : vector<8x128xf32>
    %778 = vector.extract_strided_slice %769 {offsets = [0, 128], sizes = [8, 128], strides = [1, 1]} : vector<8x512xf32> to vector<8x128xf32>
    %cst_344 = arith.constant 5.000000e-01 : f32
    %779 = vector.broadcast %cst_344 : f32 to vector<8x128xf32>
    %780 = arith.mulf %779, %778 : vector<8x128xf32>
    %781 = math.tanh %780 : vector<8x128xf32>
    %cst_345 = arith.constant 1.000000e+00 : f32
    %782 = vector.broadcast %cst_345 : f32 to vector<8x128xf32>
    %783 = arith.addf %781, %782 : vector<8x128xf32>
    %cst_346 = arith.constant 5.000000e-01 : f32
    %784 = vector.broadcast %cst_346 : f32 to vector<8x128xf32>
    %785 = arith.mulf %784, %783 : vector<8x128xf32>
    %786 = vector.extract_strided_slice %769 {offsets = [0, 256], sizes = [8, 128], strides = [1, 1]} : vector<8x512xf32> to vector<8x128xf32>
    %787 = math.tanh %786 : vector<8x128xf32>
    %788 = vector.extract_strided_slice %769 {offsets = [0, 384], sizes = [8, 128], strides = [1, 1]} : vector<8x512xf32> to vector<8x128xf32>
    %cst_347 = arith.constant 5.000000e-01 : f32
    %789 = vector.broadcast %cst_347 : f32 to vector<8x128xf32>
    %790 = arith.mulf %789, %788 : vector<8x128xf32>
    %791 = math.tanh %790 : vector<8x128xf32>
    %cst_348 = arith.constant 1.000000e+00 : f32
    %792 = vector.broadcast %cst_348 : f32 to vector<8x128xf32>
    %793 = arith.addf %791, %792 : vector<8x128xf32>
    %cst_349 = arith.constant 5.000000e-01 : f32
    %794 = vector.broadcast %cst_349 : f32 to vector<8x128xf32>
    %795 = arith.mulf %794, %793 : vector<8x128xf32>
    %796 = arith.mulf %785, %762 : vector<8x128xf32>
    %797 = arith.mulf %777, %787 : vector<8x128xf32>
    %798 = arith.addf %796, %797 : vector<8x128xf32>
    %799 = math.tanh %798 : vector<8x128xf32>
    %800 = arith.mulf %795, %799 : vector<8x128xf32>
    %c40_350 = arith.constant 40 : index
    %c0_351 = arith.constant 0 : index
    %801 = vector.load %arg13[%c40_350, %c0_351] : memref<64x512xf32, #tpu.memory_space<vmem>>, vector<8x512xf32>
    %802 = arith.truncf %800 : vector<8x128xf32> to vector<8x128xbf16>
    %c0_352 = arith.constant 0 : index
    %c0_353 = arith.constant 0 : index
    %803 = vector.load %arg8[%c0_352, %c0_353] : memref<128x512xbf16, #tpu.memory_space<vmem>>, vector<128x512xbf16>
    %cst_354 = arith.constant dense<0.000000e+00> : vector<8x512xf32>
    %804 = tpu.matmul %802, %803, %cst_354 {dimension_numbers = #tpu.dot_dimension_numbers<[1], [0], [0], [1], [0, 0, 1, 1], [], []>} : vector<8x128xbf16>, vector<128x512xbf16>, vector<8x512xf32> -> vector<8x512xf32>
    %805 = arith.addf %801, %804 : vector<8x512xf32>
    %806 = vector.extract_strided_slice %805 {offsets = [0, 0], sizes = [8, 128], strides = [1, 1]} : vector<8x512xf32> to vector<8x128xf32>
    %cst_355 = arith.constant 5.000000e-01 : f32
    %807 = vector.broadcast %cst_355 : f32 to vector<8x128xf32>
    %808 = arith.mulf %807, %806 : vector<8x128xf32>
    %809 = math.tanh %808 : vector<8x128xf32>
    %cst_356 = arith.constant 1.000000e+00 : f32
    %810 = vector.broadcast %cst_356 : f32 to vector<8x128xf32>
    %811 = arith.addf %809, %810 : vector<8x128xf32>
    %cst_357 = arith.constant 5.000000e-01 : f32
    %812 = vector.broadcast %cst_357 : f32 to vector<8x128xf32>
    %813 = arith.mulf %812, %811 : vector<8x128xf32>
    %814 = vector.extract_strided_slice %805 {offsets = [0, 128], sizes = [8, 128], strides = [1, 1]} : vector<8x512xf32> to vector<8x128xf32>
    %cst_358 = arith.constant 5.000000e-01 : f32
    %815 = vector.broadcast %cst_358 : f32 to vector<8x128xf32>
    %816 = arith.mulf %815, %814 : vector<8x128xf32>
    %817 = math.tanh %816 : vector<8x128xf32>
    %cst_359 = arith.constant 1.000000e+00 : f32
    %818 = vector.broadcast %cst_359 : f32 to vector<8x128xf32>
    %819 = arith.addf %817, %818 : vector<8x128xf32>
    %cst_360 = arith.constant 5.000000e-01 : f32
    %820 = vector.broadcast %cst_360 : f32 to vector<8x128xf32>
    %821 = arith.mulf %820, %819 : vector<8x128xf32>
    %822 = vector.extract_strided_slice %805 {offsets = [0, 256], sizes = [8, 128], strides = [1, 1]} : vector<8x512xf32> to vector<8x128xf32>
    %823 = math.tanh %822 : vector<8x128xf32>
    %824 = vector.extract_strided_slice %805 {offsets = [0, 384], sizes = [8, 128], strides = [1, 1]} : vector<8x512xf32> to vector<8x128xf32>
    %cst_361 = arith.constant 5.000000e-01 : f32
    %825 = vector.broadcast %cst_361 : f32 to vector<8x128xf32>
    %826 = arith.mulf %825, %824 : vector<8x128xf32>
    %827 = math.tanh %826 : vector<8x128xf32>
    %cst_362 = arith.constant 1.000000e+00 : f32
    %828 = vector.broadcast %cst_362 : f32 to vector<8x128xf32>
    %829 = arith.addf %827, %828 : vector<8x128xf32>
    %cst_363 = arith.constant 5.000000e-01 : f32
    %830 = vector.broadcast %cst_363 : f32 to vector<8x128xf32>
    %831 = arith.mulf %830, %829 : vector<8x128xf32>
    %832 = arith.mulf %821, %798 : vector<8x128xf32>
    %833 = arith.mulf %813, %823 : vector<8x128xf32>
    %834 = arith.addf %832, %833 : vector<8x128xf32>
    %835 = math.tanh %834 : vector<8x128xf32>
    %836 = arith.mulf %831, %835 : vector<8x128xf32>
    %c48_364 = arith.constant 48 : index
    %c0_365 = arith.constant 0 : index
    %837 = vector.load %arg13[%c48_364, %c0_365] : memref<64x512xf32, #tpu.memory_space<vmem>>, vector<8x512xf32>
    %838 = arith.truncf %836 : vector<8x128xf32> to vector<8x128xbf16>
    %c0_366 = arith.constant 0 : index
    %c0_367 = arith.constant 0 : index
    %839 = vector.load %arg8[%c0_366, %c0_367] : memref<128x512xbf16, #tpu.memory_space<vmem>>, vector<128x512xbf16>
    %cst_368 = arith.constant dense<0.000000e+00> : vector<8x512xf32>
    %840 = tpu.matmul %838, %839, %cst_368 {dimension_numbers = #tpu.dot_dimension_numbers<[1], [0], [0], [1], [0, 0, 1, 1], [], []>} : vector<8x128xbf16>, vector<128x512xbf16>, vector<8x512xf32> -> vector<8x512xf32>
    %841 = arith.addf %837, %840 : vector<8x512xf32>
    %842 = vector.extract_strided_slice %841 {offsets = [0, 0], sizes = [8, 128], strides = [1, 1]} : vector<8x512xf32> to vector<8x128xf32>
    %cst_369 = arith.constant 5.000000e-01 : f32
    %843 = vector.broadcast %cst_369 : f32 to vector<8x128xf32>
    %844 = arith.mulf %843, %842 : vector<8x128xf32>
    %845 = math.tanh %844 : vector<8x128xf32>
    %cst_370 = arith.constant 1.000000e+00 : f32
    %846 = vector.broadcast %cst_370 : f32 to vector<8x128xf32>
    %847 = arith.addf %845, %846 : vector<8x128xf32>
    %cst_371 = arith.constant 5.000000e-01 : f32
    %848 = vector.broadcast %cst_371 : f32 to vector<8x128xf32>
    %849 = arith.mulf %848, %847 : vector<8x128xf32>
    %850 = vector.extract_strided_slice %841 {offsets = [0, 128], sizes = [8, 128], strides = [1, 1]} : vector<8x512xf32> to vector<8x128xf32>
    %cst_372 = arith.constant 5.000000e-01 : f32
    %851 = vector.broadcast %cst_372 : f32 to vector<8x128xf32>
    %852 = arith.mulf %851, %850 : vector<8x128xf32>
    %853 = math.tanh %852 : vector<8x128xf32>
    %cst_373 = arith.constant 1.000000e+00 : f32
    %854 = vector.broadcast %cst_373 : f32 to vector<8x128xf32>
    %855 = arith.addf %853, %854 : vector<8x128xf32>
    %cst_374 = arith.constant 5.000000e-01 : f32
    %856 = vector.broadcast %cst_374 : f32 to vector<8x128xf32>
    %857 = arith.mulf %856, %855 : vector<8x128xf32>
    %858 = vector.extract_strided_slice %841 {offsets = [0, 256], sizes = [8, 128], strides = [1, 1]} : vector<8x512xf32> to vector<8x128xf32>
    %859 = math.tanh %858 : vector<8x128xf32>
    %860 = vector.extract_strided_slice %841 {offsets = [0, 384], sizes = [8, 128], strides = [1, 1]} : vector<8x512xf32> to vector<8x128xf32>
    %cst_375 = arith.constant 5.000000e-01 : f32
    %861 = vector.broadcast %cst_375 : f32 to vector<8x128xf32>
    %862 = arith.mulf %861, %860 : vector<8x128xf32>
    %863 = math.tanh %862 : vector<8x128xf32>
    %cst_376 = arith.constant 1.000000e+00 : f32
    %864 = vector.broadcast %cst_376 : f32 to vector<8x128xf32>
    %865 = arith.addf %863, %864 : vector<8x128xf32>
    %cst_377 = arith.constant 5.000000e-01 : f32
    %866 = vector.broadcast %cst_377 : f32 to vector<8x128xf32>
    %867 = arith.mulf %866, %865 : vector<8x128xf32>
    %868 = arith.mulf %857, %834 : vector<8x128xf32>
    %869 = arith.mulf %849, %859 : vector<8x128xf32>
    %870 = arith.addf %868, %869 : vector<8x128xf32>
    %871 = math.tanh %870 : vector<8x128xf32>
    %872 = arith.mulf %867, %871 : vector<8x128xf32>
    %c56_378 = arith.constant 56 : index
    %c0_379 = arith.constant 0 : index
    %873 = vector.load %arg13[%c56_378, %c0_379] : memref<64x512xf32, #tpu.memory_space<vmem>>, vector<8x512xf32>
    %874 = arith.truncf %872 : vector<8x128xf32> to vector<8x128xbf16>
    %c0_380 = arith.constant 0 : index
    %c0_381 = arith.constant 0 : index
    %875 = vector.load %arg8[%c0_380, %c0_381] : memref<128x512xbf16, #tpu.memory_space<vmem>>, vector<128x512xbf16>
    %cst_382 = arith.constant dense<0.000000e+00> : vector<8x512xf32>
    %876 = tpu.matmul %874, %875, %cst_382 {dimension_numbers = #tpu.dot_dimension_numbers<[1], [0], [0], [1], [0, 0, 1, 1], [], []>} : vector<8x128xbf16>, vector<128x512xbf16>, vector<8x512xf32> -> vector<8x512xf32>
    %877 = arith.addf %873, %876 : vector<8x512xf32>
    %878 = vector.extract_strided_slice %877 {offsets = [0, 0], sizes = [8, 128], strides = [1, 1]} : vector<8x512xf32> to vector<8x128xf32>
    %cst_383 = arith.constant 5.000000e-01 : f32
    %879 = vector.broadcast %cst_383 : f32 to vector<8x128xf32>
    %880 = arith.mulf %879, %878 : vector<8x128xf32>
    %881 = math.tanh %880 : vector<8x128xf32>
    %cst_384 = arith.constant 1.000000e+00 : f32
    %882 = vector.broadcast %cst_384 : f32 to vector<8x128xf32>
    %883 = arith.addf %881, %882 : vector<8x128xf32>
    %cst_385 = arith.constant 5.000000e-01 : f32
    %884 = vector.broadcast %cst_385 : f32 to vector<8x128xf32>
    %885 = arith.mulf %884, %883 : vector<8x128xf32>
    %886 = vector.extract_strided_slice %877 {offsets = [0, 128], sizes = [8, 128], strides = [1, 1]} : vector<8x512xf32> to vector<8x128xf32>
    %cst_386 = arith.constant 5.000000e-01 : f32
    %887 = vector.broadcast %cst_386 : f32 to vector<8x128xf32>
    %888 = arith.mulf %887, %886 : vector<8x128xf32>
    %889 = math.tanh %888 : vector<8x128xf32>
    %cst_387 = arith.constant 1.000000e+00 : f32
    %890 = vector.broadcast %cst_387 : f32 to vector<8x128xf32>
    %891 = arith.addf %889, %890 : vector<8x128xf32>
    %cst_388 = arith.constant 5.000000e-01 : f32
    %892 = vector.broadcast %cst_388 : f32 to vector<8x128xf32>
    %893 = arith.mulf %892, %891 : vector<8x128xf32>
    %894 = vector.extract_strided_slice %877 {offsets = [0, 256], sizes = [8, 128], strides = [1, 1]} : vector<8x512xf32> to vector<8x128xf32>
    %895 = math.tanh %894 : vector<8x128xf32>
    %896 = vector.extract_strided_slice %877 {offsets = [0, 384], sizes = [8, 128], strides = [1, 1]} : vector<8x512xf32> to vector<8x128xf32>
    %cst_389 = arith.constant 5.000000e-01 : f32
    %897 = vector.broadcast %cst_389 : f32 to vector<8x128xf32>
    %898 = arith.mulf %897, %896 : vector<8x128xf32>
    %899 = math.tanh %898 : vector<8x128xf32>
    %cst_390 = arith.constant 1.000000e+00 : f32
    %900 = vector.broadcast %cst_390 : f32 to vector<8x128xf32>
    %901 = arith.addf %899, %900 : vector<8x128xf32>
    %cst_391 = arith.constant 5.000000e-01 : f32
    %902 = vector.broadcast %cst_391 : f32 to vector<8x128xf32>
    %903 = arith.mulf %902, %901 : vector<8x128xf32>
    %904 = arith.mulf %893, %870 : vector<8x128xf32>
    %905 = arith.mulf %885, %895 : vector<8x128xf32>
    %906 = arith.addf %904, %905 : vector<8x128xf32>
    %907 = math.tanh %906 : vector<8x128xf32>
    %908 = arith.mulf %903, %907 : vector<8x128xf32>
    %909 = arith.truncf %908 : vector<8x128xf32> to vector<8x128xbf16>
    %c0_392 = arith.constant 0 : index
    %c0_393 = arith.constant 0 : index
    %910 = vector.load %arg10[%c0_392, %c0_393] : memref<128x128xbf16, #tpu.memory_space<vmem>>, vector<128x128xbf16>
    %cst_394 = arith.constant dense<0.000000e+00> : vector<8x128xf32>
    %911 = tpu.matmul %909, %910, %cst_394 {dimension_numbers = #tpu.dot_dimension_numbers<[1], [0], [0], [1], [0, 0, 1, 1], [], []>} : vector<8x128xbf16>, vector<128x128xbf16>, vector<8x128xf32> -> vector<8x128xf32>
    %c0_395 = arith.constant 0 : index
    %c0_396 = arith.constant 0 : index
    %912 = vector.load %arg11[%c0_395, %c0_396] : memref<1x128xf32, #tpu.memory_space<vmem>>, vector<1x128xf32>
    %913 = vector.broadcast %912 : vector<1x128xf32> to vector<8x128xf32>
    %914 = arith.addf %911, %913 : vector<8x128xf32>
    %cst_397 = arith.constant 0.000000e+00 : f32
    %915 = vector.broadcast %cst_397 : f32 to vector<8x128xf32>
    %916 = arith.maximumf %914, %915 : vector<8x128xf32>
    %917 = arith.mulf %916, %916 : vector<8x128xf32>
    %cst_398 = arith.constant dense<0.000000e+00> : vector<8xf32>
    %918 = vector.multi_reduction <add>, %917, %cst_398 [1] : vector<8x128xf32> to vector<8xf32>
    %919 = vector.shape_cast %918 : vector<8xf32> to vector<8x1xf32>
    %920 = math.sqrt %919 : vector<8x1xf32>
    %cst_399 = arith.constant 9.99999974E-6 : f32
    %921 = vector.broadcast %cst_399 : f32 to vector<8x1xf32>
    %922 = arith.addf %920, %921 : vector<8x1xf32>
    %923 = vector.broadcast %922 : vector<8x1xf32> to vector<8x128xf32>
    %924 = arith.divf %916, %923 : vector<8x128xf32>
    %c0_400 = arith.constant 0 : index
    %c0_401 = arith.constant 0 : index
    %925 = vector.load %arg12[%c0_400, %c0_401] : memref<8x128xf32, #tpu.memory_space<vmem>>, vector<8x128xf32>
    tpu.vector_store %arg12[%c0_400, %c0_401], %924 {strides = array<i32>} : memref<8x128xf32, #tpu.memory_space<vmem>>, vector<8x128xf32>,
    return
  }
}

</mosaic_0001>

<bundles_post_ra>
// kernel: predefined_embedder_forward.1
= control target key start
LH: loop header
LB: loop body
LE: loop exit
PB: predicated region body
PF: predicated region fallthrough
CT: control target
= control target key end

     0   :  { %v11400_v1 = vmov 0.0   ;;  %vm8641_vm0 = vmmov 0   ;;  %s11387_s1 = inlined_call_operand.vmem [shape: bf16[128,512], index: 1, kind: input, shape index: {}]   ;;  %s11388_s2 = inlined_call_operand.vmem [shape: bf16[128,512], index: 2, kind: input, shape index: {}]   ;;  %s11389_s0 = inlined_call_operand.vmem [shape: f32[64,128], index: 0, kind: input, shape index: {}]   ;;  %s11390_s3 = inlined_call_operand.vmem [shape: f32[1,512], index: 3, kind: input, shape index: {}]   ;;  %s11391_s4 = inlined_call_operand.vmem [shape: bf16[128,512], index: 4, kind: input, shape index: {}]   ;;  %s11392_s5 = inlined_call_operand.vmem [shape: bf16[128,512], index: 5, kind: input, shape index: {}]   ;;  %s11393_s6 = inlined_call_operand.vmem [shape: f32[1,512], index: 6, kind: input, shape index: {}]   ;;  %s11394_s7 = inlined_call_operand.vmem [shape: bf16[128,512], index: 7, kind: input, shape index: {}]   ;;  %s11395_s8 = inlined_call_operand.vmem [shape: bf16[128,512], index: 8, kind: input, shape index: {}]   ;;  %s11396_s9 = inlined_call_operand.vmem [shape: f32[1,512], index: 9, kind: input, shape index: {}]   ;;  %s11397_s10 = inlined_call_operand.vmem [shape: bf16[128,128], index: 10, kind: input, shape index: {}]   ;;  %s11398_s11 = inlined_call_operand.vmem [shape: f32[1,128], index: 11, kind: input, shape index: {}]   ;;  %s11399_s12 = inlined_call_operand.vmem [shape: f32[8,128], index: 12, kind: output, shape index: {}]  }
   0x1   :  { %v7971_v0 = vld [vmem:[%s11387_s1 + $0x4] ss:$16 sps:$4 sm:$0xff]   ;;  %296 = vmatprep.mubr.f32.mxu0 %v11400_v1  ;;  %377 = vmatprep.mubr.f32.mxu1 %v11400_v1  ;;  %v7973_v2 = vld [vmem:[%s11387_s1 + $0xc] ss:$16 sps:$4 sm:$0xff]   ;;  %v7975_v3 = vld [vmem:[%s11387_s1] ss:$16 sps:$4 sm:$0xff]  }
   0x2   :  { %264 = vmatprep.subr.bf16.mxu0 %v7971_v0  ;;  %v7976_v4 = vld [vmem:[%s11387_s1 + $0x8] ss:$16 sps:$4 sm:$0xff]   ;;  %345 = vmatprep.subr.bf16.mxu1 %v7973_v2  ;;  %v7977_v5 = vld [vmem:[%s11387_s1 + $0x24] ss:$16 sps:$4 sm:$0xff]   ;;  %v7979_v6 = vld [vmem:[%s11387_s1 + $0x2c] ss:$16 sps:$4 sm:$0xff]  }
   0x3   :  { %265 = vmatpush1.bf16.msra.mxu0 %v7975_v3  ;;  %346 = vmatpush1.bf16.msra.mxu1 %v7976_v4  ;;  %v7981_v7 = vld [vmem:[%s11387_s1 + $0x20] ss:$16 sps:$4 sm:$0xff]   ;;  %v7982_v8 = vld [vmem:[%s11387_s1 + $0x28] ss:$16 sps:$4 sm:$0xff]   ;;  %v7983_v9 = vld [vmem:[%s11387_s1 + $0x44] ss:$16 sps:$4 sm:$0xff]  }
   0x4   :  { %266 = vmatprep.subr.bf16.mxu0 %v7977_v5  ;;  %347 = vmatprep.subr.bf16.mxu1 %v7979_v6  ;;  %v7985_v10 = vld [vmem:[%s11387_s1 + $0x4c] ss:$16 sps:$4 sm:$0xff]   ;;  %v7987_v11 = vld [vmem:[%s11387_s1 + $0x40] ss:$16 sps:$4 sm:$0xff]   ;;  %v7988_v12 = vld [vmem:[%s11387_s1 + $0x48] ss:$16 sps:$4 sm:$0xff]  }
   0x5   :  { %v7989_v13 = vld [vmem:[%s11387_s1 + $0x64] ss:$16 sps:$4 sm:$0xff]   ;;  %v7991_v14 = vld [vmem:[%s11387_s1 + $0x6c] ss:$16 sps:$4 sm:$0xff]   ;;  %v7993_v15 = vld [vmem:[%s11387_s1 + $0x60] ss:$16 sps:$4 sm:$0xff]  }
   0x6   :  { %v7994_v16 = vld [vmem:[%s11387_s1 + $0x68] ss:$16 sps:$4 sm:$0xff]   ;;  %v7995_v17 = vld [vmem:[%s11387_s1 + $0x84] ss:$16 sps:$4 sm:$0xff]   ;;  %v7997_v18 = vld [vmem:[%s11387_s1 + $0x8c] ss:$16 sps:$4 sm:$0xff]  }
   0x7   :  { %267 = vmatpush1.bf16.msra.mxu0 %v7981_v7  ;;  %348 = vmatpush1.bf16.msra.mxu1 %v7982_v8  ;;  %v7999_v19 = vld [vmem:[%s11387_s1 + $0x80] ss:$16 sps:$4 sm:$0xff]   ;;  %v8000_v20 = vld [vmem:[%s11387_s1 + $0x88] ss:$16 sps:$4 sm:$0xff]   ;;  %v8001_v21 = vld [vmem:[%s11387_s1 + $0xa4] ss:$16 sps:$4 sm:$0xff]  }
   0x8   :  { %268 = vmatprep.subr.bf16.mxu0 %v7983_v9  ;;  %349 = vmatprep.subr.bf16.mxu1 %v7985_v10  ;;  %v8003_v22 = vld [vmem:[%s11387_s1 + $0xac] ss:$16 sps:$4 sm:$0xff]   ;;  %v8005_v23 = vld [vmem:[%s11387_s1 + $0xa0] ss:$16 sps:$4 sm:$0xff]   ;;  %v8006_v24 = vld [vmem:[%s11387_s1 + $0xa8] ss:$16 sps:$4 sm:$0xff]  }
   0x9   :  { %v8007_v25 = vld [vmem:[%s11387_s1 + $0xc4] ss:$16 sps:$4 sm:$0xff]   ;;  %v8009_v26 = vld [vmem:[%s11387_s1 + $0xcc] ss:$16 sps:$4 sm:$0xff]   ;;  %v8011_v27 = vld [vmem:[%s11387_s1 + $0xc0] ss:$16 sps:$4 sm:$0xff]  }
   0xa   :  { %v8012_v28 = vld [vmem:[%s11387_s1 + $0xc8] ss:$16 sps:$4 sm:$0xff]   ;;  %v8013_v29 = vld [vmem:[%s11387_s1 + $0xe4] ss:$16 sps:$4 sm:$0xff]   ;;  %v8015_v30 = vld [vmem:[%s11387_s1 + $0xec] ss:$16 sps:$4 sm:$0xff]  }
   0xb   :  { %269 = vmatpush1.bf16.msra.mxu0 %v7987_v11  ;;  %350 = vmatpush1.bf16.msra.mxu1 %v7988_v12  ;;  %v8017_v31 = vld [vmem:[%s11387_s1 + $0xe0] ss:$16 sps:$4 sm:$0xff]   ;;  %v8018_v32 = vld [vmem:[%s11387_s1 + $0xe8] ss:$16 sps:$4 sm:$0xff]   ;;  %v8808_v33 = vld [vmem:[%s11388_s2 + $0x4] ss:$16 sps:$4 sm:$0xff]   ;;  %v84_v11 = vlaneseq }
   0xc   :  { %270 = vmatprep.subr.bf16.mxu0 %v7989_v13  ;;  %351 = vmatprep.subr.bf16.mxu1 %v7991_v14  ;;  %v8813_v34 = vld [vmem:[%s11388_s2 + $0xc] ss:$16 sps:$4 sm:$0xff]   ;;  %v43_v35 = vld [vmem:[%s11389_s0] sm:$0xff]  ;;  %v8826_v37 = vld [vmem:[%s11388_s2 + $0x8] ss:$16 sps:$4 sm:$0xff]   ;;  %v11402_v10 = vmov 0  }
   0xd   :  { %v8821_v36 = vld [vmem:[%s11388_s2] ss:$16 sps:$4 sm:$0xff]   ;;  %v8833_v38 = vld [vmem:[%s11388_s2 + $0x24] ss:$16 sps:$4 sm:$0xff]   ;;  %v8838_v39 = vld [vmem:[%s11388_s2 + $0x2c] ss:$16 sps:$4 sm:$0xff]  }
   0xe   :  { %v44_v40 = vld [vmem:[%s11389_s0 + $0x8] sm:$0xff]  ;;  %v8848_v41 = vld [vmem:[%s11388_s2 + $0x20] ss:$16 sps:$4 sm:$0xff]   ;;  %v8860_v43 = vld [vmem:[%s11388_s2 + $0x44] ss:$16 sps:$4 sm:$0xff]   ;;  %v85_v12 = vshrl.u32 %v84_v11, 7 }
   0xf   :  { %271 = vmatpush1.bf16.msra.mxu0 %v7993_v15  ;;  %352 = vmatpush1.bf16.msra.mxu1 %v7994_v16  ;;  %v8853_v42 = vld [vmem:[%s11388_s2 + $0x28] ss:$16 sps:$4 sm:$0xff]   ;;  %v8867_v44 = vld [vmem:[%s11388_s2 + $0x4c] ss:$16 sps:$4 sm:$0xff]   ;;  %v45_v45 = vld [vmem:[%s11389_s0 + $0x10] sm:$0xff] }
  0x10   :  { %272 = vmatprep.subr.bf16.mxu0 %v7995_v17  ;;  %353 = vmatprep.subr.bf16.mxu1 %v7997_v18  ;;  %v8877_v46 = vld [vmem:[%s11388_s2 + $0x40] ss:$16 sps:$4 sm:$0xff]   ;;  %v8882_v47 = vld [vmem:[%s11388_s2 + $0x48] ss:$16 sps:$4 sm:$0xff]   ;;  %v8891_v48 = vld [vmem:[%s11388_s2 + $0x64] ss:$16 sps:$4 sm:$0xff]  }
  0x11   :  { %v8896_v49 = vld [vmem:[%s11388_s2 + $0x6c] ss:$16 sps:$4 sm:$0xff]   ;;  %v8904_v51 = vld [vmem:[%s11388_s2 + $0x60] ss:$16 sps:$4 sm:$0xff]   ;;  %v8911_v52 = vld [vmem:[%s11388_s2 + $0x68] ss:$16 sps:$4 sm:$0xff]  }
  0x12   :  { %v46_v50 = vld [vmem:[%s11389_s0 + $0x18] sm:$0xff]  ;;  %v8918_v53 = vld [vmem:[%s11388_s2 + $0x84] ss:$16 sps:$4 sm:$0xff]   ;;  %v8933_v56 = vld [vmem:[%s11388_s2 + $0x80] ss:$16 sps:$4 sm:$0xff]   ;;  %v9075_v13 = vsub.s32 0, %v85_v12 }
  0x13   :  { %273 = vmatpush1.bf16.msra.mxu0 %v7999_v19  ;;  %354 = vmatpush1.bf16.msra.mxu1 %v8000_v20  ;;  %v8923_v54 = vld [vmem:[%s11388_s2 + $0x8c] ss:$16 sps:$4 sm:$0xff]   ;;  %v47_v55 = vld [vmem:[%s11389_s0 + $0x20] sm:$0xff]  ;;  %v8938_v57 = vld [vmem:[%s11388_s2 + $0x88] ss:$16 sps:$4 sm:$0xff]   ;;  %v9077_v14 = vsub.s32 2, %v85_v12 }
  0x14   :  { %274 = vmatprep.subr.bf16.mxu0 %v8001_v21  ;;  %355 = vmatprep.subr.bf16.mxu1 %v8003_v22  ;;  %v8945_v58 = vld [vmem:[%s11388_s2 + $0xa4] ss:$16 sps:$4 sm:$0xff]   ;;  %v8950_v59 = vld [vmem:[%s11388_s2 + $0xac] ss:$16 sps:$4 sm:$0xff]   ;;  %v8962_v61 = vld [vmem:[%s11388_s2 + $0xa0] ss:$16 sps:$4 sm:$0xff]  }
  0x15   :  { %v48_v60 = vld [vmem:[%s11389_s0 + $0x28] sm:$0xff]  ;;  %v8974_v63 = vld [vmem:[%s11388_s2 + $0xc4] ss:$16 sps:$4 sm:$0xff]   ;;  %v8993_v3 = vld [vmem:[%s11388_s2 + $0xc0] ss:$16 sps:$4 sm:$0xff]   ;;  %11413 = vst [vmem:[#allocation4_spill] sm:$0xff] %v9075_v13 }
  0x16   :  { %v8967_v62 = vld [vmem:[%s11388_s2 + $0xa8] ss:$16 sps:$4 sm:$0xff]   ;;  %v8979_v0 = vld [vmem:[%s11388_s2 + $0xcc] ss:$16 sps:$4 sm:$0xff]   ;;  %v49_v2 = vld [vmem:[%s11389_s0 + $0x30] sm:$0xff]  ;;  %11414 = vst [vmem:[#allocation5_spill] sm:$0xff] %v9077_v14 }
  0x17   :  { %275 = vmatpush1.bf16.msra.mxu0 %v8005_v23  ;;  %356 = vmatpush1.bf16.msra.mxu1 %v8006_v24  ;;  %v8998_v4 = vld [vmem:[%s11388_s2 + $0xc8] ss:$16 sps:$4 sm:$0xff]   ;;  %v9007_v5 = vld [vmem:[%s11388_s2 + $0xe4] ss:$16 sps:$4 sm:$0xff]   ;;  %v9012_v6 = vld [vmem:[%s11388_s2 + $0xec] ss:$16 sps:$4 sm:$0xff]  }
  0x18   :  { %276 = vmatprep.subr.bf16.mxu0 %v8007_v25  ;;  %357 = vmatprep.subr.bf16.mxu1 %v8009_v26  ;;  %v50_v7 = vld [vmem:[%s11389_s0 + $0x38] sm:$0xff]  ;;  %v9022_v8 = vld [vmem:[%s11388_s2 + $0xe0] ss:$16 sps:$4 sm:$0xff]   ;;  %v9084_v17 = vsub.s32 1, %v85_v12  ;;  %v9088_v19 = vsub.s32 3, %v85_v12 }
  0x19   :  { %v9027_v9 = vld [vmem:[%s11388_s2 + $0xe8] ss:$16 sps:$4 sm:$0xff]   ;;  %v42_v15 = vld [vmem:[%s11390_s3] sm:$0xf] }
  0x1a   :  { %11415 = vst [vmem:[#allocation6_spill] sm:$0xff] %v9084_v17  ;;  %11416 = vst [vmem:[#allocation7_spill] sm:$0xff] %v9088_v19  ;;  %v87_v22 = vrot.slane %v42_v15, %v9075_v13  ;;  %v95_v23 = vrot.slane %v42_v15, %v9077_v14  ;;  %v91_v24 = vrot.slane %v42_v15, %v9084_v17 }
  0x1b   :  { %277 = vmatpush1.bf16.msra.mxu0 %v8011_v27  ;;  %358 = vmatpush1.bf16.msra.mxu1 %v8012_v28  ;;  %v99_v26 = vrot.slane %v42_v15, %v9088_v19 }
  0x1c   :  { %278 = vmatprep.subr.bf16.mxu0 %v8013_v29  ;;  %359 = vmatprep.subr.bf16.mxu1 %v8015_v30 }
  0x1f   :  { %279 = vmatpush1.bf16.msra.mxu0 %v8017_v31  ;;  %360 = vmatpush1.bf16.msra.mxu1 %v8018_v32 }
  0x20   :  { %654 = vmatprep.subr.bf16.mxu0 %v8808_v33  ;;  %695 = vmatprep.subr.bf16.mxu1 %v8813_v34 }
  0x22   :  { %297 = vmatmul.mubr.f32.vlgmr.msra.gmra.mrb[0].mxu0 %v43_v35  ;;  %378 = vmatmul.mubr.f32.vlgmr.msra.gmra.mrb[0].mxu1 %v43_v35 }
  0x23   :  { %655 = vmatpush1.bf16.msra.mxu0 %v8821_v36  ;;  %696 = vmatpush1.bf16.msra.mxu1 %v8826_v37 }
  0x24   :  { %302 = vmatprep.mubr.f32.mxu0 %v11400_v1  ;;  %383 = vmatprep.mubr.f32.mxu1 %v11400_v1 }
  0x25   :  { %656 = vmatprep.subr.bf16.mxu0 %v8833_v38  ;;  %697 = vmatprep.subr.bf16.mxu1 %v8838_v39 }
  0x26   :  { %303 = vmatmul.mubr.f32.gmra.mrb[2].mxu0 %v44_v40  ;;  %384 = vmatmul.mubr.f32.gmra.mrb[2].mxu1 %v44_v40 }
  0x27   :  { %657 = vmatpush1.bf16.msra.mxu0 %v8848_v41  ;;  %698 = vmatpush1.bf16.msra.mxu1 %v8853_v42 }
  0x28   :  { %308 = vmatprep.mubr.f32.mxu0 %v11400_v1  ;;  %389 = vmatprep.mubr.f32.mxu1 %v11400_v1 }
  0x29   :  { %658 = vmatprep.subr.bf16.mxu0 %v8860_v43  ;;  %699 = vmatprep.subr.bf16.mxu1 %v8867_v44 }
  0x2a   :  { %309 = vmatmul.mubr.f32.gmra.mrb[4].mxu0 %v45_v45  ;;  %390 = vmatmul.mubr.f32.gmra.mrb[4].mxu1 %v45_v45 }
  0x2b   :  { %659 = vmatpush1.bf16.msra.mxu0 %v8877_v46  ;;  %700 = vmatpush1.bf16.msra.mxu1 %v8882_v47 }
  0x2c   :  { %314 = vmatprep.mubr.f32.mxu0 %v11400_v1  ;;  %395 = vmatprep.mubr.f32.mxu1 %v11400_v1 }
  0x2d   :  { %660 = vmatprep.subr.bf16.mxu0 %v8891_v48  ;;  %701 = vmatprep.subr.bf16.mxu1 %v8896_v49 }
  0x2e   :  { %315 = vmatmul.mubr.f32.gmra.mrb[6].mxu0 %v46_v50  ;;  %396 = vmatmul.mubr.f32.gmra.mrb[6].mxu1 %v46_v50 }
  0x2f   :  { %661 = vmatpush1.bf16.msra.mxu0 %v8904_v51  ;;  %702 = vmatpush1.bf16.msra.mxu1 %v8911_v52 }
  0x30   :  { %320 = vmatprep.mubr.f32.mxu0 %v11400_v1  ;;  %401 = vmatprep.mubr.f32.mxu1 %v11400_v1 }
  0x31   :  { %662 = vmatprep.subr.bf16.mxu0 %v8918_v53  ;;  %703 = vmatprep.subr.bf16.mxu1 %v8923_v54 }
  0x32   :  { %321 = vmatmul.mubr.f32.gmra.mrb[8].mxu0 %v47_v55  ;;  %402 = vmatmul.mubr.f32.gmra.mrb[8].mxu1 %v47_v55 }
  0x33   :  { %663 = vmatpush1.bf16.msra.mxu0 %v8933_v56  ;;  %704 = vmatpush1.bf16.msra.mxu1 %v8938_v57 }
  0x34   :  { %326 = vmatprep.mubr.f32.mxu0 %v11400_v1  ;;  %407 = vmatprep.mubr.f32.mxu1 %v11400_v1 }
  0x35   :  { %664 = vmatprep.subr.bf16.mxu0 %v8945_v58  ;;  %705 = vmatprep.subr.bf16.mxu1 %v8950_v59 }
  0x36   :  { %327 = vmatmul.mubr.f32.gmra.mrb[10].mxu0 %v48_v60  ;;  %408 = vmatmul.mubr.f32.gmra.mrb[10].mxu1 %v48_v60 }
  0x37   :  { %665 = vmatpush1.bf16.msra.mxu0 %v8962_v61  ;;  %706 = vmatpush1.bf16.msra.mxu1 %v8967_v62 }
  0x38   :  { %332 = vmatprep.mubr.f32.mxu0 %v11400_v1  ;;  %413 = vmatprep.mubr.f32.mxu1 %v11400_v1 }
  0x39   :  { %666 = vmatprep.subr.bf16.mxu0 %v8974_v63  ;;  %707 = vmatprep.subr.bf16.mxu1 %v8979_v0 }
  0x3a   :  { %333 = vmatmul.mubr.f32.gmra.mrb[12].mxu0 %v49_v2  ;;  %414 = vmatmul.mubr.f32.gmra.mrb[12].mxu1 %v49_v2 }
  0x3b   :  { %667 = vmatpush1.bf16.msra.mxu0 %v8993_v3  ;;  %708 = vmatpush1.bf16.msra.mxu1 %v8998_v4 }
  0x3c   :  { %338 = vmatprep.mubr.f32.mxu0 %v11400_v1  ;;  %419 = vmatprep.mubr.f32.mxu1 %v11400_v1 }
  0x3d   :  { %668 = vmatprep.subr.bf16.mxu0 %v9007_v5  ;;  %709 = vmatprep.subr.bf16.mxu1 %v9012_v6 }
  0x3e   :  { %339 = vmatmul.mubr.f32.gmra.mrb[14].mxu0 %v50_v7  ;;  %420 = vmatmul.mubr.f32.gmra.mrb[14].mxu1 %v50_v7 }
  0x3f   :  { %669 = vmatpush1.bf16.msra.mxu0 %v9022_v8  ;;  %710 = vmatpush1.bf16.msra.mxu1 %v9027_v9 }
  0x40   :  { %686 = vmatprep.mubr.bf16.mxu0 %v11402_v10  ;;  %727 = vmatprep.mubr.bf16.mxu1 %v11402_v10 }
  0x41   :  { %956 = vmatprep.subr.bf16.mxu0 %v8808_v33  ;;  %997 = vmatprep.subr.bf16.mxu1 %v8813_v34 }
  0x42   :  { %687 = vmatmul.mubr.bf16.vlgmr.msra.gmra.mrb[16].mxu0 %v11402_v10  ;;  %728 = vmatmul.mubr.bf16.vlgmr.msra.gmra.mrb[16].mxu1 %v11402_v10 }
  0x43   :  { %957 = vmatpush1.bf16.msra.mxu0 %v8821_v36  ;;  %998 = vmatpush1.bf16.msra.mxu1 %v8826_v37 }
  0x44   :  { %958 = vmatprep.subr.bf16.mxu0 %v8833_v38  ;;  %999 = vmatprep.subr.bf16.mxu1 %v8838_v39 }
  0x45   :  { %988 = vmatprep.mubr.bf16.mxu0 %v11402_v10  ;;  %1029 = vmatprep.mubr.bf16.mxu1 %v11402_v10 }
  0x47   :  { %959 = vmatpush1.bf16.msra.mxu0 %v8848_v41  ;;  %1000 = vmatpush1.bf16.msra.mxu1 %v8853_v42 }
  0x48   :  { %960 = vmatprep.subr.bf16.mxu0 %v8860_v43  ;;  %1001 = vmatprep.subr.bf16.mxu1 %v8867_v44 }
  0x4b   :  { %961 = vmatpush1.bf16.msra.mxu0 %v8877_v46  ;;  %1002 = vmatpush1.bf16.msra.mxu1 %v8882_v47 }
  0x4c   :  { %962 = vmatprep.subr.bf16.mxu0 %v8891_v48  ;;  %1003 = vmatprep.subr.bf16.mxu1 %v8896_v49 }
  0x4f   :  { %963 = vmatpush1.bf16.msra.mxu0 %v8904_v51  ;;  %1004 = vmatpush1.bf16.msra.mxu1 %v8911_v52 }
  0x50   :  { %964 = vmatprep.subr.bf16.mxu0 %v8918_v53  ;;  %1005 = vmatprep.subr.bf16.mxu1 %v8923_v54 }
  0x53   :  { %965 = vmatpush1.bf16.msra.mxu0 %v8933_v56  ;;  %1006 = vmatpush1.bf16.msra.mxu1 %v8938_v57 }
  0x54   :  { %966 = vmatprep.subr.bf16.mxu0 %v8945_v58  ;;  %1007 = vmatprep.subr.bf16.mxu1 %v8950_v59 }
  0x57   :  { %967 = vmatpush1.bf16.msra.mxu0 %v8962_v61  ;;  %1008 = vmatpush1.bf16.msra.mxu1 %v8967_v62 }
  0x58   :  { %968 = vmatprep.subr.bf16.mxu0 %v8974_v63  ;;  %1009 = vmatprep.subr.bf16.mxu1 %v8979_v0 }
  0x5b   :  { %969 = vmatpush1.bf16.msra.mxu0 %v8993_v3  ;;  %1010 = vmatpush1.bf16.msra.mxu1 %v8998_v4 }
  0x5c   :  { %970 = vmatprep.subr.bf16.mxu0 %v9007_v5  ;;  %1011 = vmatprep.subr.bf16.mxu1 %v9012_v6 }
  0x5f   :  { %971 = vmatpush1.bf16.msra.mxu0 %v9022_v8  ;;  %1012 = vmatpush1.bf16.msra.mxu1 %v9027_v9 }
  0x60   :  { %1258 = vmatprep.subr.bf16.mxu0 %v8808_v33  ;;  %1299 = vmatprep.subr.bf16.mxu1 %v8813_v34 }
  0xf5   :  { %v9082_v16 = vpop.f32.mrb[0].mxu0  ;;  %v9086_v18 = vpop.f32.mrb[0].mxu1 }
  0xf6   :  { %v9090_v20 = vpop.f32.mrb[1].mxu0  ;;  %v9092_v21 = vpop.f32.mrb[1].mxu1 }
  0xf9   :  { %v304_v25 = vpop.f32.mrb[2].mxu0  ;;  %v385_v27 = vpop.f32.mrb[2].mxu1 }
  0xfa   :  { %v9098_v28 = vadd.f32 %v304_v25, %v87_v22  ;;  %v306_v29 = vpop.f32.mrb[3].mxu0  ;;  %v9100_v30 = vadd.f32 %v385_v27, %v95_v23  ;;  %v387_v31 = vpop.f32.mrb[3].mxu1 }
  0xfb   :  { %v9102_v32 = vadd.f32 %v306_v29, %v91_v24  ;;  %v9104_v35 = vadd.f32 %v387_v31, %v99_v26 }
  0xfd   :  { %v310_v40 = vpop.f32.mrb[4].mxu0  ;;  %v391_v45 = vpop.f32.mrb[4].mxu1 }
  0xfe   :  { %v9106_v50 = vadd.f32 %v310_v40, %v87_v22  ;;  %v312_v55 = vpop.f32.mrb[5].mxu0  ;;  %v9108_v60 = vadd.f32 %v391_v45, %v95_v23  ;;  %v393_v2 = vpop.f32.mrb[5].mxu1 }
  0xff   :  { %v9110_v7 = vadd.f32 %v312_v55, %v91_v24  ;;  %v9112_v11 = vadd.f32 %v393_v2, %v99_v26 }
 0x101   :  { %11417 = vst [vmem:[#allocation8_spill] sm:$0xff] %v9112_v11  ;;  %v316_v12 = vpop.f32.mrb[6].mxu0  ;;  %v397_v15 = vpop.f32.mrb[6].mxu1 }
 0x102   :  { %v9114_v25 = vadd.f32 %v316_v12, %v87_v22  ;;  %v318_v27 = vpop.f32.mrb[7].mxu0  ;;  %v9116_v29 = vadd.f32 %v397_v15, %v95_v23  ;;  %v399_v31 = vpop.f32.mrb[7].mxu1 }
 0x103   :  { %v9118_v1 = vadd.f32 %v318_v27, %v91_v24  ;;  %v9120_v40 = vadd.f32 %v399_v31, %v99_v26 }
 0x104   :  { %11418 = vst [vmem:[#allocation9_spill] sm:$0xff] %v9114_v25  ;;  %11419 = vst [vmem:[#allocation10_spill] sm:$0xff] %v9116_v29 }
 0x105   :  { %11420 = vst [vmem:[#allocation11_spill] sm:$0xff] %v9118_v1  ;;  %11421 = vst [vmem:[#allocation12_spill] sm:$0xff] %v9120_v40  ;;  %v322_v10 = vpop.f32.mrb[8].mxu0  ;;  %v403_v45 = vpop.f32.mrb[8].mxu1 }
 0x106   :  { %v9122_v19 = vadd.f32 %v322_v10, %v87_v22  ;;  %v324_v55 = vpop.f32.mrb[9].mxu0  ;;  %v9124_v17 = vadd.f32 %v403_v45, %v95_v23  ;;  %v405_v2 = vpop.f32.mrb[9].mxu1 }
 0x107   :  { %v9126_v14 = vadd.f32 %v324_v55, %v91_v24  ;;  %v9128_v12 = vadd.f32 %v405_v2, %v99_v26 }
 0x108   :  { %11422 = vst [vmem:[#allocation13_spill] sm:$0xff] %v9122_v19  ;;  %11423 = vst [vmem:[#allocation14_spill] sm:$0xff] %v9124_v17 }
 0x109   :  { %11424 = vst [vmem:[#allocation15_spill] sm:$0xff] %v9126_v14  ;;  %11425 = vst [vmem:[#allocation16_spill] sm:$0xff] %v9128_v12  ;;  %v328_v13 = vpop.f32.mrb[10].mxu0  ;;  %v409_v15 = vpop.f32.mrb[10].mxu1 }
 0x10a   :  { %v9130_v29 = vadd.f32 %v328_v13, %v87_v22  ;;  %v330_v27 = vpop.f32.mrb[11].mxu0  ;;  %v9132_v1 = vadd.f32 %v409_v15, %v95_v23  ;;  %v411_v31 = vpop.f32.mrb[11].mxu1 }
 0x10b   :  { %v9134_v40 = vadd.f32 %v330_v27, %v91_v24  ;;  %v9136_v10 = vadd.f32 %v411_v31, %v99_v26 }
 0x10c   :  { %11426 = vst [vmem:[#allocation17_spill] sm:$0xff] %v9130_v29  ;;  %11427 = vst [vmem:[#allocation18_spill] sm:$0xff] %v9132_v1 }
 0x10d   :  { %11428 = vst [vmem:[#allocation19_spill] sm:$0xff] %v9134_v40  ;;  %11429 = vst [vmem:[#allocation20_spill] sm:$0xff] %v9136_v10  ;;  %v334_v19 = vpop.f32.mrb[12].mxu0  ;;  %v415_v45 = vpop.f32.mrb[12].mxu1 }
 0x10e   :  { %v9138_v17 = vadd.f32 %v334_v19, %v87_v22  ;;  %v336_v55 = vpop.f32.mrb[13].mxu0  ;;  %v9140_v14 = vadd.f32 %v415_v45, %v95_v23  ;;  %v417_v2 = vpop.f32.mrb[13].mxu1  ;;  %v299_v45 = vadd.f32 %v9082_v16, %v87_v22 }
 0x10f   :  { %v9142_v12 = vadd.f32 %v336_v55, %v91_v24  ;;  %v9144_v13 = vadd.f32 %v417_v2, %v99_v26  ;;  %v301_v55 = vadd.f32 %v9090_v20, %v91_v24  ;;  %v382_v2 = vadd.f32 %v9092_v21, %v99_v26 }
 0x110   :  { %11430 = vst [vmem:[#allocation21_spill] sm:$0xff] %v9138_v17  ;;  %11431 = vst [vmem:[#allocation22_spill] sm:$0xff] %v9140_v14  ;;  %v380_v14 = vadd.f32 %v9086_v18, %v95_v23 }
 0x111   :  { %11432 = vst [vmem:[#allocation23_spill] sm:$0xff] %v9142_v12  ;;  %11433 = vst [vmem:[#allocation24_spill] sm:$0xff] %v9144_v13  ;;  %v340_v29 = vpop.f32.mrb[14].mxu0  ;;  %v421_v15 = vpop.f32.mrb[14].mxu1 }
 0x112   :  { %v9146_v1 = vadd.f32 %v340_v29, %v87_v22  ;;  %v342_v27 = vpop.f32.mrb[15].mxu0  ;;  %v9148_v40 = vadd.f32 %v421_v15, %v95_v23  ;;  %v423_v31 = vpop.f32.mrb[15].mxu1 }
 0x113   :  { %v9150_v10 = vadd.f32 %v342_v27, %v91_v24  ;;  %v9152_v19 = vadd.f32 %v423_v31, %v99_v26 }
 0x114   :  { %11434 = vst [vmem:[#allocation25_spill] sm:$0xff] %v9146_v1  ;;  %11435 = vst [vmem:[#allocation26_spill] sm:$0xff] %v9148_v40 }
 0x115   :  { %11436 = vst [vmem:[#allocation27_spill] sm:$0xff] %v9150_v10  ;;  %11437 = vst [vmem:[#allocation28_spill] sm:$0xff] %v9152_v19  ;;  %v688_v13 = vpop.f32.mrb[16].mxu0  ;;  %v729_v12 = vpop.f32.mrb[16].mxu1 }
 0x116   :  { %v736_v29 = vadd.f32 %v688_v13, %v299_v45  ;;  %v738_v1 = vadd.f32 %v729_v12, %v380_v14  ;;  %v690_v17 = vpop.f32.mrb[17].mxu0  ;;  %v731_v15 = vpop.f32.mrb[17].mxu1  ;;  %v11438_v45 = vmov 0  }
 0x117   :  { %v737_v40 = vadd.f32 %v690_v17, %v301_v55  ;;  %v739_v25 = vadd.f32 %v731_v15, %v382_v2  ;;  %v692_v27 = vpop.f32.mrb[18].mxu0  ;;  %v733_v10 = vpop.f32.mrb[18].mxu1 }
 0x118   :  { %v740_v31 = vmul.f32 0.5, %v736_v29  ;;  %v693_v19 = vpop.f32.mrb[19].mxu0  ;;  %v734_v11 = vpop.f32.mrb[19].mxu1 }
 0x119   :  { %v744_v16 = vmul.f32 0.5, %v737_v40  ;;  %v749_v18 = vmul.f32 0.5, %v739_v25 }
 0x11a   :  { %8363 = vtanh.f32 %v740_v31 }
 0x11b   :  { %8365 = vtanh.f32 %v744_v16 }
 0x11c   :  { %8367 = vtanh.f32 %v738_v1 }
 0x11d   :  { %8369 = vtanh.f32 %v749_v18 }
 0x124   :  { %v8364_v20 = vpop.eup %8363 }
 0x125   :  { %v8366_v21 = vpop.eup %8365  ;;  %v742_v22 = vadd.f32 1.0, %v8364_v20 }
 0x126   :  { %v746_v23 = vadd.f32 1.0, %v8366_v21  ;;  %v8368_v24 = vpop.eup %8367 }
 0x127   :  { %v743_v14 = vmul.f32 0.5, %v742_v22  ;;  %v8370_v11 = vpop.eup %8369 }
 0x128   :  { %v747_v26 = vmul.f32 0.5, %v746_v23  ;;  %v751_v40 = vadd.f32 1.0, %v8370_v11 }
 0x129   :  { %v754_v17 = vmul.f32 %v8368_v24, %v743_v14 }
 0x12a   :  { %v753_v12 = vmul.f32 0.0, %v747_v26  ;;  %v752_v10 = vmul.f32 0.5, %v751_v40 }
 0x12c   :  { %v9158_v13 = vadd.f32 %v754_v17, %v753_v12 }
 0x12e   :  { %8371 = vtanh.f32 %v9158_v13 }
 0x138   :  { %v8372_v19 = vpop.eup %8371 }
 0x139   :  { %v9161_v1 = vmul.f32 %v8372_v19, %v752_v10 }
 0x13b   :  { %v763_v25 = vpack.c.bf16 %v9161_v1, %v9161_v1 }
 0x13d   :  { %989 = vmatmul.mubr.bf16.vlgmr.msra.gmra.mrb[20].mxu0 %v763_v25  ;;  %1030 = vmatmul.mubr.bf16.vlgmr.msra.gmra.mrb[20].mxu1 %v763_v25 }
 0x13e   :  { %1259 = vmatpush1.bf16.msra.mxu0 %v8821_v36  ;;  %1300 = vmatpush1.bf16.msra.mxu1 %v8826_v37 }
 0x13f   :  { %1260 = vmatprep.subr.bf16.mxu0 %v8833_v38  ;;  %1301 = vmatprep.subr.bf16.mxu1 %v8838_v39 }
 0x140   :  { %1290 = vmatprep.mubr.bf16.mxu0 %v11438_v45  ;;  %1331 = vmatprep.mubr.bf16.mxu1 %v11438_v45 }
 0x142   :  { %1261 = vmatpush1.bf16.msra.mxu0 %v8848_v41  ;;  %1302 = vmatpush1.bf16.msra.mxu1 %v8853_v42 }
 0x143   :  { %1262 = vmatprep.subr.bf16.mxu0 %v8860_v43  ;;  %1303 = vmatprep.subr.bf16.mxu1 %v8867_v44 }
 0x146   :  { %1263 = vmatpush1.bf16.msra.mxu0 %v8877_v46  ;;  %1304 = vmatpush1.bf16.msra.mxu1 %v8882_v47 }
 0x147   :  { %1264 = vmatprep.subr.bf16.mxu0 %v8891_v48  ;;  %1305 = vmatprep.subr.bf16.mxu1 %v8896_v49 }
 0x14a   :  { %1265 = vmatpush1.bf16.msra.mxu0 %v8904_v51  ;;  %1306 = vmatpush1.bf16.msra.mxu1 %v8911_v52 }
 0x14b   :  { %1266 = vmatprep.subr.bf16.mxu0 %v8918_v53  ;;  %1307 = vmatprep.subr.bf16.mxu1 %v8923_v54 }
 0x14e   :  { %1267 = vmatpush1.bf16.msra.mxu0 %v8933_v56  ;;  %1308 = vmatpush1.bf16.msra.mxu1 %v8938_v57 }
 0x14f   :  { %1268 = vmatprep.subr.bf16.mxu0 %v8945_v58  ;;  %1309 = vmatprep.subr.bf16.mxu1 %v8950_v59 }
 0x152   :  { %1269 = vmatpush1.bf16.msra.mxu0 %v8962_v61  ;;  %1310 = vmatpush1.bf16.msra.mxu1 %v8967_v62 }
 0x153   :  { %1270 = vmatprep.subr.bf16.mxu0 %v8974_v63  ;;  %1311 = vmatprep.subr.bf16.mxu1 %v8979_v0 }
 0x156   :  { %1271 = vmatpush1.bf16.msra.mxu0 %v8993_v3  ;;  %1312 = vmatpush1.bf16.msra.mxu1 %v8998_v4 }
 0x157   :  { %1272 = vmatprep.subr.bf16.mxu0 %v9007_v5  ;;  %1313 = vmatprep.subr.bf16.mxu1 %v9012_v6 }
 0x15a   :  { %1273 = vmatpush1.bf16.msra.mxu0 %v9022_v8  ;;  %1314 = vmatpush1.bf16.msra.mxu1 %v9027_v9 }
 0x15b   :  { %1560 = vmatprep.subr.bf16.mxu0 %v8808_v33  ;;  %1601 = vmatprep.subr.bf16.mxu1 %v8813_v34 }
 0x210   :  { %v990_v55 = vpop.f32.mrb[20].mxu0  ;;  %v1031_v2 = vpop.f32.mrb[20].mxu1 }
 0x211   :  { %v1038_v29 = vadd.f32 %v990_v55, %v9098_v28  ;;  %v1040_v15 = vadd.f32 %v1031_v2, %v9100_v30  ;;  %v992_v27 = vpop.f32.mrb[21].mxu0  ;;  %v1033_v31 = vpop.f32.mrb[21].mxu1 }
 0x212   :  { %v1039_v16 = vadd.f32 %v992_v27, %v9102_v32  ;;  %v1041_v18 = vadd.f32 %v1033_v31, %v9104_v35  ;;  %v994_v20 = vpop.f32.mrb[22].mxu0  ;;  %v1035_v21 = vpop.f32.mrb[22].mxu1  ;;  %v9275_v27 = vld [vmem:[%s11388_s2 + $0x8] ss:$16 sps:$4 sm:$0xff]   ;;  %v9284_v31 = vld [vmem:[%s11388_s2 + $0x24] ss:$16 sps:$4 sm:$0xff]  }
 0x213   :  { %v1042_v22 = vmul.f32 0.5, %v1038_v29  ;;  %v995_v23 = vpop.f32.mrb[23].mxu0  ;;  %v1036_v14 = vpop.f32.mrb[23].mxu1  ;;  %v9299_v20 = vld [vmem:[%s11388_s2 + $0x28] ss:$16 sps:$4 sm:$0xff]  }
 0x214   :  { %v1046_v33 = vmul.f32 0.5, %v1039_v16  ;;  %v1051_v34 = vmul.f32 0.5, %v1041_v18  ;;  %v9289_v16 = vld [vmem:[%s11388_s2 + $0x2c] ss:$16 sps:$4 sm:$0xff]   ;;  %v9294_v18 = vld [vmem:[%s11388_s2 + $0x20] ss:$16 sps:$4 sm:$0xff]  }
 0x215   :  { %8373 = vtanh.f32 %v1042_v22  ;;  %v9308_v21 = vld [vmem:[%s11388_s2 + $0x44] ss:$16 sps:$4 sm:$0xff]   ;;  %v9313_v22 = vld [vmem:[%s11388_s2 + $0x4c] ss:$16 sps:$4 sm:$0xff]   ;;  %v9318_v23 = vld [vmem:[%s11388_s2 + $0x40] ss:$16 sps:$4 sm:$0xff]  }
 0x216   :  { %8375 = vtanh.f32 %v1046_v33  ;;  %v9323_v14 = vld [vmem:[%s11388_s2 + $0x48] ss:$16 sps:$4 sm:$0xff]   ;;  %v9332_v33 = vld [vmem:[%s11388_s2 + $0x64] ss:$16 sps:$4 sm:$0xff]  }
 0x217   :  { %8377 = vtanh.f32 %v1040_v15  ;;  %v9270_v15 = vld [vmem:[%s11388_s2] ss:$16 sps:$4 sm:$0xff]  }
 0x218   :  { %8379 = vtanh.f32 %v1051_v34  ;;  %v9337_v34 = vld [vmem:[%s11388_s2 + $0x6c] ss:$16 sps:$4 sm:$0xff]  }
 0x21f   :  { %v8374_v24 = vpop.eup %8373 }
 0x220   :  { %v8376_v28 = vpop.eup %8375  ;;  %v1044_v26 = vadd.f32 1.0, %v8374_v24  ;;  %v9342_v24 = vld [vmem:[%s11388_s2 + $0x60] ss:$16 sps:$4 sm:$0xff]  }
 0x221   :  { %v1048_v30 = vadd.f32 1.0, %v8376_v28  ;;  %v8378_v12 = vpop.eup %8377  ;;  %v9347_v28 = vld [vmem:[%s11388_s2 + $0x68] ss:$16 sps:$4 sm:$0xff]  }
 0x222   :  { %v1045_v17 = vmul.f32 0.5, %v1044_v26  ;;  %v8380_v10 = vpop.eup %8379  ;;  %v9356_v26 = vld [vmem:[%s11388_s2 + $0x84] ss:$16 sps:$4 sm:$0xff]  }
 0x223   :  { %v1049_v32 = vmul.f32 0.5, %v1048_v30  ;;  %v1053_v19 = vadd.f32 1.0, %v8380_v10  ;;  %v9361_v30 = vld [vmem:[%s11388_s2 + $0x8c] ss:$16 sps:$4 sm:$0xff]   ;;  %v9404_v10 = vld [vmem:[%s11388_s2 + $0xc4] ss:$16 sps:$4 sm:$0xff]  }
 0x224   :  { %v1056_v11 = vmul.f32 %v8378_v12, %v1045_v17  ;;  %v9366_v17 = vld [vmem:[%s11388_s2 + $0x80] ss:$16 sps:$4 sm:$0xff]   ;;  %v9371_v12 = vld [vmem:[%s11388_s2 + $0x88] ss:$16 sps:$4 sm:$0xff]  }
 0x225   :  { %v1055_v35 = vmul.f32 %v1049_v32, %v9158_v13  ;;  %v1054_v25 = vmul.f32 0.5, %v1053_v19  ;;  %v9265_v13 = vld [vmem:[%s11388_s2 + $0xc] ss:$16 sps:$4 sm:$0xff]   ;;  %v9380_v32 = vld [vmem:[%s11388_s2 + $0xa4] ss:$16 sps:$4 sm:$0xff]  }
 0x226   :  { %v9409_v19 = vld [vmem:[%s11388_s2 + $0xcc] ss:$16 sps:$4 sm:$0xff]  }
 0x227   :  { %v9204_v40 = vadd.f32 %v1056_v11, %v1055_v35  ;;  %v9385_v11 = vld [vmem:[%s11388_s2 + $0xac] ss:$16 sps:$4 sm:$0xff]   ;;  %v9390_v35 = vld [vmem:[%s11388_s2 + $0xa0] ss:$16 sps:$4 sm:$0xff]  }
 0x229   :  { %8381 = vtanh.f32 %v9204_v40 }
 0x233   :  { %v8382_v55 = vpop.eup %8381 }
 0x234   :  { %v9207_v2 = vmul.f32 %v8382_v55, %v1054_v25  ;;  %v9414_v25 = vld [vmem:[%s11388_s2 + $0xc0] ss:$16 sps:$4 sm:$0xff]   ;;  %v9419_v55 = vld [vmem:[%s11388_s2 + $0xc8] ss:$16 sps:$4 sm:$0xff]  }
 0x236   :  { %v1065_v29 = vpack.c.bf16 %v9207_v2, %v9207_v2 }
 0x238   :  { %1291 = vmatmul.mubr.bf16.vlgmr.msra.gmra.mrb[24].mxu0 %v1065_v29  ;;  %1332 = vmatmul.mubr.bf16.vlgmr.msra.gmra.mrb[24].mxu1 %v1065_v29  ;;  %v9428_v29 = vld [vmem:[%s11388_s2 + $0xe4] ss:$16 sps:$4 sm:$0xff]  }
 0x239   :  { %1561 = vmatpush1.bf16.msra.mxu0 %v8821_v36  ;;  %1602 = vmatpush1.bf16.msra.mxu1 %v8826_v37 }
 0x23a   :  { %1562 = vmatprep.subr.bf16.mxu0 %v8833_v38  ;;  %1603 = vmatprep.subr.bf16.mxu1 %v8838_v39 }
 0x23b   :  { %1592 = vmatprep.mubr.bf16.mxu0 %v11438_v45  ;;  %1633 = vmatprep.mubr.bf16.mxu1 %v11438_v45 }
 0x23d   :  { %1563 = vmatpush1.bf16.msra.mxu0 %v8848_v41  ;;  %1604 = vmatpush1.bf16.msra.mxu1 %v8853_v42 }
 0x23e   :  { %1564 = vmatprep.subr.bf16.mxu0 %v8860_v43  ;;  %1605 = vmatprep.subr.bf16.mxu1 %v8867_v44  ;;  %v11439_v44 = vld [vmem:[#allocation8_spill] sm:$0xff] }
 0x241   :  { %1565 = vmatpush1.bf16.msra.mxu0 %v8877_v46  ;;  %1606 = vmatpush1.bf16.msra.mxu1 %v8882_v47 }
 0x242   :  { %1566 = vmatprep.subr.bf16.mxu0 %v8891_v48  ;;  %1607 = vmatprep.subr.bf16.mxu1 %v8896_v49 }
 0x245   :  { %1567 = vmatpush1.bf16.msra.mxu0 %v8904_v51  ;;  %1608 = vmatpush1.bf16.msra.mxu1 %v8911_v52 }
 0x246   :  { %1568 = vmatprep.subr.bf16.mxu0 %v8918_v53  ;;  %1609 = vmatprep.subr.bf16.mxu1 %v8923_v54 }
 0x249   :  { %1569 = vmatpush1.bf16.msra.mxu0 %v8933_v56  ;;  %1610 = vmatpush1.bf16.msra.mxu1 %v8938_v57 }
 0x24a   :  { %1570 = vmatprep.subr.bf16.mxu0 %v8945_v58  ;;  %1611 = vmatprep.subr.bf16.mxu1 %v8950_v59 }
 0x24d   :  { %1571 = vmatpush1.bf16.msra.mxu0 %v8962_v61  ;;  %1612 = vmatpush1.bf16.msra.mxu1 %v8967_v62 }
 0x24e   :  { %1572 = vmatprep.subr.bf16.mxu0 %v8974_v63  ;;  %1613 = vmatprep.subr.bf16.mxu1 %v8979_v0 }
 0x251   :  { %1573 = vmatpush1.bf16.msra.mxu0 %v8993_v3  ;;  %1614 = vmatpush1.bf16.msra.mxu1 %v8998_v4 }
 0x252   :  { %1574 = vmatprep.subr.bf16.mxu0 %v9007_v5  ;;  %1615 = vmatprep.subr.bf16.mxu1 %v9012_v6 }
 0x255   :  { %1575 = vmatpush1.bf16.msra.mxu0 %v9022_v8  ;;  %1616 = vmatpush1.bf16.msra.mxu1 %v9027_v9 }
 0x256   :  { %1903 = vmatprep.subr.bf16.mxu1 %v9265_v13 }
 0x30b   :  { %v1292_v36 = vpop.f32.mrb[24].mxu0  ;;  %v1333_v37 = vpop.f32.mrb[24].mxu1 }
 0x30c   :  { %v1340_v38 = vadd.f32 %v1292_v36, %v9106_v50  ;;  %v1342_v39 = vadd.f32 %v1333_v37, %v9108_v60  ;;  %v1294_v41 = vpop.f32.mrb[25].mxu0  ;;  %v1335_v42 = vpop.f32.mrb[25].mxu1  ;;  %v9433_v36 = vld [vmem:[%s11388_s2 + $0xec] ss:$16 sps:$4 sm:$0xff]   ;;  %v9438_v37 = vld [vmem:[%s11388_s2 + $0xe0] ss:$16 sps:$4 sm:$0xff]  }
 0x30d   :  { %v1341_v43 = vadd.f32 %v1294_v41, %v9110_v7  ;;  %v1343_v46 = vadd.f32 %v1335_v42, %v11439_v44  ;;  %v1296_v47 = vpop.f32.mrb[26].mxu0  ;;  %v1337_v48 = vpop.f32.mrb[26].mxu1  ;;  %v9260_v7 = vld [vmem:[%s11388_s2 + $0x4] ss:$16 sps:$4 sm:$0xff]   ;;  %v11440_v42 = vld [vmem:[#allocation9_spill] sm:$0xff] }
 0x30e   :  { %v1344_v49 = vmul.f32 0.5, %v1340_v38  ;;  %v1297_v51 = vpop.f32.mrb[27].mxu0  ;;  %v1338_v52 = vpop.f32.mrb[27].mxu1  ;;  %1862 = vmatprep.subr.bf16.mxu0 %v9260_v7  ;;  %v9443_v38 = vld [vmem:[%s11388_s2 + $0xe8] ss:$16 sps:$4 sm:$0xff]   ;;  %v11441_v44 = vld [vmem:[#allocation10_spill] sm:$0xff] }
 0x30f   :  { %v1348_v53 = vmul.f32 0.5, %v1341_v43  ;;  %v1353_v54 = vmul.f32 0.5, %v1343_v46  ;;  %v11443_v52 = vld [vmem:[#allocation12_spill] sm:$0xff] }
 0x310   :  { %8383 = vtanh.f32 %v1344_v49  ;;  %v11442_v49 = vld [vmem:[#allocation11_spill] sm:$0xff] }
 0x311   :  { %8385 = vtanh.f32 %v1348_v53 }
 0x312   :  { %8387 = vtanh.f32 %v1342_v39 }
 0x313   :  { %8389 = vtanh.f32 %v1353_v54 }
 0x31a   :  { %v8384_v56 = vpop.eup %8383 }
 0x31b   :  { %v8386_v57 = vpop.eup %8385  ;;  %v1346_v58 = vadd.f32 1.0, %v8384_v56 }
 0x31c   :  { %v1350_v59 = vadd.f32 1.0, %v8386_v57  ;;  %v8388_v62 = vpop.eup %8387 }
 0x31d   :  { %v1347_v61 = vmul.f32 0.5, %v1346_v58  ;;  %v8390_v5 = vpop.eup %8389 }
 0x31e   :  { %v1351_v63 = vmul.f32 0.5, %v1350_v59  ;;  %v1355_v6 = vadd.f32 1.0, %v8390_v5 }
 0x31f   :  { %v1358_v0 = vmul.f32 %v8388_v62, %v1347_v61 }
 0x320   :  { %v1357_v3 = vmul.f32 %v1351_v63, %v9204_v40  ;;  %v1356_v8 = vmul.f32 0.5, %v1355_v6  ;;  %v9395_v40 = vld [vmem:[%s11388_s2 + $0xa8] ss:$16 sps:$4 sm:$0xff]  }
 0x322   :  { %v9248_v4 = vadd.f32 %v1358_v0, %v1357_v3 }
 0x324   :  { %8391 = vtanh.f32 %v9248_v4 }
 0x32e   :  { %v8392_v9 = vpop.eup %8391 }
 0x32f   :  { %v9251_v50 = vmul.f32 %v8392_v9, %v1356_v8 }
 0x331   :  { %v1367_v60 = vpack.c.bf16 %v9251_v50, %v9251_v50 }
 0x333   :  { %1593 = vmatmul.mubr.bf16.vlgmr.msra.gmra.mrb[28].mxu0 %v1367_v60  ;;  %1634 = vmatmul.mubr.bf16.vlgmr.msra.gmra.mrb[28].mxu1 %v1367_v60 }
 0x334   :  { %1894 = vmatprep.mubr.bf16.mxu0 %v11438_v45  ;;  %1935 = vmatprep.mubr.bf16.mxu1 %v11438_v45 }
 0x335   :  { %1863 = vmatpush1.bf16.msra.mxu0 %v9270_v15  ;;  %1904 = vmatpush1.bf16.msra.mxu1 %v9275_v27 }
 0x336   :  { %1864 = vmatprep.subr.bf16.mxu0 %v9284_v31  ;;  %1905 = vmatprep.subr.bf16.mxu1 %v9289_v16 }
 0x339   :  { %1865 = vmatpush1.bf16.msra.mxu0 %v9294_v18  ;;  %1906 = vmatpush1.bf16.msra.mxu1 %v9299_v20 }
 0x33a   :  { %1866 = vmatprep.subr.bf16.mxu0 %v9308_v21  ;;  %1907 = vmatprep.subr.bf16.mxu1 %v9313_v22 }
 0x33d   :  { %1867 = vmatpush1.bf16.msra.mxu0 %v9318_v23  ;;  %1908 = vmatpush1.bf16.msra.mxu1 %v9323_v14 }
 0x33e   :  { %1868 = vmatprep.subr.bf16.mxu0 %v9332_v33  ;;  %1909 = vmatprep.subr.bf16.mxu1 %v9337_v34 }
 0x341   :  { %1869 = vmatpush1.bf16.msra.mxu0 %v9342_v24  ;;  %1910 = vmatpush1.bf16.msra.mxu1 %v9347_v28 }
 0x342   :  { %1870 = vmatprep.subr.bf16.mxu0 %v9356_v26  ;;  %1911 = vmatprep.subr.bf16.mxu1 %v9361_v30 }
 0x345   :  { %1871 = vmatpush1.bf16.msra.mxu0 %v9366_v17  ;;  %1912 = vmatpush1.bf16.msra.mxu1 %v9371_v12 }
 0x346   :  { %1872 = vmatprep.subr.bf16.mxu0 %v9380_v32  ;;  %1913 = vmatprep.subr.bf16.mxu1 %v9385_v11 }
 0x349   :  { %1873 = vmatpush1.bf16.msra.mxu0 %v9390_v35  ;;  %1914 = vmatpush1.bf16.msra.mxu1 %v9395_v40 }
 0x34a   :  { %1874 = vmatprep.subr.bf16.mxu0 %v9404_v10  ;;  %1915 = vmatprep.subr.bf16.mxu1 %v9409_v19 }
 0x34d   :  { %1875 = vmatpush1.bf16.msra.mxu0 %v9414_v25  ;;  %1916 = vmatpush1.bf16.msra.mxu1 %v9419_v55 }
 0x34e   :  { %1876 = vmatprep.subr.bf16.mxu0 %v9428_v29  ;;  %1917 = vmatprep.subr.bf16.mxu1 %v9433_v36 }
 0x351   :  { %1877 = vmatpush1.bf16.msra.mxu0 %v9438_v37  ;;  %1918 = vmatpush1.bf16.msra.mxu1 %v9443_v38 }
 0x352   :  { %2164 = vmatprep.subr.bf16.mxu0 %v9260_v7  ;;  %2205 = vmatprep.subr.bf16.mxu1 %v9265_v13 }
 0x406   :  { %v1594_v39 = vpop.f32.mrb[28].mxu0  ;;  %v1635_v41 = vpop.f32.mrb[28].mxu1 }
 0x407   :  { %v1642_v43 = vadd.f32 %v1594_v39, %v11440_v42  ;;  %v1644_v46 = vadd.f32 %v1635_v41, %v11441_v44  ;;  %v1596_v47 = vpop.f32.mrb[29].mxu0  ;;  %v1637_v48 = vpop.f32.mrb[29].mxu1 }
 0x408   :  { %v1643_v51 = vadd.f32 %v1596_v47, %v11442_v49  ;;  %v1645_v53 = vadd.f32 %v1637_v48, %v11443_v52  ;;  %v1598_v54 = vpop.f32.mrb[30].mxu0  ;;  %v1639_v56 = vpop.f32.mrb[30].mxu1 }
 0x409   :  { %v1646_v57 = vmul.f32 0.5, %v1642_v43  ;;  %v1599_v58 = vpop.f32.mrb[31].mxu0  ;;  %v1640_v59 = vpop.f32.mrb[31].mxu1 }
 0x40a   :  { %v1650_v61 = vmul.f32 0.5, %v1643_v51  ;;  %v1655_v62 = vmul.f32 0.5, %v1645_v53  ;;  %v11444_v51 = vld [vmem:[#allocation13_spill] sm:$0xff]  ;;  %v11445_v53 = vld [vmem:[#allocation14_spill] sm:$0xff]  ;;  %v11446_v58 = vld [vmem:[#allocation15_spill] sm:$0xff] }
 0x40b   :  { %8393 = vtanh.f32 %v1646_v57 }
 0x40c   :  { %8395 = vtanh.f32 %v1650_v61  ;;  %v11447_v61 = vld [vmem:[#allocation16_spill] sm:$0xff] }
 0x40d   :  { %8397 = vtanh.f32 %v1644_v46 }
 0x40e   :  { %8399 = vtanh.f32 %v1655_v62 }
 0x415   :  { %v8394_v63 = vpop.eup %8393 }
 0x416   :  { %v8396_v0 = vpop.eup %8395  ;;  %v1648_v3 = vadd.f32 1.0, %v8394_v63 }
 0x417   :  { %v1652_v5 = vadd.f32 1.0, %v8396_v0  ;;  %v8398_v8 = vpop.eup %8397 }
 0x418   :  { %v1649_v6 = vmul.f32 0.5, %v1648_v3  ;;  %v8400_v42 = vpop.eup %8399 }
 0x419   :  { %v1653_v9 = vmul.f32 0.5, %v1652_v5  ;;  %v1657_v43 = vadd.f32 1.0, %v8400_v42 }
 0x41a   :  { %v1660_v60 = vmul.f32 %v8398_v8, %v1649_v6 }
 0x41b   :  { %v1659_v39 = vmul.f32 %v1653_v9, %v9248_v4  ;;  %v1658_v44 = vmul.f32 0.5, %v1657_v43 }
 0x41d   :  { %v9456_v41 = vadd.f32 %v1660_v60, %v1659_v39 }
 0x41f   :  { %8401 = vtanh.f32 %v9456_v41 }
 0x429   :  { %v8402_v46 = vpop.eup %8401 }
 0x42a   :  { %v9459_v47 = vmul.f32 %v8402_v46, %v1658_v44 }
 0x42c   :  { %v1669_v48 = vpack.c.bf16 %v9459_v47, %v9459_v47 }
 0x42e   :  { %1895 = vmatmul.mubr.bf16.vlgmr.msra.gmra.mrb[32].mxu0 %v1669_v48  ;;  %1936 = vmatmul.mubr.bf16.vlgmr.msra.gmra.mrb[32].mxu1 %v1669_v48 }
 0x42f   :  { %2165 = vmatpush1.bf16.msra.mxu0 %v9270_v15  ;;  %2206 = vmatpush1.bf16.msra.mxu1 %v9275_v27 }
 0x430   :  { %2166 = vmatprep.subr.bf16.mxu0 %v9284_v31  ;;  %2207 = vmatprep.subr.bf16.mxu1 %v9289_v16 }
 0x431   :  { %2196 = vmatprep.mubr.bf16.mxu0 %v11438_v45  ;;  %2237 = vmatprep.mubr.bf16.mxu1 %v11438_v45 }
 0x433   :  { %2167 = vmatpush1.bf16.msra.mxu0 %v9294_v18  ;;  %2208 = vmatpush1.bf16.msra.mxu1 %v9299_v20 }
 0x434   :  { %2168 = vmatprep.subr.bf16.mxu0 %v9308_v21  ;;  %2209 = vmatprep.subr.bf16.mxu1 %v9313_v22 }
 0x437   :  { %2169 = vmatpush1.bf16.msra.mxu0 %v9318_v23  ;;  %2210 = vmatpush1.bf16.msra.mxu1 %v9323_v14 }
 0x438   :  { %2170 = vmatprep.subr.bf16.mxu0 %v9332_v33  ;;  %2211 = vmatprep.subr.bf16.mxu1 %v9337_v34 }
 0x43b   :  { %2171 = vmatpush1.bf16.msra.mxu0 %v9342_v24  ;;  %2212 = vmatpush1.bf16.msra.mxu1 %v9347_v28 }
 0x43c   :  { %2172 = vmatprep.subr.bf16.mxu0 %v9356_v26  ;;  %2213 = vmatprep.subr.bf16.mxu1 %v9361_v30 }
 0x43f   :  { %2173 = vmatpush1.bf16.msra.mxu0 %v9366_v17  ;;  %2214 = vmatpush1.bf16.msra.mxu1 %v9371_v12 }
 0x440   :  { %2174 = vmatprep.subr.bf16.mxu0 %v9380_v32  ;;  %2215 = vmatprep.subr.bf16.mxu1 %v9385_v11 }
 0x443   :  { %2175 = vmatpush1.bf16.msra.mxu0 %v9390_v35  ;;  %2216 = vmatpush1.bf16.msra.mxu1 %v9395_v40 }
 0x444   :  { %2176 = vmatprep.subr.bf16.mxu0 %v9404_v10  ;;  %2217 = vmatprep.subr.bf16.mxu1 %v9409_v19 }
 0x447   :  { %2177 = vmatpush1.bf16.msra.mxu0 %v9414_v25  ;;  %2218 = vmatpush1.bf16.msra.mxu1 %v9419_v55 }
 0x448   :  { %2178 = vmatprep.subr.bf16.mxu0 %v9428_v29  ;;  %2219 = vmatprep.subr.bf16.mxu1 %v9433_v36 }
 0x44b   :  { %2179 = vmatpush1.bf16.msra.mxu0 %v9438_v37  ;;  %2220 = vmatpush1.bf16.msra.mxu1 %v9443_v38 }
 0x44c   :  { %2466 = vmatprep.subr.bf16.mxu0 %v9260_v7  ;;  %2507 = vmatprep.subr.bf16.mxu1 %v9265_v13 }
 0x501   :  { %v1896_v4 = vpop.f32.mrb[32].mxu0  ;;  %v1937_v49 = vpop.f32.mrb[32].mxu1 }
 0x502   :  { %v1944_v52 = vadd.f32 %v1896_v4, %v11444_v51  ;;  %v1946_v54 = vadd.f32 %v1937_v49, %v11445_v53  ;;  %v1898_v56 = vpop.f32.mrb[33].mxu0  ;;  %v1939_v57 = vpop.f32.mrb[33].mxu1 }
 0x503   :  { %v1945_v59 = vadd.f32 %v1898_v56, %v11446_v58  ;;  %v1947_v62 = vadd.f32 %v1939_v57, %v11447_v61  ;;  %v1900_v63 = vpop.f32.mrb[34].mxu0  ;;  %v1941_v0 = vpop.f32.mrb[34].mxu1  ;;  %v11448_v61 = vld [vmem:[#allocation17_spill] sm:$0xff] }
 0x504   :  { %v1948_v3 = vmul.f32 0.5, %v1944_v52  ;;  %v1901_v5 = vpop.f32.mrb[35].mxu0  ;;  %v1942_v6 = vpop.f32.mrb[35].mxu1  ;;  %v11449_v63 = vld [vmem:[#allocation18_spill] sm:$0xff] }
 0x505   :  { %v1952_v8 = vmul.f32 0.5, %v1945_v59  ;;  %v1957_v9 = vmul.f32 0.5, %v1947_v62  ;;  %v11450_v6 = vld [vmem:[#allocation19_spill] sm:$0xff] }
 0x506   :  { %8403 = vtanh.f32 %v1948_v3 }
 0x507   :  { %8405 = vtanh.f32 %v1952_v8 }
 0x508   :  { %8407 = vtanh.f32 %v1946_v54 }
 0x509   :  { %8409 = vtanh.f32 %v1957_v9  ;;  %v11451_v9 = vld [vmem:[#allocation20_spill] sm:$0xff] }
 0x510   :  { %v8404_v60 = vpop.eup %8403 }
 0x511   :  { %v8406_v39 = vpop.eup %8405  ;;  %v1950_v42 = vadd.f32 1.0, %v8404_v60 }
 0x512   :  { %v1954_v43 = vadd.f32 1.0, %v8406_v39  ;;  %v8408_v46 = vpop.eup %8407 }
 0x513   :  { %v1951_v44 = vmul.f32 0.5, %v1950_v42  ;;  %v8410_v52 = vpop.eup %8409 }
 0x514   :  { %v1955_v48 = vmul.f32 0.5, %v1954_v43  ;;  %v1959_v53 = vadd.f32 1.0, %v8410_v52 }
 0x515   :  { %v1962_v4 = vmul.f32 %v8408_v46, %v1951_v44 }
 0x516   :  { %v1961_v49 = vmul.f32 %v1955_v48, %v9456_v41  ;;  %v1960_v56 = vmul.f32 0.5, %v1959_v53 }
 0x518   :  { %v9502_v51 = vadd.f32 %v1962_v4, %v1961_v49 }
 0x51a   :  { %8411 = vtanh.f32 %v9502_v51 }
 0x524   :  { %v8412_v54 = vpop.eup %8411 }
 0x525   :  { %v9505_v57 = vmul.f32 %v8412_v54, %v1960_v56 }
 0x527   :  { %v1971_v58 = vpack.c.bf16 %v9505_v57, %v9505_v57 }
 0x529   :  { %2197 = vmatmul.mubr.bf16.vlgmr.msra.gmra.mrb[36].mxu0 %v1971_v58  ;;  %2238 = vmatmul.mubr.bf16.vlgmr.msra.gmra.mrb[36].mxu1 %v1971_v58 }
 0x52a   :  { %2467 = vmatpush1.bf16.msra.mxu0 %v9270_v15  ;;  %2508 = vmatpush1.bf16.msra.mxu1 %v9275_v27 }
 0x52b   :  { %2468 = vmatprep.subr.bf16.mxu0 %v9284_v31  ;;  %2509 = vmatprep.subr.bf16.mxu1 %v9289_v16 }
 0x52c   :  { %2498 = vmatprep.mubr.bf16.mxu0 %v11438_v45  ;;  %2539 = vmatprep.mubr.bf16.mxu1 %v11438_v45 }
 0x52e   :  { %2469 = vmatpush1.bf16.msra.mxu0 %v9294_v18  ;;  %2510 = vmatpush1.bf16.msra.mxu1 %v9299_v20 }
 0x52f   :  { %2470 = vmatprep.subr.bf16.mxu0 %v9308_v21  ;;  %2511 = vmatprep.subr.bf16.mxu1 %v9313_v22 }
 0x532   :  { %2471 = vmatpush1.bf16.msra.mxu0 %v9318_v23  ;;  %2512 = vmatpush1.bf16.msra.mxu1 %v9323_v14 }
 0x533   :  { %2472 = vmatprep.subr.bf16.mxu0 %v9332_v33  ;;  %2513 = vmatprep.subr.bf16.mxu1 %v9337_v34 }
 0x536   :  { %2473 = vmatpush1.bf16.msra.mxu0 %v9342_v24  ;;  %2514 = vmatpush1.bf16.msra.mxu1 %v9347_v28 }
 0x537   :  { %2474 = vmatprep.subr.bf16.mxu0 %v9356_v26  ;;  %2515 = vmatprep.subr.bf16.mxu1 %v9361_v30 }
 0x53a   :  { %2475 = vmatpush1.bf16.msra.mxu0 %v9366_v17  ;;  %2516 = vmatpush1.bf16.msra.mxu1 %v9371_v12 }
 0x53b   :  { %2476 = vmatprep.subr.bf16.mxu0 %v9380_v32  ;;  %2517 = vmatprep.subr.bf16.mxu1 %v9385_v11 }
 0x53e   :  { %2477 = vmatpush1.bf16.msra.mxu0 %v9390_v35  ;;  %2518 = vmatpush1.bf16.msra.mxu1 %v9395_v40 }
 0x53f   :  { %2478 = vmatprep.subr.bf16.mxu0 %v9404_v10  ;;  %2519 = vmatprep.subr.bf16.mxu1 %v9409_v19 }
 0x542   :  { %2479 = vmatpush1.bf16.msra.mxu0 %v9414_v25  ;;  %2520 = vmatpush1.bf16.msra.mxu1 %v9419_v55 }
 0x543   :  { %2480 = vmatprep.subr.bf16.mxu0 %v9428_v29  ;;  %2521 = vmatprep.subr.bf16.mxu1 %v9433_v36 }
 0x546   :  { %2481 = vmatpush1.bf16.msra.mxu0 %v9438_v37  ;;  %2522 = vmatpush1.bf16.msra.mxu1 %v9443_v38 }
 0x547   :  { %2768 = vmatprep.subr.bf16.mxu0 %v9260_v7  ;;  %2809 = vmatprep.subr.bf16.mxu1 %v9265_v13 }
 0x5fc   :  { %v2198_v41 = vpop.f32.mrb[36].mxu0  ;;  %v2239_v59 = vpop.f32.mrb[36].mxu1 }
 0x5fd   :  { %v2246_v62 = vadd.f32 %v2198_v41, %v11448_v61  ;;  %v2248_v0 = vadd.f32 %v2239_v59, %v11449_v63  ;;  %v2200_v3 = vpop.f32.mrb[37].mxu0  ;;  %v2241_v5 = vpop.f32.mrb[37].mxu1 }
 0x5fe   :  { %v2247_v8 = vadd.f32 %v2200_v3, %v11450_v6  ;;  %v2249_v60 = vadd.f32 %v2241_v5, %v11451_v9  ;;  %v2202_v39 = vpop.f32.mrb[38].mxu0  ;;  %v2243_v42 = vpop.f32.mrb[38].mxu1 }
 0x5ff   :  { %v2250_v43 = vmul.f32 0.5, %v2246_v62  ;;  %v2203_v44 = vpop.f32.mrb[39].mxu0  ;;  %v2244_v46 = vpop.f32.mrb[39].mxu1  ;;  %v8115_v42 = vld [vmem:[%s11391_s4] ss:$16 sps:$4 sm:$0xff]  }
 0x600   :  { %v2254_v7 = vmul.f32 0.5, %v2247_v8  ;;  %v2259_v13 = vmul.f32 0.5, %v2249_v60  ;;  %v8123_v46 = vld [vmem:[%s11391_s4 + $0x24] ss:$16 sps:$4 sm:$0xff]  }
 0x601   :  { %8413 = vtanh.f32 %v2250_v43  ;;  %v8118_v43 = vld [vmem:[%s11391_s4 + $0x8] ss:$16 sps:$4 sm:$0xff]  }
 0x602   :  { %8415 = vtanh.f32 %v2254_v7  ;;  %v8126_v7 = vld [vmem:[%s11391_s4 + $0x2c] ss:$16 sps:$4 sm:$0xff]  }
 0x603   :  { %8417 = vtanh.f32 %v2248_v0 }
 0x604   :  { %8419 = vtanh.f32 %v2259_v13  ;;  %v8121_v13 = vld [vmem:[%s11391_s4 + $0x20] ss:$16 sps:$4 sm:$0xff]  }
 0x60b   :  { %v8414_v48 = vpop.eup %8413 }
 0x60c   :  { %v8416_v4 = vpop.eup %8415  ;;  %v2252_v49 = vadd.f32 1.0, %v8414_v48  ;;  %v8124_v48 = vld [vmem:[%s11391_s4 + $0x28] ss:$16 sps:$4 sm:$0xff]  }
 0x60d   :  { %v2256_v52 = vadd.f32 1.0, %v8416_v4  ;;  %v8418_v56 = vpop.eup %8417  ;;  %v8129_v4 = vld [vmem:[%s11391_s4 + $0x44] ss:$16 sps:$4 sm:$0xff]  }
 0x60e   :  { %v2253_v53 = vmul.f32 0.5, %v2252_v49  ;;  %v8420_v61 = vpop.eup %8419  ;;  %v8132_v49 = vld [vmem:[%s11391_s4 + $0x4c] ss:$16 sps:$4 sm:$0xff]  }
 0x60f   :  { %v2257_v54 = vmul.f32 0.5, %v2256_v52  ;;  %v2261_v62 = vadd.f32 1.0, %v8420_v61  ;;  %v8127_v52 = vld [vmem:[%s11391_s4 + $0x40] ss:$16 sps:$4 sm:$0xff]   ;;  %v8144_v61 = vld [vmem:[%s11391_s4 + $0x8c] ss:$16 sps:$4 sm:$0xff]  }
 0x610   :  { %v2264_v58 = vmul.f32 %v8418_v56, %v2253_v53  ;;  %v8130_v53 = vld [vmem:[%s11391_s4 + $0x48] ss:$16 sps:$4 sm:$0xff]   ;;  %v8135_v56 = vld [vmem:[%s11391_s4 + $0x64] ss:$16 sps:$4 sm:$0xff]  }
 0x611   :  { %v2263_v41 = vmul.f32 %v2257_v54, %v9502_v51  ;;  %v2262_v63 = vmul.f32 0.5, %v2261_v62  ;;  %v8138_v54 = vld [vmem:[%s11391_s4 + $0x6c] ss:$16 sps:$4 sm:$0xff]   ;;  %v8139_v62 = vld [vmem:[%s11391_s4 + $0x80] ss:$16 sps:$4 sm:$0xff]  }
 0x613   :  { %v9548_v59 = vadd.f32 %v2264_v58, %v2263_v41  ;;  %v8133_v58 = vld [vmem:[%s11391_s4 + $0x60] ss:$16 sps:$4 sm:$0xff]   ;;  %v8136_v41 = vld [vmem:[%s11391_s4 + $0x68] ss:$16 sps:$4 sm:$0xff]  }
 0x615   :  { %8421 = vtanh.f32 %v9548_v59 }
 0x61f   :  { %v8422_v0 = vpop.eup %8421 }
 0x620   :  { %v9551_v3 = vmul.f32 %v8422_v0, %v2262_v63  ;;  %v8142_v63 = vld [vmem:[%s11391_s4 + $0x88] ss:$16 sps:$4 sm:$0xff]   ;;  %v8147_v0 = vld [vmem:[%s11391_s4 + $0xa4] ss:$16 sps:$4 sm:$0xff]  }
 0x622   :  { %v2273_v5 = vpack.c.bf16 %v9551_v3, %v9551_v3 }
 0x624   :  { %2499 = vmatmul.mubr.bf16.vlgmr.msra.gmra.mrb[40].mxu0 %v2273_v5  ;;  %2540 = vmatmul.mubr.bf16.vlgmr.msra.gmra.mrb[40].mxu1 %v2273_v5  ;;  %v8150_v5 = vld [vmem:[%s11391_s4 + $0xac] ss:$16 sps:$4 sm:$0xff]  }
 0x625   :  { %2769 = vmatpush1.bf16.msra.mxu0 %v9270_v15  ;;  %2810 = vmatpush1.bf16.msra.mxu1 %v9275_v27  ;;  %v8117_v15 = vld [vmem:[%s11391_s4 + $0x4] ss:$16 sps:$4 sm:$0xff]   ;;  %v8120_v27 = vld [vmem:[%s11391_s4 + $0xc] ss:$16 sps:$4 sm:$0xff]  }
 0x626   :  { %2770 = vmatprep.subr.bf16.mxu0 %v9284_v31  ;;  %2811 = vmatprep.subr.bf16.mxu1 %v9289_v16 }
 0x627   :  { %2800 = vmatprep.mubr.bf16.mxu0 %v11438_v45  ;;  %2841 = vmatprep.mubr.bf16.mxu1 %v11438_v45 }
 0x629   :  { %2771 = vmatpush1.bf16.msra.mxu0 %v9294_v18  ;;  %2812 = vmatpush1.bf16.msra.mxu1 %v9299_v20  ;;  %v11452_v18 = vld [vmem:[#allocation21_spill] sm:$0xff] }
 0x62a   :  { %2772 = vmatprep.subr.bf16.mxu0 %v9308_v21  ;;  %2813 = vmatprep.subr.bf16.mxu1 %v9313_v22  ;;  %v11453_v21 = vld [vmem:[#allocation22_spill] sm:$0xff] }
 0x62d   :  { %2773 = vmatpush1.bf16.msra.mxu0 %v9318_v23  ;;  %2814 = vmatpush1.bf16.msra.mxu1 %v9323_v14 }
 0x62e   :  { %2774 = vmatprep.subr.bf16.mxu0 %v9332_v33  ;;  %2815 = vmatprep.subr.bf16.mxu1 %v9337_v34  ;;  %v11454_v33 = vld [vmem:[#allocation23_spill] sm:$0xff] }
 0x631   :  { %2775 = vmatpush1.bf16.msra.mxu0 %v9342_v24  ;;  %2816 = vmatpush1.bf16.msra.mxu1 %v9347_v28  ;;  %v11455_v24 = vld [vmem:[#allocation24_spill] sm:$0xff] }
 0x632   :  { %2776 = vmatprep.subr.bf16.mxu0 %v9356_v26  ;;  %2817 = vmatprep.subr.bf16.mxu1 %v9361_v30 }
 0x635   :  { %2777 = vmatpush1.bf16.msra.mxu0 %v9366_v17  ;;  %2818 = vmatpush1.bf16.msra.mxu1 %v9371_v12 }
 0x636   :  { %2778 = vmatprep.subr.bf16.mxu0 %v9380_v32  ;;  %2819 = vmatprep.subr.bf16.mxu1 %v9385_v11 }
 0x639   :  { %2779 = vmatpush1.bf16.msra.mxu0 %v9390_v35  ;;  %2820 = vmatpush1.bf16.msra.mxu1 %v9395_v40 }
 0x63a   :  { %2780 = vmatprep.subr.bf16.mxu0 %v9404_v10  ;;  %2821 = vmatprep.subr.bf16.mxu1 %v9409_v19 }
 0x63d   :  { %2781 = vmatpush1.bf16.msra.mxu0 %v9414_v25  ;;  %2822 = vmatpush1.bf16.msra.mxu1 %v9419_v55 }
 0x63e   :  { %2782 = vmatprep.subr.bf16.mxu0 %v9428_v29  ;;  %2823 = vmatprep.subr.bf16.mxu1 %v9433_v36 }
 0x641   :  { %2783 = vmatpush1.bf16.msra.mxu0 %v9438_v37  ;;  %2824 = vmatpush1.bf16.msra.mxu1 %v9443_v38 }
 0x642   :  { %3099 = vmatprep.subr.bf16.mxu0 %v8117_v15  ;;  %3172 = vmatprep.subr.bf16.mxu1 %v8120_v27  ;;  %v8145_v15 = vld [vmem:[%s11391_s4 + $0xa0] ss:$16 sps:$4 sm:$0xff]   ;;  %v8148_v27 = vld [vmem:[%s11391_s4 + $0xa8] ss:$16 sps:$4 sm:$0xff]  }
 0x6f7   :  { %v2500_v31 = vpop.f32.mrb[40].mxu0  ;;  %v2541_v16 = vpop.f32.mrb[40].mxu1 }
 0x6f8   :  { %v2548_v20 = vadd.f32 %v2500_v31, %v11452_v18  ;;  %v2550_v22 = vadd.f32 %v2541_v16, %v11453_v21  ;;  %v2502_v23 = vpop.f32.mrb[41].mxu0  ;;  %v2543_v14 = vpop.f32.mrb[41].mxu1  ;;  %v8153_v31 = vld [vmem:[%s11391_s4 + $0xc4] ss:$16 sps:$4 sm:$0xff]   ;;  %v8156_v16 = vld [vmem:[%s11391_s4 + $0xcc] ss:$16 sps:$4 sm:$0xff]  }
 0x6f9   :  { %v2549_v34 = vadd.f32 %v2502_v23, %v11454_v33  ;;  %v2551_v28 = vadd.f32 %v2543_v14, %v11455_v24  ;;  %v2504_v26 = vpop.f32.mrb[42].mxu0  ;;  %v2545_v30 = vpop.f32.mrb[42].mxu1  ;;  %v8151_v18 = vld [vmem:[%s11391_s4 + $0xc0] ss:$16 sps:$4 sm:$0xff]   ;;  %v8159_v21 = vld [vmem:[%s11391_s4 + $0xe4] ss:$16 sps:$4 sm:$0xff]   ;;  %v2882_v33 = vpack.c.bf16 %v9207_v2, %v9161_v1  ;;  %v2884_v24 = vpack.c.bf16 %v9551_v3, %v9505_v57 }
 0x6fa   :  { %v2552_v17 = vmul.f32 0.5, %v2548_v20  ;;  %v2505_v12 = vpop.f32.mrb[43].mxu0  ;;  %v2546_v32 = vpop.f32.mrb[43].mxu1  ;;  %v8154_v20 = vld [vmem:[%s11391_s4 + $0xc8] ss:$16 sps:$4 sm:$0xff]  }
 0x6fb   :  { %v2556_v11 = vmul.f32 0.5, %v2549_v34  ;;  %v2561_v35 = vmul.f32 0.5, %v2551_v28  ;;  %v8157_v23 = vld [vmem:[%s11391_s4 + $0xe0] ss:$16 sps:$4 sm:$0xff]   ;;  %v8160_v14 = vld [vmem:[%s11391_s4 + $0xe8] ss:$16 sps:$4 sm:$0xff]   ;;  %v2883_v34 = vpack.c.bf16 %v9459_v47, %v9251_v50 }
 0x6fc   :  { %8423 = vtanh.f32 %v2552_v17  ;;  %v9712_v1 = vld [vmem:[%s11392_s5 + $0x4] ss:$16 sps:$4 sm:$0xff]   ;;  %v9717_v2 = vld [vmem:[%s11392_s5] ss:$16 sps:$4 sm:$0xff]   ;;  %v9723_v50 = vld [vmem:[%s11392_s5 + $0x8] ss:$16 sps:$4 sm:$0xff]  }
 0x6fd   :  { %8425 = vtanh.f32 %v2556_v11  ;;  %v9728_v47 = vld [vmem:[%s11392_s5 + $0xc] ss:$16 sps:$4 sm:$0xff]   ;;  %v9735_v57 = vld [vmem:[%s11392_s5 + $0x24] ss:$16 sps:$4 sm:$0xff]   ;;  %v9746_v28 = vld [vmem:[%s11392_s5 + $0x20] ss:$16 sps:$4 sm:$0xff]  }
 0x6fe   :  { %8427 = vtanh.f32 %v2550_v22  ;;  %v8162_v22 = vld [vmem:[%s11391_s4 + $0xec] ss:$16 sps:$4 sm:$0xff]   ;;  %v9751_v26 = vld [vmem:[%s11392_s5 + $0x28] ss:$16 sps:$4 sm:$0xff]   ;;  %v9759_v30 = vld [vmem:[%s11392_s5 + $0x44] ss:$16 sps:$4 sm:$0xff]  }
 0x6ff   :  { %8429 = vtanh.f32 %v2561_v35  ;;  %v9740_v3 = vld [vmem:[%s11392_s5 + $0x2c] ss:$16 sps:$4 sm:$0xff]   ;;  %v9770_v12 = vld [vmem:[%s11392_s5 + $0x40] ss:$16 sps:$4 sm:$0xff]   ;;  %v9775_v32 = vld [vmem:[%s11392_s5 + $0x48] ss:$16 sps:$4 sm:$0xff]  }
 0x700   :  { %v9764_v17 = vld [vmem:[%s11392_s5 + $0x4c] ss:$16 sps:$4 sm:$0xff]   ;;  %v9782_v11 = vld [vmem:[%s11392_s5 + $0x60] ss:$16 sps:$4 sm:$0xff]   ;;  %v9787_v35 = vld [vmem:[%s11392_s5 + $0x64] ss:$16 sps:$4 sm:$0xff]  }
 0x706   :  { %v8424_v40 = vpop.eup %8423 }
 0x707   :  { %v8426_v10 = vpop.eup %8425  ;;  %v2554_v19 = vadd.f32 1.0, %v8424_v40  ;;  %v9793_v40 = vld [vmem:[%s11392_s5 + $0x68] ss:$16 sps:$4 sm:$0xff]  }
 0x708   :  { %v2558_v25 = vadd.f32 1.0, %v8426_v10  ;;  %v8428_v29 = vpop.eup %8427  ;;  %v9798_v10 = vld [vmem:[%s11392_s5 + $0x6c] ss:$16 sps:$4 sm:$0xff]  }
 0x709   :  { %v2555_v55 = vmul.f32 0.5, %v2554_v19  ;;  %v8430_v6 = vpop.eup %8429  ;;  %v9807_v19 = vld [vmem:[%s11392_s5 + $0x84] ss:$16 sps:$4 sm:$0xff]  }
 0x70a   :  { %v2559_v36 = vmul.f32 0.5, %v2558_v25  ;;  %v2563_v8 = vadd.f32 1.0, %v8430_v6  ;;  %v9812_v25 = vld [vmem:[%s11392_s5 + $0x8c] ss:$16 sps:$4 sm:$0xff]   ;;  %v9847_v6 = vld [vmem:[%s11392_s5 + $0xa8] ss:$16 sps:$4 sm:$0xff]  }
 0x70b   :  { %v2566_v37 = vmul.f32 %v8428_v29, %v2555_v55  ;;  %v9818_v55 = vld [vmem:[%s11392_s5 + $0x80] ss:$16 sps:$4 sm:$0xff]   ;;  %v9823_v29 = vld [vmem:[%s11392_s5 + $0x88] ss:$16 sps:$4 sm:$0xff]  }
 0x70c   :  { %v2565_v38 = vmul.f32 %v2559_v36, %v9548_v59  ;;  %v2564_v9 = vmul.f32 0.5, %v2563_v8  ;;  %v8141_v59 = vld [vmem:[%s11391_s4 + $0x84] ss:$16 sps:$4 sm:$0xff]  }
 0x70d   :  { %v9831_v36 = vld [vmem:[%s11392_s5 + $0xa4] ss:$16 sps:$4 sm:$0xff]  }
 0x70e   :  { %v9598_v51 = vadd.f32 %v2566_v37, %v2565_v38  ;;  %v9836_v37 = vld [vmem:[%s11392_s5 + $0xac] ss:$16 sps:$4 sm:$0xff]   ;;  %v9842_v38 = vld [vmem:[%s11392_s5 + $0xa0] ss:$16 sps:$4 sm:$0xff]   ;;  %v9855_v8 = vld [vmem:[%s11392_s5 + $0xc4] ss:$16 sps:$4 sm:$0xff]  }
 0x710   :  { %8431 = vtanh.f32 %v9598_v51 }
 0x71a   :  { %v8432_v60 = vpop.eup %8431 }
 0x71b   :  { %v9601_v39 = vmul.f32 %v8432_v60, %v2564_v9  ;;  %v9860_v9 = vld [vmem:[%s11392_s5 + $0xcc] ss:$16 sps:$4 sm:$0xff]   ;;  %v9866_v60 = vld [vmem:[%s11392_s5 + $0xc0] ss:$16 sps:$4 sm:$0xff]  }
 0x71d   :  { %v2575_v44 = vpack.c.bf16 %v9601_v39, %v9601_v39 }
 0x71f   :  { %2801 = vmatmul.mubr.bf16.vlgmr.msra.gmra.mrb[44].mxu0 %v2575_v44  ;;  %2842 = vmatmul.mubr.bf16.vlgmr.msra.gmra.mrb[44].mxu1 %v2575_v44  ;;  %v9884_v44 = vld [vmem:[%s11392_s5 + $0xec] ss:$16 sps:$4 sm:$0xff]  }
 0x720   :  { %3100 = vmatpush1.bf16.msra.mxu0 %v8115_v42  ;;  %3173 = vmatpush1.bf16.msra.mxu1 %v8118_v43  ;;  %v9871_v42 = vld [vmem:[%s11392_s5 + $0xc8] ss:$16 sps:$4 sm:$0xff]   ;;  %v9879_v43 = vld [vmem:[%s11392_s5 + $0xe4] ss:$16 sps:$4 sm:$0xff]  }
 0x721   :  { %3101 = vmatprep.subr.bf16.mxu0 %v8123_v46  ;;  %3174 = vmatprep.subr.bf16.mxu1 %v8126_v7  ;;  %v9890_v46 = vld [vmem:[%s11392_s5 + $0xe0] ss:$16 sps:$4 sm:$0xff]   ;;  %v9895_v7 = vld [vmem:[%s11392_s5 + $0xe8] ss:$16 sps:$4 sm:$0xff]  }
 0x722   :  { %3131 = vmatprep.mubr.bf16.mxu0 %v11438_v45  ;;  %3204 = vmatprep.mubr.bf16.mxu1 %v11438_v45 }
 0x724   :  { %3102 = vmatpush1.bf16.msra.mxu0 %v8121_v13  ;;  %3175 = vmatpush1.bf16.msra.mxu1 %v8124_v48 }
 0x725   :  { %3103 = vmatprep.subr.bf16.mxu0 %v8129_v4  ;;  %3176 = vmatprep.subr.bf16.mxu1 %v8132_v49  ;;  %v11456_v4 = vld [vmem:[#allocation25_spill] sm:$0xff] }
 0x728   :  { %3104 = vmatpush1.bf16.msra.mxu0 %v8127_v52  ;;  %3177 = vmatpush1.bf16.msra.mxu1 %v8130_v53  ;;  %v11457_v52 = vld [vmem:[#allocation26_spill] sm:$0xff] }
 0x729   :  { %3105 = vmatprep.subr.bf16.mxu0 %v8135_v56  ;;  %3178 = vmatprep.subr.bf16.mxu1 %v8138_v54 }
 0x72c   :  { %3106 = vmatpush1.bf16.msra.mxu0 %v8133_v58  ;;  %3179 = vmatpush1.bf16.msra.mxu1 %v8136_v41  ;;  %v11458_v58 = vld [vmem:[#allocation27_spill] sm:$0xff] }
 0x72d   :  { %3107 = vmatprep.subr.bf16.mxu0 %v8141_v59  ;;  %3180 = vmatprep.subr.bf16.mxu1 %v8144_v61  ;;  %v11459_v59 = vld [vmem:[#allocation28_spill] sm:$0xff] }
 0x730   :  { %3108 = vmatpush1.bf16.msra.mxu0 %v8139_v62  ;;  %3181 = vmatpush1.bf16.msra.mxu1 %v8142_v63 }
 0x731   :  { %3109 = vmatprep.subr.bf16.mxu0 %v8147_v0  ;;  %3182 = vmatprep.subr.bf16.mxu1 %v8150_v5 }
 0x734   :  { %3110 = vmatpush1.bf16.msra.mxu0 %v8145_v15  ;;  %3183 = vmatpush1.bf16.msra.mxu1 %v8148_v27 }
 0x735   :  { %3111 = vmatprep.subr.bf16.mxu0 %v8153_v31  ;;  %3184 = vmatprep.subr.bf16.mxu1 %v8156_v16 }
 0x738   :  { %3112 = vmatpush1.bf16.msra.mxu0 %v8151_v18  ;;  %3185 = vmatpush1.bf16.msra.mxu1 %v8154_v20 }
 0x739   :  { %3113 = vmatprep.subr.bf16.mxu0 %v8159_v21  ;;  %3186 = vmatprep.subr.bf16.mxu1 %v8162_v22 }
 0x73c   :  { %3114 = vmatpush1.bf16.msra.mxu0 %v8157_v23  ;;  %3187 = vmatpush1.bf16.msra.mxu1 %v8160_v14 }
 0x73d   :  { %3473 = vmatprep.subr.bf16.mxu0 %v9712_v1  ;;  %3514 = vmatprep.subr.bf16.mxu1 %v9728_v47 }
 0x73f   :  { %3132 = vmatmul.mubr.bf16.vlgmr.msra.gmra.mrb[48].mxu0 %v2882_v33  ;;  %3205 = vmatmul.mubr.bf16.vlgmr.msra.gmra.mrb[48].mxu1 %v2882_v33 }
 0x740   :  { %3141 = vmatprep.mubr.bf16.mxu0 %v11438_v45  ;;  %3214 = vmatprep.mubr.bf16.mxu1 %v11438_v45 }
 0x741   :  { %3474 = vmatpush1.bf16.msra.mxu0 %v9717_v2  ;;  %3515 = vmatpush1.bf16.msra.mxu1 %v9723_v50 }
 0x742   :  { %3475 = vmatprep.subr.bf16.mxu0 %v9735_v57  ;;  %3516 = vmatprep.subr.bf16.mxu1 %v9740_v3 }
 0x745   :  { %3476 = vmatpush1.bf16.msra.mxu0 %v9746_v28  ;;  %3517 = vmatpush1.bf16.msra.mxu1 %v9751_v26 }
 0x746   :  { %3477 = vmatprep.subr.bf16.mxu0 %v9759_v30  ;;  %3518 = vmatprep.subr.bf16.mxu1 %v9764_v17 }
 0x747   :  { %3142 = vmatmul.mubr.bf16.gmra.mrb[52].mxu0 %v2883_v34  ;;  %3215 = vmatmul.mubr.bf16.gmra.mrb[52].mxu1 %v2883_v34 }
 0x748   :  { %3151 = vmatprep.mubr.bf16.mxu0 %v11438_v45  ;;  %3224 = vmatprep.mubr.bf16.mxu1 %v11438_v45 }
 0x749   :  { %3478 = vmatpush1.bf16.msra.mxu0 %v9770_v12  ;;  %3519 = vmatpush1.bf16.msra.mxu1 %v9775_v32 }
 0x74a   :  { %3479 = vmatprep.subr.bf16.mxu0 %v9787_v35  ;;  %3520 = vmatprep.subr.bf16.mxu1 %v9798_v10 }
 0x74d   :  { %3480 = vmatpush1.bf16.msra.mxu0 %v9782_v11  ;;  %3521 = vmatpush1.bf16.msra.mxu1 %v9793_v40 }
 0x74e   :  { %3481 = vmatprep.subr.bf16.mxu0 %v9807_v19  ;;  %3522 = vmatprep.subr.bf16.mxu1 %v9812_v25 }
 0x74f   :  { %3152 = vmatmul.mubr.bf16.gmra.mrb[56].mxu0 %v2884_v24  ;;  %3225 = vmatmul.mubr.bf16.gmra.mrb[56].mxu1 %v2884_v24 }
 0x750   :  { %3161 = vmatprep.mubr.bf16.mxu0 %v11438_v45  ;;  %3234 = vmatprep.mubr.bf16.mxu1 %v11438_v45 }
 0x751   :  { %3482 = vmatpush1.bf16.msra.mxu0 %v9818_v55  ;;  %3523 = vmatpush1.bf16.msra.mxu1 %v9823_v29 }
 0x752   :  { %3483 = vmatprep.subr.bf16.mxu0 %v9831_v36  ;;  %3524 = vmatprep.subr.bf16.mxu1 %v9836_v37 }
 0x755   :  { %3484 = vmatpush1.bf16.msra.mxu0 %v9842_v38  ;;  %3525 = vmatpush1.bf16.msra.mxu1 %v9847_v6 }
 0x756   :  { %3485 = vmatprep.subr.bf16.mxu0 %v9855_v8  ;;  %3526 = vmatprep.subr.bf16.mxu1 %v9860_v9 }
 0x759   :  { %3486 = vmatpush1.bf16.msra.mxu0 %v9866_v60  ;;  %3527 = vmatpush1.bf16.msra.mxu1 %v9871_v42 }
 0x75a   :  { %3487 = vmatprep.subr.bf16.mxu0 %v9879_v43  ;;  %3528 = vmatprep.subr.bf16.mxu1 %v9884_v44 }
 0x75d   :  { %3488 = vmatpush1.bf16.msra.mxu0 %v9890_v46  ;;  %3529 = vmatpush1.bf16.msra.mxu1 %v9895_v7 }
 0x75e   :  { %3775 = vmatprep.subr.bf16.mxu0 %v9712_v1  ;;  %3816 = vmatprep.subr.bf16.mxu1 %v9728_v47 }
 0x7f2   :  { %v2802_v13 = vpop.f32.mrb[44].mxu0  ;;  %v2843_v48 = vpop.f32.mrb[44].mxu1 }
 0x7f3   :  { %v2850_v49 = vadd.f32 %v2802_v13, %v11456_v4  ;;  %v2852_v53 = vadd.f32 %v2843_v48, %v11457_v52  ;;  %v2804_v56 = vpop.f32.mrb[45].mxu0  ;;  %v2845_v54 = vpop.f32.mrb[45].mxu1 }
 0x7f4   :  { %v2851_v41 = vadd.f32 %v2804_v56, %v11458_v58  ;;  %v2853_v61 = vadd.f32 %v2845_v54, %v11459_v59  ;;  %v2806_v62 = vpop.f32.mrb[46].mxu0  ;;  %v2847_v63 = vpop.f32.mrb[46].mxu1 }
 0x7f5   :  { %v2854_v0 = vmul.f32 0.5, %v2850_v49  ;;  %v2807_v5 = vpop.f32.mrb[47].mxu0  ;;  %v2848_v15 = vpop.f32.mrb[47].mxu1 }
 0x7f6   :  { %v2858_v27 = vmul.f32 0.5, %v2851_v41  ;;  %v2863_v31 = vmul.f32 0.5, %v2853_v61 }
 0x7f7   :  { %8433 = vtanh.f32 %v2854_v0 }
 0x7f8   :  { %8435 = vtanh.f32 %v2858_v27 }
 0x7f9   :  { %8437 = vtanh.f32 %v2852_v53 }
 0x7fa   :  { %8439 = vtanh.f32 %v2863_v31 }
 0x801   :  { %v8434_v16 = vpop.eup %8433 }
 0x802   :  { %v8436_v18 = vpop.eup %8435  ;;  %v2856_v20 = vadd.f32 1.0, %v8434_v16 }
 0x803   :  { %v2860_v21 = vadd.f32 1.0, %v8436_v18  ;;  %v8438_v23 = vpop.eup %8437 }
 0x804   :  { %v2857_v22 = vmul.f32 0.5, %v2856_v20  ;;  %v8440_v13 = vpop.eup %8439 }
 0x805   :  { %v2861_v14 = vmul.f32 0.5, %v2860_v21  ;;  %v2865_v48 = vadd.f32 1.0, %v8440_v13 }
 0x806   :  { %v2868_v33 = vmul.f32 %v8438_v23, %v2857_v22 }
 0x807   :  { %v2867_v34 = vmul.f32 %v2861_v14, %v9598_v51  ;;  %v2866_v56 = vmul.f32 0.5, %v2865_v48 }
 0x809   :  { %v2869_v24 = vadd.f32 %v2868_v33, %v2867_v34 }
 0x80b   :  { %8441 = vtanh.f32 %v2869_v24  ;;  %v2873_v24 = vld [vmem:[%s11393_s6] sm:$0xf] }
 0x812   :  { %v9908_v4 = vpop.f32.mrb[48].mxu0  ;;  %v9910_v49 = vpop.f32.mrb[48].mxu1 }
 0x813   :  { %v9912_v52 = vpop.f32.mrb[49].mxu0  ;;  %v9914_v53 = vpop.f32.mrb[49].mxu1 }
 0x814   :  { %v9916_v54 = vpop.f32.mrb[50].mxu0  ;;  %v9918_v58 = vpop.f32.mrb[50].mxu1 }
 0x815   :  { %v8442_v41 = vpop.eup %8441  ;;  %v9920_v59 = vpop.f32.mrb[51].mxu0 }
 0x816   :  { %v9922_v51 = vpop.f32.mrb[51].mxu1  ;;  %v2871_v61 = vmul.f32 %v8442_v41, %v2866_v56 }
 0x818   :  { %v2885_v62 = vpack.c.bf16 %v2871_v61, %v9601_v39 }
 0x81a   :  { %v9925_v63 = vpop.f32.mrb[52].mxu0  ;;  %v9927_v0 = vpop.f32.mrb[52].mxu1  ;;  %3162 = vmatmul.mubr.bf16.gmra.mrb[60].mxu0 %v2885_v62  ;;  %3235 = vmatmul.mubr.bf16.gmra.mrb[60].mxu1 %v2885_v62 }
 0x81b   :  { %11460 = vst [vmem:[#allocation8_spill] sm:$0xff] %v9925_v63  ;;  %11461 = vst [vmem:[#allocation9_spill] sm:$0xff] %v9927_v0  ;;  %v9929_v5 = vpop.f32.mrb[53].mxu0  ;;  %v9931_v15 = vpop.f32.mrb[53].mxu1  ;;  %3505 = vmatprep.mubr.bf16.mxu0 %v11438_v45  ;;  %3546 = vmatprep.mubr.bf16.mxu1 %v11438_v45 }
 0x81c   :  { %11462 = vst [vmem:[#allocation10_spill] sm:$0xff] %v9929_v5  ;;  %11463 = vst [vmem:[#allocation11_spill] sm:$0xff] %v9931_v15  ;;  %v9935_v27 = vpop.f32.mrb[54].mxu0  ;;  %v9937_v31 = vpop.f32.mrb[54].mxu1 }
 0x81d   :  { %11464 = vst [vmem:[#allocation12_spill] sm:$0xff] %v9935_v27  ;;  %11465 = vst [vmem:[#allocation13_spill] sm:$0xff] %v9937_v31  ;;  %v9939_v16 = vpop.f32.mrb[55].mxu0  ;;  %v9941_v39 = vpop.f32.mrb[55].mxu1 }
 0x81e   :  { %11466 = vst [vmem:[#allocation14_spill] sm:$0xff] %v9939_v16  ;;  %11467 = vst [vmem:[#allocation15_spill] sm:$0xff] %v9941_v39 }
 0x822   :  { %v9943_v18 = vpop.f32.mrb[56].mxu0  ;;  %v9945_v20 = vpop.f32.mrb[56].mxu1  ;;  %3506 = vmatmul.mubr.bf16.vlgmr.msra.gmra.mrb[64].mxu0 %v11438_v45  ;;  %3547 = vmatmul.mubr.bf16.vlgmr.msra.gmra.mrb[64].mxu1 %v11438_v45 }
 0x823   :  { %11468 = vst [vmem:[#allocation16_spill] sm:$0xff] %v9943_v18  ;;  %11469 = vst [vmem:[#allocation17_spill] sm:$0xff] %v9945_v20  ;;  %v9949_v21 = vpop.f32.mrb[57].mxu0  ;;  %v9951_v22 = vpop.f32.mrb[57].mxu1  ;;  %3776 = vmatpush1.bf16.msra.mxu0 %v9717_v2  ;;  %3817 = vmatpush1.bf16.msra.mxu1 %v9723_v50 }
 0x824   :  { %11470 = vst [vmem:[#allocation18_spill] sm:$0xff] %v9949_v21  ;;  %11471 = vst [vmem:[#allocation19_spill] sm:$0xff] %v9951_v22  ;;  %v9955_v23 = vpop.f32.mrb[58].mxu0  ;;  %v9957_v14 = vpop.f32.mrb[58].mxu1  ;;  %3777 = vmatprep.subr.bf16.mxu0 %v9735_v57  ;;  %3818 = vmatprep.subr.bf16.mxu1 %v9740_v3 }
 0x825   :  { %11472 = vst [vmem:[#allocation20_spill] sm:$0xff] %v9955_v23  ;;  %11473 = vst [vmem:[#allocation21_spill] sm:$0xff] %v9957_v14  ;;  %v9961_v33 = vpop.f32.mrb[59].mxu0  ;;  %v9963_v34 = vpop.f32.mrb[59].mxu1  ;;  %3807 = vmatprep.mubr.bf16.mxu0 %v11438_v45  ;;  %3848 = vmatprep.mubr.bf16.mxu1 %v11438_v45  ;;  %v11483_v14 = vld [vmem:[#allocation5_spill] sm:$0xff] }
 0x826   :  { %11474 = vst [vmem:[#allocation22_spill] sm:$0xff] %v9961_v33  ;;  %11475 = vst [vmem:[#allocation23_spill] sm:$0xff] %v9963_v34  ;;  %v11482_v34 = vld [vmem:[#allocation4_spill] sm:$0xff]  ;;  %v10014_v23 = vrot.slane %v2873_v24, %v11483_v14 }
 0x827   :  { %3778 = vmatpush1.bf16.msra.mxu0 %v9746_v28  ;;  %3819 = vmatpush1.bf16.msra.mxu1 %v9751_v26  ;;  %v10011_v33 = vrot.slane %v2873_v24, %v11482_v34 }
 0x828   :  { %3779 = vmatprep.subr.bf16.mxu0 %v9759_v30  ;;  %3820 = vmatprep.subr.bf16.mxu1 %v9764_v17  ;;  %v3207_v34 = vadd.f32 %v9910_v49, %v10014_v23 }
 0x82b   :  { %3780 = vmatpush1.bf16.msra.mxu0 %v9770_v12  ;;  %3821 = vmatpush1.bf16.msra.mxu1 %v9775_v32 }
 0x82c   :  { %3781 = vmatprep.subr.bf16.mxu0 %v9787_v35  ;;  %3822 = vmatprep.subr.bf16.mxu1 %v9798_v10 }
 0x82f   :  { %3782 = vmatpush1.bf16.msra.mxu0 %v9782_v11  ;;  %3823 = vmatpush1.bf16.msra.mxu1 %v9793_v40 }
 0x830   :  { %3783 = vmatprep.subr.bf16.mxu0 %v9807_v19  ;;  %3824 = vmatprep.subr.bf16.mxu1 %v9812_v25 }
 0x833   :  { %3784 = vmatpush1.bf16.msra.mxu0 %v9818_v55  ;;  %3825 = vmatpush1.bf16.msra.mxu1 %v9823_v29 }
 0x834   :  { %3785 = vmatprep.subr.bf16.mxu0 %v9831_v36  ;;  %3826 = vmatprep.subr.bf16.mxu1 %v9836_v37 }
 0x837   :  { %3786 = vmatpush1.bf16.msra.mxu0 %v9842_v38  ;;  %3827 = vmatpush1.bf16.msra.mxu1 %v9847_v6 }
 0x838   :  { %3787 = vmatprep.subr.bf16.mxu0 %v9855_v8  ;;  %3828 = vmatprep.subr.bf16.mxu1 %v9860_v9 }
 0x83b   :  { %3788 = vmatpush1.bf16.msra.mxu0 %v9866_v60  ;;  %3829 = vmatpush1.bf16.msra.mxu1 %v9871_v42 }
 0x83c   :  { %3789 = vmatprep.subr.bf16.mxu0 %v9879_v43  ;;  %3830 = vmatprep.subr.bf16.mxu1 %v9884_v44 }
 0x83f   :  { %3790 = vmatpush1.bf16.msra.mxu0 %v9890_v46  ;;  %3831 = vmatpush1.bf16.msra.mxu1 %v9895_v7 }
 0x840   :  { %4077 = vmatprep.subr.bf16.mxu0 %v9712_v1  ;;  %4118 = vmatprep.subr.bf16.mxu1 %v9728_v47 }
 0x8ed   :  { %v9998_v13 = vpop.f32.mrb[60].mxu0  ;;  %v10000_v48 = vpop.f32.mrb[60].mxu1 }
 0x8ee   :  { %11476 = vst [vmem:[#allocation24_spill] sm:$0xff] %v9998_v13  ;;  %11477 = vst [vmem:[#allocation25_spill] sm:$0xff] %v10000_v48  ;;  %v10002_v56 = vpop.f32.mrb[61].mxu0  ;;  %v10004_v41 = vpop.f32.mrb[61].mxu1  ;;  %v11486_v13 = vld [vmem:[#allocation6_spill] sm:$0xff] }
 0x8ef   :  { %11478 = vst [vmem:[#allocation26_spill] sm:$0xff] %v10002_v56  ;;  %11479 = vst [vmem:[#allocation27_spill] sm:$0xff] %v10004_v41  ;;  %v10006_v61 = vpop.f32.mrb[62].mxu0  ;;  %v10008_v62 = vpop.f32.mrb[62].mxu1  ;;  %v10021_v48 = vrot.slane %v2873_v24, %v11486_v13  ;;  %v11487_v56 = vld [vmem:[#allocation7_spill] sm:$0xff] }
 0x8f0   :  { %11480 = vst [vmem:[#allocation28_spill] sm:$0xff] %v10006_v61  ;;  %11481 = vst [vmem:[#allocation29_spill] sm:$0xff] %v10008_v62  ;;  %v10016_v22 = vpop.f32.mrb[63].mxu0  ;;  %v10018_v21 = vpop.f32.mrb[63].mxu1  ;;  %v10024_v20 = vrot.slane %v2873_v24, %v11487_v56  ;;  %v3134_v61 = vadd.f32 %v9908_v4, %v10011_v33 }
 0x8f1   :  { %11484 = vst [vmem:[#allocation30_spill] sm:$0xff] %v10016_v22  ;;  %11485 = vst [vmem:[#allocation31_spill] sm:$0xff] %v10018_v21  ;;  %v3136_v14 = vadd.f32 %v9912_v52, %v10021_v48 }
 0x8f2   :  { %v3209_v22 = vadd.f32 %v9914_v53, %v10024_v20 }
 0x8f5   :  { %v3507_v62 = vpop.f32.mrb[64].mxu0  ;;  %v3548_v21 = vpop.f32.mrb[64].mxu1 }
 0x8f6   :  { %v3555_v41 = vadd.f32 %v3507_v62, %v3134_v61  ;;  %v3557_v13 = vadd.f32 %v3548_v21, %v3207_v34  ;;  %v3509_v18 = vpop.f32.mrb[65].mxu0  ;;  %v3550_v39 = vpop.f32.mrb[65].mxu1 }
 0x8f7   :  { %v3556_v24 = vadd.f32 %v3509_v18, %v3136_v14  ;;  %v3558_v56 = vadd.f32 %v3550_v39, %v3209_v22  ;;  %v3511_v16 = vpop.f32.mrb[66].mxu0  ;;  %v3552_v31 = vpop.f32.mrb[66].mxu1 }
 0x8f8   :  { %v3559_v4 = vmul.f32 0.5, %v3555_v41  ;;  %v3512_v27 = vpop.f32.mrb[67].mxu0  ;;  %v3553_v15 = vpop.f32.mrb[67].mxu1 }
 0x8f9   :  { %v3563_v49 = vmul.f32 0.5, %v3556_v24  ;;  %v3568_v52 = vmul.f32 0.5, %v3558_v56  ;;  %v3213_v56 = vadd.f32 %v9922_v51, %v10024_v20 }
 0x8fa   :  { %8443 = vtanh.f32 %v3559_v4 }
 0x8fb   :  { %8445 = vtanh.f32 %v3563_v49 }
 0x8fc   :  { %8447 = vtanh.f32 %v3557_v13  ;;  %v3140_v13 = vadd.f32 %v9920_v59, %v10021_v48 }
 0x8fd   :  { %8449 = vtanh.f32 %v3568_v52 }
 0x904   :  { %v8444_v5 = vpop.eup %8443 }
 0x905   :  { %v8446_v53 = vpop.eup %8445  ;;  %v3561_v0 = vadd.f32 1.0, %v8444_v5 }
 0x906   :  { %v3565_v63 = vadd.f32 1.0, %v8446_v53  ;;  %v8448_v34 = vpop.eup %8447 }
 0x907   :  { %v3562_v21 = vmul.f32 0.5, %v3561_v0  ;;  %v8450_v15 = vpop.eup %8449  ;;  %v3211_v0 = vadd.f32 %v9918_v58, %v10014_v23 }
 0x908   :  { %v3566_v61 = vmul.f32 0.5, %v3565_v63  ;;  %v3570_v27 = vadd.f32 1.0, %v8450_v15  ;;  %v3138_v63 = vadd.f32 %v9916_v54, %v10011_v33 }
 0x909   :  { %v3573_v18 = vmul.f32 %v8448_v34, %v3562_v21 }
 0x90a   :  { %v3572_v39 = vmul.f32 0.0, %v3566_v61  ;;  %v3571_v31 = vmul.f32 0.5, %v3570_v27 }
 0x90c   :  { %v10034_v16 = vadd.f32 %v3573_v18, %v3572_v39 }
 0x90e   :  { %8451 = vtanh.f32 %v10034_v16 }
 0x918   :  { %v8452_v22 = vpop.eup %8451 }
 0x919   :  { %v10037_v14 = vmul.f32 %v8452_v22, %v3571_v31 }
 0x91b   :  { %v3582_v5 = vpack.c.bf16 %v10037_v14, %v10037_v14 }
 0x91d   :  { %3808 = vmatmul.mubr.bf16.vlgmr.msra.gmra.mrb[68].mxu0 %v3582_v5  ;;  %3849 = vmatmul.mubr.bf16.vlgmr.msra.gmra.mrb[68].mxu1 %v3582_v5 }
 0x91e   :  { %4078 = vmatpush1.bf16.msra.mxu0 %v9717_v2  ;;  %4119 = vmatpush1.bf16.msra.mxu1 %v9723_v50 }
 0x91f   :  { %4079 = vmatprep.subr.bf16.mxu0 %v9735_v57  ;;  %4120 = vmatprep.subr.bf16.mxu1 %v9740_v3 }
 0x920   :  { %4109 = vmatprep.mubr.bf16.mxu0 %v11438_v45  ;;  %4150 = vmatprep.mubr.bf16.mxu1 %v11438_v45 }
 0x922   :  { %4080 = vmatpush1.bf16.msra.mxu0 %v9746_v28  ;;  %4121 = vmatpush1.bf16.msra.mxu1 %v9751_v26 }
 0x923   :  { %4081 = vmatprep.subr.bf16.mxu0 %v9759_v30  ;;  %4122 = vmatprep.subr.bf16.mxu1 %v9764_v17 }
 0x926   :  { %4082 = vmatpush1.bf16.msra.mxu0 %v9770_v12  ;;  %4123 = vmatpush1.bf16.msra.mxu1 %v9775_v32 }
 0x927   :  { %4083 = vmatprep.subr.bf16.mxu0 %v9787_v35  ;;  %4124 = vmatprep.subr.bf16.mxu1 %v9798_v10 }
 0x92a   :  { %4084 = vmatpush1.bf16.msra.mxu0 %v9782_v11  ;;  %4125 = vmatpush1.bf16.msra.mxu1 %v9793_v40 }
 0x92b   :  { %4085 = vmatprep.subr.bf16.mxu0 %v9807_v19  ;;  %4126 = vmatprep.subr.bf16.mxu1 %v9812_v25 }
 0x92e   :  { %4086 = vmatpush1.bf16.msra.mxu0 %v9818_v55  ;;  %4127 = vmatpush1.bf16.msra.mxu1 %v9823_v29 }
 0x92f   :  { %4087 = vmatprep.subr.bf16.mxu0 %v9831_v36  ;;  %4128 = vmatprep.subr.bf16.mxu1 %v9836_v37 }
 0x932   :  { %4088 = vmatpush1.bf16.msra.mxu0 %v9842_v38  ;;  %4129 = vmatpush1.bf16.msra.mxu1 %v9847_v6 }
 0x933   :  { %4089 = vmatprep.subr.bf16.mxu0 %v9855_v8  ;;  %4130 = vmatprep.subr.bf16.mxu1 %v9860_v9 }
 0x936   :  { %4090 = vmatpush1.bf16.msra.mxu0 %v9866_v60  ;;  %4131 = vmatpush1.bf16.msra.mxu1 %v9871_v42 }
 0x937   :  { %4091 = vmatprep.subr.bf16.mxu0 %v9879_v43  ;;  %4132 = vmatprep.subr.bf16.mxu1 %v9884_v44 }
 0x93a   :  { %4092 = vmatpush1.bf16.msra.mxu0 %v9890_v46  ;;  %4133 = vmatpush1.bf16.msra.mxu1 %v9895_v7 }
 0x93b   :  { %4379 = vmatprep.subr.bf16.mxu0 %v9712_v1  ;;  %4420 = vmatprep.subr.bf16.mxu1 %v9728_v47 }
 0x9f0   :  { %v3809_v41 = vpop.f32.mrb[68].mxu0  ;;  %v3850_v62 = vpop.f32.mrb[68].mxu1 }
 0x9f1   :  { %v3857_v24 = vadd.f32 %v3809_v41, %v3138_v63  ;;  %v3859_v4 = vadd.f32 %v3850_v62, %v3211_v0  ;;  %v3811_v49 = vpop.f32.mrb[69].mxu0  ;;  %v3852_v1 = vpop.f32.mrb[69].mxu1 }
 0x9f2   :  { %v3858_v52 = vadd.f32 %v3811_v49, %v3140_v13  ;;  %v3860_v47 = vadd.f32 %v3852_v1, %v3213_v56  ;;  %v3813_v53 = vpop.f32.mrb[70].mxu0  ;;  %v3854_v21 = vpop.f32.mrb[70].mxu1 }
 0x9f3   :  { %v3861_v54 = vmul.f32 0.5, %v3857_v24  ;;  %v3814_v34 = vpop.f32.mrb[71].mxu0  ;;  %v3855_v61 = vpop.f32.mrb[71].mxu1 }
 0x9f4   :  { %v3865_v58 = vmul.f32 0.5, %v3858_v52  ;;  %v3870_v59 = vmul.f32 0.5, %v3860_v47  ;;  %v10144_v61 = vld [vmem:[%s11392_s5 + $0x4] ss:$16 sps:$4 sm:$0xff]  }
 0x9f5   :  { %8453 = vtanh.f32 %v3861_v54 }
 0x9f6   :  { %8455 = vtanh.f32 %v3865_v58  ;;  %v10149_v58 = vld [vmem:[%s11392_s5 + $0xc] ss:$16 sps:$4 sm:$0xff]  }
 0x9f7   :  { %8457 = vtanh.f32 %v3859_v4 }
 0x9f8   :  { %8459 = vtanh.f32 %v3870_v59  ;;  %v10154_v59 = vld [vmem:[%s11392_s5] ss:$16 sps:$4 sm:$0xff]  }
 0x9ff   :  { %v8454_v18 = vpop.eup %8453 }
 0xa00   :  { %v8456_v51 = vpop.eup %8455  ;;  %v3863_v39 = vadd.f32 1.0, %v8454_v18  ;;  %v10159_v18 = vld [vmem:[%s11392_s5 + $0x8] ss:$16 sps:$4 sm:$0xff]  }
 0xa01   :  { %v3867_v15 = vadd.f32 1.0, %v8456_v51  ;;  %v8458_v31 = vpop.eup %8457  ;;  %v10168_v51 = vld [vmem:[%s11392_s5 + $0x24] ss:$16 sps:$4 sm:$0xff]  }
 0xa02   :  { %v3864_v27 = vmul.f32 0.5, %v3863_v39  ;;  %v8460_v13 = vpop.eup %8459  ;;  %v10173_v39 = vld [vmem:[%s11392_s5 + $0x2c] ss:$16 sps:$4 sm:$0xff]  }
 0xa03   :  { %v3868_v22 = vmul.f32 0.5, %v3867_v15  ;;  %v3872_v56 = vadd.f32 1.0, %v8460_v13  ;;  %v10178_v15 = vld [vmem:[%s11392_s5 + $0x20] ss:$16 sps:$4 sm:$0xff]   ;;  %v10221_v13 = vld [vmem:[%s11392_s5 + $0x6c] ss:$16 sps:$4 sm:$0xff]  }
 0xa04   :  { %v3875_v5 = vmul.f32 %v8458_v31, %v3864_v27  ;;  %v10183_v27 = vld [vmem:[%s11392_s5 + $0x28] ss:$16 sps:$4 sm:$0xff]   ;;  %v10192_v31 = vld [vmem:[%s11392_s5 + $0x44] ss:$16 sps:$4 sm:$0xff]  }
 0xa05   :  { %v3874_v63 = vmul.f32 %v3868_v22, %v10034_v16  ;;  %v3873_v41 = vmul.f32 0.5, %v3872_v56  ;;  %v10197_v22 = vld [vmem:[%s11392_s5 + $0x4c] ss:$16 sps:$4 sm:$0xff]   ;;  %v10226_v56 = vld [vmem:[%s11392_s5 + $0x60] ss:$16 sps:$4 sm:$0xff]  }
 0xa07   :  { %v10084_v0 = vadd.f32 %v3875_v5, %v3874_v63  ;;  %v10202_v5 = vld [vmem:[%s11392_s5 + $0x40] ss:$16 sps:$4 sm:$0xff]   ;;  %v10207_v63 = vld [vmem:[%s11392_s5 + $0x48] ss:$16 sps:$4 sm:$0xff]  }
 0xa09   :  { %8461 = vtanh.f32 %v10084_v0 }
 0xa13   :  { %v8462_v62 = vpop.eup %8461 }
 0xa14   :  { %v10087_v24 = vmul.f32 %v8462_v62, %v3873_v41  ;;  %v10231_v41 = vld [vmem:[%s11392_s5 + $0x68] ss:$16 sps:$4 sm:$0xff]   ;;  %v10240_v62 = vld [vmem:[%s11392_s5 + $0x84] ss:$16 sps:$4 sm:$0xff]  }
 0xa16   :  { %v3884_v4 = vpack.c.bf16 %v10087_v24, %v10087_v24 }
 0xa18   :  { %4110 = vmatmul.mubr.bf16.vlgmr.msra.gmra.mrb[72].mxu0 %v3884_v4  ;;  %4151 = vmatmul.mubr.bf16.vlgmr.msra.gmra.mrb[72].mxu1 %v3884_v4  ;;  %v10245_v4 = vld [vmem:[%s11392_s5 + $0x8c] ss:$16 sps:$4 sm:$0xff]  }
 0xa19   :  { %4380 = vmatpush1.bf16.msra.mxu0 %v9717_v2  ;;  %4421 = vmatpush1.bf16.msra.mxu1 %v9723_v50  ;;  %v11488_v2 = vld [vmem:[#allocation8_spill] sm:$0xff] }
 0xa1a   :  { %4381 = vmatprep.subr.bf16.mxu0 %v9735_v57  ;;  %4422 = vmatprep.subr.bf16.mxu1 %v9740_v3  ;;  %v3144_v50 = vadd.f32 %v11488_v2, %v10011_v33  ;;  %v11489_v57 = vld [vmem:[#allocation9_spill] sm:$0xff]  ;;  %v10250_v2 = vld [vmem:[%s11392_s5 + $0x80] ss:$16 sps:$4 sm:$0xff]  }
 0xa1b   :  { %4411 = vmatprep.mubr.bf16.mxu0 %v11438_v45  ;;  %4452 = vmatprep.mubr.bf16.mxu1 %v11438_v45  ;;  %v3217_v3 = vadd.f32 %v11489_v57, %v10014_v23  ;;  %v10264_v57 = vld [vmem:[%s11392_s5 + $0xa4] ss:$16 sps:$4 sm:$0xff]  }
 0xa1d   :  { %4382 = vmatpush1.bf16.msra.mxu0 %v9746_v28  ;;  %4423 = vmatpush1.bf16.msra.mxu1 %v9751_v26  ;;  %v11490_v28 = vld [vmem:[#allocation10_spill] sm:$0xff] }
 0xa1e   :  { %4383 = vmatprep.subr.bf16.mxu0 %v9759_v30  ;;  %4424 = vmatprep.subr.bf16.mxu1 %v9764_v17  ;;  %v3146_v26 = vadd.f32 %v11490_v28, %v10021_v48  ;;  %v11491_v30 = vld [vmem:[#allocation11_spill] sm:$0xff]  ;;  %v10274_v28 = vld [vmem:[%s11392_s5 + $0xa0] ss:$16 sps:$4 sm:$0xff]  }
 0xa1f   :  { %v3219_v17 = vadd.f32 %v11491_v30, %v10024_v20  ;;  %v10288_v30 = vld [vmem:[%s11392_s5 + $0xc4] ss:$16 sps:$4 sm:$0xff]  }
 0xa21   :  { %4384 = vmatpush1.bf16.msra.mxu0 %v9770_v12  ;;  %4425 = vmatpush1.bf16.msra.mxu1 %v9775_v32 }
 0xa22   :  { %4385 = vmatprep.subr.bf16.mxu0 %v9787_v35  ;;  %4426 = vmatprep.subr.bf16.mxu1 %v9798_v10 }
 0xa25   :  { %4386 = vmatpush1.bf16.msra.mxu0 %v9782_v11  ;;  %4427 = vmatpush1.bf16.msra.mxu1 %v9793_v40 }
 0xa26   :  { %4387 = vmatprep.subr.bf16.mxu0 %v9807_v19  ;;  %4428 = vmatprep.subr.bf16.mxu1 %v9812_v25 }
 0xa29   :  { %4388 = vmatpush1.bf16.msra.mxu0 %v9818_v55  ;;  %4429 = vmatpush1.bf16.msra.mxu1 %v9823_v29 }
 0xa2a   :  { %4389 = vmatprep.subr.bf16.mxu0 %v9831_v36  ;;  %4430 = vmatprep.subr.bf16.mxu1 %v9836_v37 }
 0xa2d   :  { %4390 = vmatpush1.bf16.msra.mxu0 %v9842_v38  ;;  %4431 = vmatpush1.bf16.msra.mxu1 %v9847_v6 }
 0xa2e   :  { %4391 = vmatprep.subr.bf16.mxu0 %v9855_v8  ;;  %4432 = vmatprep.subr.bf16.mxu1 %v9860_v9 }
 0xa31   :  { %4392 = vmatpush1.bf16.msra.mxu0 %v9866_v60  ;;  %4433 = vmatpush1.bf16.msra.mxu1 %v9871_v42 }
 0xa32   :  { %4393 = vmatprep.subr.bf16.mxu0 %v9879_v43  ;;  %4434 = vmatprep.subr.bf16.mxu1 %v9884_v44 }
 0xa35   :  { %4394 = vmatpush1.bf16.msra.mxu0 %v9890_v46  ;;  %4435 = vmatpush1.bf16.msra.mxu1 %v9895_v7 }
 0xa36   :  { %4681 = vmatprep.subr.bf16.mxu0 %v10144_v61  ;;  %4722 = vmatprep.subr.bf16.mxu1 %v10149_v58 }
 0xaeb   :  { %v4111_v12 = vpop.f32.mrb[72].mxu0  ;;  %v4152_v32 = vpop.f32.mrb[72].mxu1 }
 0xaec   :  { %v4159_v11 = vadd.f32 %v4111_v12, %v3144_v50  ;;  %v4161_v35 = vadd.f32 %v4152_v32, %v3217_v3  ;;  %v4113_v40 = vpop.f32.mrb[73].mxu0  ;;  %v4154_v10 = vpop.f32.mrb[73].mxu1  ;;  %v10255_v50 = vld [vmem:[%s11392_s5 + $0x88] ss:$16 sps:$4 sm:$0xff]   ;;  %v10269_v3 = vld [vmem:[%s11392_s5 + $0xac] ss:$16 sps:$4 sm:$0xff]  }
 0xaed   :  { %v4160_v19 = vadd.f32 %v4113_v40, %v3146_v26  ;;  %v4162_v25 = vadd.f32 %v4154_v10, %v3219_v17  ;;  %v4115_v55 = vpop.f32.mrb[74].mxu0  ;;  %v4156_v29 = vpop.f32.mrb[74].mxu1  ;;  %v10279_v26 = vld [vmem:[%s11392_s5 + $0xa8] ss:$16 sps:$4 sm:$0xff]   ;;  %v10293_v17 = vld [vmem:[%s11392_s5 + $0xcc] ss:$16 sps:$4 sm:$0xff]  }
 0xaee   :  { %v4163_v36 = vmul.f32 0.5, %v4159_v11  ;;  %v4116_v37 = vpop.f32.mrb[75].mxu0  ;;  %v4157_v38 = vpop.f32.mrb[75].mxu1  ;;  %v10298_v12 = vld [vmem:[%s11392_s5 + $0xc0] ss:$16 sps:$4 sm:$0xff]   ;;  %v11493_v55 = vld [vmem:[#allocation13_spill] sm:$0xff] }
 0xaef   :  { %v4167_v6 = vmul.f32 0.5, %v4160_v19  ;;  %v4172_v8 = vmul.f32 0.5, %v4162_v25  ;;  %v10303_v32 = vld [vmem:[%s11392_s5 + $0xc8] ss:$16 sps:$4 sm:$0xff]   ;;  %v10312_v11 = vld [vmem:[%s11392_s5 + $0xe4] ss:$16 sps:$4 sm:$0xff]   ;;  %v3221_v29 = vadd.f32 %v11493_v55, %v10014_v23 }
 0xaf0   :  { %8463 = vtanh.f32 %v4163_v36  ;;  %v10322_v40 = vld [vmem:[%s11392_s5 + $0xe0] ss:$16 sps:$4 sm:$0xff]   ;;  %v10327_v10 = vld [vmem:[%s11392_s5 + $0xe8] ss:$16 sps:$4 sm:$0xff]  }
 0xaf1   :  { %8465 = vtanh.f32 %v4167_v6  ;;  %v11492_v19 = vld [vmem:[#allocation12_spill] sm:$0xff]  ;;  %v11494_v36 = vld [vmem:[#allocation14_spill] sm:$0xff]  ;;  %v11495_v38 = vld [vmem:[#allocation15_spill] sm:$0xff] }
 0xaf2   :  { %8467 = vtanh.f32 %v4161_v35  ;;  %v10317_v35 = vld [vmem:[%s11392_s5 + $0xec] ss:$16 sps:$4 sm:$0xff]   ;;  %v3148_v25 = vadd.f32 %v11492_v19, %v10011_v33  ;;  %v3150_v37 = vadd.f32 %v11494_v36, %v10021_v48  ;;  %v3223_v6 = vadd.f32 %v11495_v38, %v10024_v20 }
 0xaf3   :  { %8469 = vtanh.f32 %v4172_v8 }
 0xafa   :  { %v8464_v9 = vpop.eup %8463 }
 0xafb   :  { %v8466_v60 = vpop.eup %8465  ;;  %v4165_v42 = vadd.f32 1.0, %v8464_v9 }
 0xafc   :  { %v4169_v43 = vadd.f32 1.0, %v8466_v60  ;;  %v8468_v46 = vpop.eup %8467 }
 0xafd   :  { %v4166_v44 = vmul.f32 0.5, %v4165_v42  ;;  %v8470_v52 = vpop.eup %8469 }
 0xafe   :  { %v4170_v7 = vmul.f32 0.5, %v4169_v43  ;;  %v4174_v47 = vadd.f32 1.0, %v8470_v52 }
 0xaff   :  { %v4177_v16 = vmul.f32 %v8468_v46, %v4166_v44 }
 0xb00   :  { %v4176_v49 = vmul.f32 %v4170_v7, %v10084_v0  ;;  %v4175_v53 = vmul.f32 0.5, %v4174_v47  ;;  %v10216_v0 = vld [vmem:[%s11392_s5 + $0x64] ss:$16 sps:$4 sm:$0xff]  }
 0xb02   :  { %v10132_v1 = vadd.f32 %v4177_v16, %v4176_v49 }
 0xb04   :  { %8471 = vtanh.f32 %v10132_v1 }
 0xb0e   :  { %v8472_v21 = vpop.eup %8471 }
 0xb0f   :  { %v10135_v54 = vmul.f32 %v8472_v21, %v4175_v53 }
 0xb11   :  { %v4186_v34 = vpack.c.bf16 %v10135_v54, %v10135_v54 }
 0xb13   :  { %4412 = vmatmul.mubr.bf16.vlgmr.msra.gmra.mrb[76].mxu0 %v4186_v34  ;;  %4453 = vmatmul.mubr.bf16.vlgmr.msra.gmra.mrb[76].mxu1 %v4186_v34 }
 0xb14   :  { %4713 = vmatprep.mubr.bf16.mxu0 %v11438_v45  ;;  %4754 = vmatprep.mubr.bf16.mxu1 %v11438_v45 }
 0xb15   :  { %4682 = vmatpush1.bf16.msra.mxu0 %v10154_v59  ;;  %4723 = vmatpush1.bf16.msra.mxu1 %v10159_v18 }
 0xb16   :  { %4683 = vmatprep.subr.bf16.mxu0 %v10168_v51  ;;  %4724 = vmatprep.subr.bf16.mxu1 %v10173_v39 }
 0xb19   :  { %4684 = vmatpush1.bf16.msra.mxu0 %v10178_v15  ;;  %4725 = vmatpush1.bf16.msra.mxu1 %v10183_v27 }
 0xb1a   :  { %4685 = vmatprep.subr.bf16.mxu0 %v10192_v31  ;;  %4726 = vmatprep.subr.bf16.mxu1 %v10197_v22 }
 0xb1d   :  { %4686 = vmatpush1.bf16.msra.mxu0 %v10202_v5  ;;  %4727 = vmatpush1.bf16.msra.mxu1 %v10207_v63 }
 0xb1e   :  { %4687 = vmatprep.subr.bf16.mxu0 %v10216_v0  ;;  %4728 = vmatprep.subr.bf16.mxu1 %v10221_v13 }
 0xb21   :  { %4688 = vmatpush1.bf16.msra.mxu0 %v10226_v56  ;;  %4729 = vmatpush1.bf16.msra.mxu1 %v10231_v41 }
 0xb22   :  { %4689 = vmatprep.subr.bf16.mxu0 %v10240_v62  ;;  %4730 = vmatprep.subr.bf16.mxu1 %v10245_v4 }
 0xb25   :  { %4690 = vmatpush1.bf16.msra.mxu0 %v10250_v2  ;;  %4731 = vmatpush1.bf16.msra.mxu1 %v10255_v50 }
 0xb26   :  { %4691 = vmatprep.subr.bf16.mxu0 %v10264_v57  ;;  %4732 = vmatprep.subr.bf16.mxu1 %v10269_v3 }
 0xb29   :  { %4692 = vmatpush1.bf16.msra.mxu0 %v10274_v28  ;;  %4733 = vmatpush1.bf16.msra.mxu1 %v10279_v26 }
 0xb2a   :  { %4693 = vmatprep.subr.bf16.mxu0 %v10288_v30  ;;  %4734 = vmatprep.subr.bf16.mxu1 %v10293_v17 }
 0xb2d   :  { %4694 = vmatpush1.bf16.msra.mxu0 %v10298_v12  ;;  %4735 = vmatpush1.bf16.msra.mxu1 %v10303_v32 }
 0xb2e   :  { %4695 = vmatprep.subr.bf16.mxu0 %v10312_v11  ;;  %4736 = vmatprep.subr.bf16.mxu1 %v10317_v35 }
 0xb31   :  { %4696 = vmatpush1.bf16.msra.mxu0 %v10322_v40  ;;  %4737 = vmatpush1.bf16.msra.mxu1 %v10327_v10 }
 0xb32   :  { %4983 = vmatprep.subr.bf16.mxu0 %v10144_v61  ;;  %5024 = vmatprep.subr.bf16.mxu1 %v10149_v58 }
 0xbe6   :  { %v4413_v8 = vpop.f32.mrb[76].mxu0  ;;  %v4454_v9 = vpop.f32.mrb[76].mxu1 }
 0xbe7   :  { %v4461_v60 = vadd.f32 %v4413_v8, %v3148_v25  ;;  %v4463_v42 = vadd.f32 %v4454_v9, %v3221_v29  ;;  %v4415_v43 = vpop.f32.mrb[77].mxu0  ;;  %v4456_v44 = vpop.f32.mrb[77].mxu1 }
 0xbe8   :  { %v4462_v46 = vadd.f32 %v4415_v43, %v3150_v37  ;;  %v4464_v7 = vadd.f32 %v4456_v44, %v3223_v6  ;;  %v4417_v16 = vpop.f32.mrb[78].mxu0  ;;  %v4458_v49 = vpop.f32.mrb[78].mxu1 }
 0xbe9   :  { %v4465_v52 = vmul.f32 0.5, %v4461_v60  ;;  %v4418_v47 = vpop.f32.mrb[79].mxu0  ;;  %v4459_v53 = vpop.f32.mrb[79].mxu1  ;;  %v11498_v49 = vld [vmem:[#allocation17_spill] sm:$0xff] }
 0xbea   :  { %v4469_v21 = vmul.f32 0.5, %v4462_v46  ;;  %v4474_v34 = vmul.f32 0.5, %v4464_v7  ;;  %v11499_v47 = vld [vmem:[#allocation18_spill] sm:$0xff] }
 0xbeb   :  { %8473 = vtanh.f32 %v4465_v52  ;;  %v3227_v52 = vadd.f32 %v11498_v49, %v10014_v23  ;;  %v3156_v53 = vadd.f32 %v11499_v47, %v10021_v48 }
 0xbec   :  { %8475 = vtanh.f32 %v4469_v21  ;;  %v11500_v21 = vld [vmem:[#allocation19_spill] sm:$0xff] }
 0xbed   :  { %8477 = vtanh.f32 %v4463_v42 }
 0xbee   :  { %8479 = vtanh.f32 %v4474_v34  ;;  %v3229_v34 = vadd.f32 %v11500_v21, %v10024_v20 }
 0xbf5   :  { %v8474_v19 = vpop.eup %8473 }
 0xbf6   :  { %v8476_v55 = vpop.eup %8475  ;;  %v4467_v36 = vadd.f32 1.0, %v8474_v19 }
 0xbf7   :  { %v4471_v38 = vadd.f32 1.0, %v8476_v55  ;;  %v8478_v29 = vpop.eup %8477 }
 0xbf8   :  { %v4468_v25 = vmul.f32 0.5, %v4467_v36  ;;  %v8480_v60 = vpop.eup %8479 }
 0xbf9   :  { %v4472_v8 = vmul.f32 0.5, %v4471_v38  ;;  %v4476_v43 = vadd.f32 1.0, %v8480_v60 }
 0xbfa   :  { %v4479_v37 = vmul.f32 %v8478_v29, %v4468_v25 }
 0xbfb   :  { %v4478_v6 = vmul.f32 %v4472_v8, %v10132_v1  ;;  %v4477_v44 = vmul.f32 0.5, %v4476_v43  ;;  %v11497_v1 = vld [vmem:[#allocation16_spill] sm:$0xff] }
 0xbfc   :  { %v3154_v16 = vadd.f32 %v11497_v1, %v10011_v33 }
 0xbfd   :  { %v10344_v9 = vadd.f32 %v4479_v37, %v4478_v6 }
 0xbff   :  { %8481 = vtanh.f32 %v10344_v9 }
 0xc09   :  { %v8482_v42 = vpop.eup %8481 }
 0xc0a   :  { %v10347_v46 = vmul.f32 %v8482_v42, %v4477_v44 }
 0xc0c   :  { %11496 = vst [vmem:[#allocation8_spill] sm:$0xff] %v10347_v46  ;;  %v4488_v7 = vpack.c.bf16 %v10347_v46, %v10347_v46 }
 0xc0e   :  { %4714 = vmatmul.mubr.bf16.vlgmr.msra.gmra.mrb[80].mxu0 %v4488_v7  ;;  %4755 = vmatmul.mubr.bf16.vlgmr.msra.gmra.mrb[80].mxu1 %v4488_v7 }
 0xc0f   :  { %4984 = vmatpush1.bf16.msra.mxu0 %v10154_v59  ;;  %5025 = vmatpush1.bf16.msra.mxu1 %v10159_v18 }
 0xc10   :  { %4985 = vmatprep.subr.bf16.mxu0 %v10168_v51  ;;  %5026 = vmatprep.subr.bf16.mxu1 %v10173_v39 }
 0xc11   :  { %5015 = vmatprep.mubr.bf16.mxu0 %v11438_v45  ;;  %5056 = vmatprep.mubr.bf16.mxu1 %v11438_v45 }
 0xc13   :  { %4986 = vmatpush1.bf16.msra.mxu0 %v10178_v15  ;;  %5027 = vmatpush1.bf16.msra.mxu1 %v10183_v27 }
 0xc14   :  { %4987 = vmatprep.subr.bf16.mxu0 %v10192_v31  ;;  %5028 = vmatprep.subr.bf16.mxu1 %v10197_v22 }
 0xc17   :  { %4988 = vmatpush1.bf16.msra.mxu0 %v10202_v5  ;;  %5029 = vmatpush1.bf16.msra.mxu1 %v10207_v63 }
 0xc18   :  { %4989 = vmatprep.subr.bf16.mxu0 %v10216_v0  ;;  %5030 = vmatprep.subr.bf16.mxu1 %v10221_v13 }
 0xc1b   :  { %4990 = vmatpush1.bf16.msra.mxu0 %v10226_v56  ;;  %5031 = vmatpush1.bf16.msra.mxu1 %v10231_v41 }
 0xc1c   :  { %4991 = vmatprep.subr.bf16.mxu0 %v10240_v62  ;;  %5032 = vmatprep.subr.bf16.mxu1 %v10245_v4 }
 0xc1f   :  { %4992 = vmatpush1.bf16.msra.mxu0 %v10250_v2  ;;  %5033 = vmatpush1.bf16.msra.mxu1 %v10255_v50 }
 0xc20   :  { %4993 = vmatprep.subr.bf16.mxu0 %v10264_v57  ;;  %5034 = vmatprep.subr.bf16.mxu1 %v10269_v3 }
 0xc23   :  { %4994 = vmatpush1.bf16.msra.mxu0 %v10274_v28  ;;  %5035 = vmatpush1.bf16.msra.mxu1 %v10279_v26 }
 0xc24   :  { %4995 = vmatprep.subr.bf16.mxu0 %v10288_v30  ;;  %5036 = vmatprep.subr.bf16.mxu1 %v10293_v17 }
 0xc27   :  { %4996 = vmatpush1.bf16.msra.mxu0 %v10298_v12  ;;  %5037 = vmatpush1.bf16.msra.mxu1 %v10303_v32 }
 0xc28   :  { %4997 = vmatprep.subr.bf16.mxu0 %v10312_v11  ;;  %5038 = vmatprep.subr.bf16.mxu1 %v10317_v35 }
 0xc2b   :  { %4998 = vmatpush1.bf16.msra.mxu0 %v10322_v40  ;;  %5039 = vmatpush1.bf16.msra.mxu1 %v10327_v10 }
 0xc2c   :  { %5285 = vmatprep.subr.bf16.mxu0 %v10144_v61  ;;  %5326 = vmatprep.subr.bf16.mxu1 %v10149_v58 }
 0xce1   :  { %v4715_v19 = vpop.f32.mrb[80].mxu0  ;;  %v4756_v55 = vpop.f32.mrb[80].mxu1 }
 0xce2   :  { %v4763_v36 = vadd.f32 %v4715_v19, %v3154_v16  ;;  %v4765_v38 = vadd.f32 %v4756_v55, %v3227_v52  ;;  %v4717_v25 = vpop.f32.mrb[81].mxu0  ;;  %v4758_v29 = vpop.f32.mrb[81].mxu1 }
 0xce3   :  { %v4764_v8 = vadd.f32 %v4717_v25, %v3156_v53  ;;  %v4766_v37 = vadd.f32 %v4758_v29, %v3229_v34  ;;  %v4719_v6 = vpop.f32.mrb[82].mxu0  ;;  %v4760_v60 = vpop.f32.mrb[82].mxu1 }
 0xce4   :  { %v4767_v43 = vmul.f32 0.5, %v4763_v36  ;;  %v4720_v44 = vpop.f32.mrb[83].mxu0  ;;  %v4761_v42 = vpop.f32.mrb[83].mxu1  ;;  %v11502_v6 = vld [vmem:[#allocation21_spill] sm:$0xff] }
 0xce5   :  { %v4771_v7 = vmul.f32 0.5, %v4764_v8  ;;  %v4776_v1 = vmul.f32 0.5, %v4766_v37  ;;  %v3231_v60 = vadd.f32 %v11502_v6, %v10014_v23  ;;  %v11504_v42 = vld [vmem:[#allocation23_spill] sm:$0xff] }
 0xce6   :  { %8483 = vtanh.f32 %v4767_v43  ;;  %v11503_v43 = vld [vmem:[#allocation22_spill] sm:$0xff] }
 0xce7   :  { %8485 = vtanh.f32 %v4771_v7  ;;  %v3160_v44 = vadd.f32 %v11503_v43, %v10021_v48  ;;  %v3233_v7 = vadd.f32 %v11504_v42, %v10024_v20 }
 0xce8   :  { %8487 = vtanh.f32 %v4765_v38 }
 0xce9   :  { %8489 = vtanh.f32 %v4776_v1 }
 0xcf0   :  { %v8484_v49 = vpop.eup %8483 }
 0xcf1   :  { %v8486_v47 = vpop.eup %8485  ;;  %v4769_v21 = vadd.f32 1.0, %v8484_v49 }
 0xcf2   :  { %v4773_v46 = vadd.f32 1.0, %v8486_v47  ;;  %v8488_v52 = vpop.eup %8487 }
 0xcf3   :  { %v4770_v16 = vmul.f32 0.5, %v4769_v21  ;;  %v8490_v36 = vpop.eup %8489 }
 0xcf4   :  { %v4774_v19 = vmul.f32 0.5, %v4773_v46  ;;  %v4778_v25 = vadd.f32 1.0, %v8490_v36 }
 0xcf5   :  { %v4781_v53 = vmul.f32 %v8488_v52, %v4770_v16 }
 0xcf6   :  { %v4780_v34 = vmul.f32 %v4774_v19, %v10344_v9  ;;  %v4779_v29 = vmul.f32 0.5, %v4778_v25  ;;  %v11501_v9 = vld [vmem:[#allocation20_spill] sm:$0xff] }
 0xcf7   :  { %v3158_v46 = vadd.f32 %v11501_v9, %v10011_v33 }
 0xcf8   :  { %v10394_v55 = vadd.f32 %v4781_v53, %v4780_v34 }
 0xcfa   :  { %8491 = vtanh.f32 %v10394_v55 }
 0xd04   :  { %v8492_v38 = vpop.eup %8491 }
 0xd05   :  { %v10397_v8 = vmul.f32 %v8492_v38, %v4779_v29 }
 0xd07   :  { %v4790_v37 = vpack.c.bf16 %v10397_v8, %v10397_v8 }
 0xd09   :  { %5016 = vmatmul.mubr.bf16.vlgmr.msra.gmra.mrb[84].mxu0 %v4790_v37  ;;  %5057 = vmatmul.mubr.bf16.vlgmr.msra.gmra.mrb[84].mxu1 %v4790_v37 }
 0xd0a   :  { %5286 = vmatpush1.bf16.msra.mxu0 %v10154_v59  ;;  %5327 = vmatpush1.bf16.msra.mxu1 %v10159_v18 }
 0xd0b   :  { %5287 = vmatprep.subr.bf16.mxu0 %v10168_v51  ;;  %5328 = vmatprep.subr.bf16.mxu1 %v10173_v39 }
 0xd0c   :  { %5317 = vmatprep.mubr.bf16.mxu0 %v11438_v45  ;;  %5358 = vmatprep.mubr.bf16.mxu1 %v11438_v45 }
 0xd0e   :  { %5288 = vmatpush1.bf16.msra.mxu0 %v10178_v15  ;;  %5329 = vmatpush1.bf16.msra.mxu1 %v10183_v27 }
 0xd0f   :  { %5289 = vmatprep.subr.bf16.mxu0 %v10192_v31  ;;  %5330 = vmatprep.subr.bf16.mxu1 %v10197_v22 }
 0xd12   :  { %5290 = vmatpush1.bf16.msra.mxu0 %v10202_v5  ;;  %5331 = vmatpush1.bf16.msra.mxu1 %v10207_v63 }
 0xd13   :  { %5291 = vmatprep.subr.bf16.mxu0 %v10216_v0  ;;  %5332 = vmatprep.subr.bf16.mxu1 %v10221_v13 }
 0xd16   :  { %5292 = vmatpush1.bf16.msra.mxu0 %v10226_v56  ;;  %5333 = vmatpush1.bf16.msra.mxu1 %v10231_v41 }
 0xd17   :  { %5293 = vmatprep.subr.bf16.mxu0 %v10240_v62  ;;  %5334 = vmatprep.subr.bf16.mxu1 %v10245_v4 }
 0xd1a   :  { %5294 = vmatpush1.bf16.msra.mxu0 %v10250_v2  ;;  %5335 = vmatpush1.bf16.msra.mxu1 %v10255_v50 }
 0xd1b   :  { %5295 = vmatprep.subr.bf16.mxu0 %v10264_v57  ;;  %5336 = vmatprep.subr.bf16.mxu1 %v10269_v3 }
 0xd1e   :  { %5296 = vmatpush1.bf16.msra.mxu0 %v10274_v28  ;;  %5337 = vmatpush1.bf16.msra.mxu1 %v10279_v26 }
 0xd1f   :  { %5297 = vmatprep.subr.bf16.mxu0 %v10288_v30  ;;  %5338 = vmatprep.subr.bf16.mxu1 %v10293_v17 }
 0xd22   :  { %5298 = vmatpush1.bf16.msra.mxu0 %v10298_v12  ;;  %5339 = vmatpush1.bf16.msra.mxu1 %v10303_v32 }
 0xd23   :  { %5299 = vmatprep.subr.bf16.mxu0 %v10312_v11  ;;  %5340 = vmatprep.subr.bf16.mxu1 %v10317_v35 }
 0xd26   :  { %5300 = vmatpush1.bf16.msra.mxu0 %v10322_v40  ;;  %5341 = vmatpush1.bf16.msra.mxu1 %v10327_v10 }
 0xd27   :  { %5587 = vmatprep.subr.bf16.mxu0 %v10144_v61  ;;  %5628 = vmatprep.subr.bf16.mxu1 %v10149_v58 }
 0xddc   :  { %v5017_v1 = vpop.f32.mrb[84].mxu0  ;;  %v5058_v49 = vpop.f32.mrb[84].mxu1 }
 0xddd   :  { %v5065_v47 = vadd.f32 %v5017_v1, %v3158_v46  ;;  %v5067_v21 = vadd.f32 %v5058_v49, %v3231_v60  ;;  %v5019_v16 = vpop.f32.mrb[85].mxu0  ;;  %v5060_v61 = vpop.f32.mrb[85].mxu1 }
 0xdde   :  { %v5066_v52 = vadd.f32 %v5019_v16, %v3160_v44  ;;  %v5068_v58 = vadd.f32 %v5060_v61, %v3233_v7  ;;  %v5021_v19 = vpop.f32.mrb[86].mxu0  ;;  %v5062_v53 = vpop.f32.mrb[86].mxu1 }
 0xddf   :  { %v5069_v34 = vmul.f32 0.5, %v5065_v47  ;;  %v5022_v36 = vpop.f32.mrb[87].mxu0  ;;  %v5063_v25 = vpop.f32.mrb[87].mxu1 }
 0xde0   :  { %v5073_v29 = vmul.f32 0.5, %v5066_v52  ;;  %v5078_v38 = vmul.f32 0.5, %v5068_v58 }
 0xde1   :  { %8493 = vtanh.f32 %v5069_v34 }
 0xde2   :  { %8495 = vtanh.f32 %v5073_v29 }
 0xde3   :  { %8497 = vtanh.f32 %v5067_v21 }
 0xde4   :  { %8499 = vtanh.f32 %v5078_v38 }
 0xdeb   :  { %v8494_v37 = vpop.eup %8493 }
 0xdec   :  { %v8496_v9 = vpop.eup %8495  ;;  %v5071_v6 = vadd.f32 1.0, %v8494_v37 }
 0xded   :  { %v5075_v43 = vadd.f32 1.0, %v8496_v9  ;;  %v8498_v60 = vpop.eup %8497  ;;  %v8259_v9 = vld [vmem:[%s11394_s7] ss:$16 sps:$4 sm:$0xff]  }
 0xdee   :  { %v5072_v46 = vmul.f32 0.5, %v5071_v6  ;;  %v8500_v49 = vpop.eup %8499  ;;  %v8262_v6 = vld [vmem:[%s11394_s7 + $0x8] ss:$16 sps:$4 sm:$0xff]  }
 0xdef   :  { %v5076_v42 = vmul.f32 0.5, %v5075_v43  ;;  %v5080_v47 = vadd.f32 1.0, %v8500_v49  ;;  %v8271_v49 = vld [vmem:[%s11394_s7 + $0x40] ss:$16 sps:$4 sm:$0xff]  }
 0xdf0   :  { %v5083_v44 = vmul.f32 %v8498_v60, %v5072_v46  ;;  %v8267_v46 = vld [vmem:[%s11394_s7 + $0x24] ss:$16 sps:$4 sm:$0xff]   ;;  %v8270_v60 = vld [vmem:[%s11394_s7 + $0x2c] ss:$16 sps:$4 sm:$0xff]  }
 0xdf1   :  { %v5082_v7 = vmul.f32 %v5076_v42, %v10394_v55  ;;  %v5081_v16 = vmul.f32 0.5, %v5080_v47  ;;  %v8265_v42 = vld [vmem:[%s11394_s7 + $0x20] ss:$16 sps:$4 sm:$0xff]   ;;  %v8274_v47 = vld [vmem:[%s11394_s7 + $0x48] ss:$16 sps:$4 sm:$0xff]  }
 0xdf3   :  { %v10444_v1 = vadd.f32 %v5083_v44, %v5082_v7  ;;  %v8268_v44 = vld [vmem:[%s11394_s7 + $0x28] ss:$16 sps:$4 sm:$0xff]   ;;  %v8273_v7 = vld [vmem:[%s11394_s7 + $0x44] ss:$16 sps:$4 sm:$0xff]  }
 0xdf5   :  { %8501 = vtanh.f32 %v10444_v1 }
 0xdff   :  { %v8502_v21 = vpop.eup %8501 }
 0xe00   :  { %v10447_v61 = vmul.f32 %v8502_v21, %v5081_v16  ;;  %v8279_v16 = vld [vmem:[%s11394_s7 + $0x64] ss:$16 sps:$4 sm:$0xff]   ;;  %v8282_v21 = vld [vmem:[%s11394_s7 + $0x6c] ss:$16 sps:$4 sm:$0xff]  }
 0xe02   :  { %v5092_v52 = vpack.c.bf16 %v10447_v61, %v10447_v61 }
 0xe04   :  { %5318 = vmatmul.mubr.bf16.vlgmr.msra.gmra.mrb[88].mxu0 %v5092_v52  ;;  %5359 = vmatmul.mubr.bf16.vlgmr.msra.gmra.mrb[88].mxu1 %v5092_v52  ;;  %v8277_v52 = vld [vmem:[%s11394_s7 + $0x60] ss:$16 sps:$4 sm:$0xff]  }
 0xe05   :  { %5588 = vmatpush1.bf16.msra.mxu0 %v10154_v59  ;;  %5629 = vmatpush1.bf16.msra.mxu1 %v10159_v18  ;;  %v8261_v59 = vld [vmem:[%s11394_s7 + $0x4] ss:$16 sps:$4 sm:$0xff]   ;;  %v8264_v18 = vld [vmem:[%s11394_s7 + $0xc] ss:$16 sps:$4 sm:$0xff]  }
 0xe06   :  { %5589 = vmatprep.subr.bf16.mxu0 %v10168_v51  ;;  %5630 = vmatprep.subr.bf16.mxu1 %v10173_v39  ;;  %v11505_v51 = vld [vmem:[#allocation24_spill] sm:$0xff] }
 0xe07   :  { %5619 = vmatprep.mubr.bf16.mxu0 %v11438_v45  ;;  %5660 = vmatprep.mubr.bf16.mxu1 %v11438_v45  ;;  %v3164_v39 = vadd.f32 %v11505_v51, %v10011_v33  ;;  %v8288_v51 = vld [vmem:[%s11394_s7 + $0x8c] ss:$16 sps:$4 sm:$0xff]  }
 0xe09   :  { %5590 = vmatpush1.bf16.msra.mxu0 %v10178_v15  ;;  %5631 = vmatpush1.bf16.msra.mxu1 %v10183_v27  ;;  %v11506_v15 = vld [vmem:[#allocation25_spill] sm:$0xff] }
 0xe0a   :  { %5591 = vmatprep.subr.bf16.mxu0 %v10192_v31  ;;  %5632 = vmatprep.subr.bf16.mxu1 %v10197_v22  ;;  %v3237_v27 = vadd.f32 %v11506_v15, %v10014_v23  ;;  %v11507_v31 = vld [vmem:[#allocation26_spill] sm:$0xff]  ;;  %v8286_v15 = vld [vmem:[%s11394_s7 + $0x88] ss:$16 sps:$4 sm:$0xff]  }
 0xe0b   :  { %v3166_v22 = vadd.f32 %v11507_v31, %v10021_v48  ;;  %v8294_v31 = vld [vmem:[%s11394_s7 + $0xac] ss:$16 sps:$4 sm:$0xff]  }
 0xe0d   :  { %5592 = vmatpush1.bf16.msra.mxu0 %v10202_v5  ;;  %5633 = vmatpush1.bf16.msra.mxu1 %v10207_v63  ;;  %v11508_v5 = vld [vmem:[#allocation27_spill] sm:$0xff] }
 0xe0e   :  { %5593 = vmatprep.subr.bf16.mxu0 %v10216_v0  ;;  %5634 = vmatprep.subr.bf16.mxu1 %v10221_v13  ;;  %v3239_v63 = vadd.f32 %v11508_v5, %v10024_v20  ;;  %v8292_v5 = vld [vmem:[%s11394_s7 + $0xa8] ss:$16 sps:$4 sm:$0xff]  }
 0xe11   :  { %5594 = vmatpush1.bf16.msra.mxu0 %v10226_v56  ;;  %5635 = vmatpush1.bf16.msra.mxu1 %v10231_v41 }
 0xe12   :  { %5595 = vmatprep.subr.bf16.mxu0 %v10240_v62  ;;  %5636 = vmatprep.subr.bf16.mxu1 %v10245_v4 }
 0xe15   :  { %5596 = vmatpush1.bf16.msra.mxu0 %v10250_v2  ;;  %5637 = vmatpush1.bf16.msra.mxu1 %v10255_v50 }
 0xe16   :  { %5597 = vmatprep.subr.bf16.mxu0 %v10264_v57  ;;  %5638 = vmatprep.subr.bf16.mxu1 %v10269_v3 }
 0xe19   :  { %5598 = vmatpush1.bf16.msra.mxu0 %v10274_v28  ;;  %5639 = vmatpush1.bf16.msra.mxu1 %v10279_v26 }
 0xe1a   :  { %5599 = vmatprep.subr.bf16.mxu0 %v10288_v30  ;;  %5640 = vmatprep.subr.bf16.mxu1 %v10293_v17 }
 0xe1d   :  { %5600 = vmatpush1.bf16.msra.mxu0 %v10298_v12  ;;  %5641 = vmatpush1.bf16.msra.mxu1 %v10303_v32 }
 0xe1e   :  { %5601 = vmatprep.subr.bf16.mxu0 %v10312_v11  ;;  %5642 = vmatprep.subr.bf16.mxu1 %v10317_v35 }
 0xe21   :  { %5602 = vmatpush1.bf16.msra.mxu0 %v10322_v40  ;;  %5643 = vmatpush1.bf16.msra.mxu1 %v10327_v10 }
 0xe22   :  { %5918 = vmatprep.subr.bf16.mxu0 %v8261_v59  ;;  %5991 = vmatprep.subr.bf16.mxu1 %v8264_v18  ;;  %v8280_v59 = vld [vmem:[%s11394_s7 + $0x68] ss:$16 sps:$4 sm:$0xff]   ;;  %v8285_v18 = vld [vmem:[%s11394_s7 + $0x84] ss:$16 sps:$4 sm:$0xff]  }
 0xed7   :  { %v5319_v0 = vpop.f32.mrb[88].mxu0  ;;  %v5360_v13 = vpop.f32.mrb[88].mxu1 }
 0xed8   :  { %v5367_v56 = vadd.f32 %v5319_v0, %v3164_v39  ;;  %v5369_v41 = vadd.f32 %v5360_v13, %v3237_v27  ;;  %v5321_v62 = vpop.f32.mrb[89].mxu0  ;;  %v5362_v4 = vpop.f32.mrb[89].mxu1  ;;  %v8283_v39 = vld [vmem:[%s11394_s7 + $0x80] ss:$16 sps:$4 sm:$0xff]   ;;  %v8291_v27 = vld [vmem:[%s11394_s7 + $0xa4] ss:$16 sps:$4 sm:$0xff]  }
 0xed9   :  { %v5368_v2 = vadd.f32 %v5321_v62, %v3166_v22  ;;  %v5370_v50 = vadd.f32 %v5362_v4, %v3239_v63  ;;  %v5323_v57 = vpop.f32.mrb[90].mxu0  ;;  %v5364_v3 = vpop.f32.mrb[90].mxu1  ;;  %v8289_v22 = vld [vmem:[%s11394_s7 + $0xa0] ss:$16 sps:$4 sm:$0xff]   ;;  %v8297_v63 = vld [vmem:[%s11394_s7 + $0xc4] ss:$16 sps:$4 sm:$0xff]  }
 0xeda   :  { %v5371_v28 = vmul.f32 0.5, %v5367_v56  ;;  %v5324_v26 = vpop.f32.mrb[91].mxu0  ;;  %v5365_v30 = vpop.f32.mrb[91].mxu1  ;;  %v8300_v0 = vld [vmem:[%s11394_s7 + $0xcc] ss:$16 sps:$4 sm:$0xff]   ;;  %v11509_v57 = vld [vmem:[#allocation8_spill] sm:$0xff] }
 0xedb   :  { %v5375_v17 = vmul.f32 0.5, %v5368_v2  ;;  %v5380_v12 = vmul.f32 0.5, %v5370_v50  ;;  %v8295_v13 = vld [vmem:[%s11394_s7 + $0xc0] ss:$16 sps:$4 sm:$0xff]   ;;  %v8298_v56 = vld [vmem:[%s11394_s7 + $0xc8] ss:$16 sps:$4 sm:$0xff]   ;;  %v5701_v50 = vpack.c.bf16 %v10087_v24, %v10037_v14  ;;  %v5702_v3 = vpack.c.bf16 %v11509_v57, %v10135_v54 }
 0xedc   :  { %8503 = vtanh.f32 %v5371_v28  ;;  %v8306_v62 = vld [vmem:[%s11394_s7 + $0xec] ss:$16 sps:$4 sm:$0xff]   ;;  %v8301_v4 = vld [vmem:[%s11394_s7 + $0xe0] ss:$16 sps:$4 sm:$0xff]   ;;  %v8304_v2 = vld [vmem:[%s11394_s7 + $0xe8] ss:$16 sps:$4 sm:$0xff]   ;;  %v5703_v28 = vpack.c.bf16 %v10447_v61, %v10397_v8 }
 0xedd   :  { %8505 = vtanh.f32 %v5375_v17  ;;  %v10612_v14 = vld [vmem:[%s11395_s8 + $0x4] ss:$16 sps:$4 sm:$0xff]   ;;  %v10617_v24 = vld [vmem:[%s11395_s8 + $0xc] ss:$16 sps:$4 sm:$0xff]   ;;  %v10623_v54 = vld [vmem:[%s11395_s8] ss:$16 sps:$4 sm:$0xff]  }
 0xede   :  { %8507 = vtanh.f32 %v5369_v41  ;;  %v8303_v41 = vld [vmem:[%s11394_s7 + $0xe4] ss:$16 sps:$4 sm:$0xff]   ;;  %v10628_v8 = vld [vmem:[%s11395_s8 + $0x8] ss:$16 sps:$4 sm:$0xff]   ;;  %v10641_v26 = vld [vmem:[%s11395_s8 + $0x2c] ss:$16 sps:$4 sm:$0xff]  }
 0xedf   :  { %8509 = vtanh.f32 %v5380_v12  ;;  %v10636_v61 = vld [vmem:[%s11395_s8 + $0x24] ss:$16 sps:$4 sm:$0xff]   ;;  %v10646_v30 = vld [vmem:[%s11395_s8 + $0x20] ss:$16 sps:$4 sm:$0xff]   ;;  %v10651_v17 = vld [vmem:[%s11395_s8 + $0x28] ss:$16 sps:$4 sm:$0xff]  }
 0xee0   :  { %v10660_v12 = vld [vmem:[%s11395_s8 + $0x44] ss:$16 sps:$4 sm:$0xff]  }
 0xee6   :  { %v8504_v32 = vpop.eup %8503 }
 0xee7   :  { %v8506_v11 = vpop.eup %8505  ;;  %v5373_v35 = vadd.f32 1.0, %v8504_v32  ;;  %v10665_v32 = vld [vmem:[%s11395_s8 + $0x4c] ss:$16 sps:$4 sm:$0xff]  }
 0xee8   :  { %v5377_v40 = vadd.f32 1.0, %v8506_v11  ;;  %v8508_v55 = vpop.eup %8507  ;;  %v10670_v11 = vld [vmem:[%s11395_s8 + $0x40] ss:$16 sps:$4 sm:$0xff]  }
 0xee9   :  { %v5374_v10 = vmul.f32 0.5, %v5373_v35  ;;  %v8510_v36 = vpop.eup %8509  ;;  %v10675_v35 = vld [vmem:[%s11395_s8 + $0x48] ss:$16 sps:$4 sm:$0xff]  }
 0xeea   :  { %v5378_v58 = vmul.f32 0.5, %v5377_v40  ;;  %v5382_v25 = vadd.f32 1.0, %v8510_v36  ;;  %v10682_v40 = vld [vmem:[%s11395_s8 + $0x64] ss:$16 sps:$4 sm:$0xff]   ;;  %v10718_v36 = vld [vmem:[%s11395_s8 + $0x80] ss:$16 sps:$4 sm:$0xff]  }
 0xeeb   :  { %v5385_v19 = vmul.f32 %v8508_v55, %v5374_v10  ;;  %v10687_v10 = vld [vmem:[%s11395_s8 + $0x6c] ss:$16 sps:$4 sm:$0xff]   ;;  %v10692_v55 = vld [vmem:[%s11395_s8 + $0x60] ss:$16 sps:$4 sm:$0xff]  }
 0xeec   :  { %v5384_v53 = vmul.f32 %v5378_v58, %v10444_v1  ;;  %v5383_v29 = vmul.f32 0.5, %v5382_v25  ;;  %v8276_v1 = vld [vmem:[%s11394_s7 + $0x4c] ss:$16 sps:$4 sm:$0xff]   ;;  %v10697_v58 = vld [vmem:[%s11395_s8 + $0x68] ss:$16 sps:$4 sm:$0xff]  }
 0xeed   :  { %v10723_v25 = vld [vmem:[%s11395_s8 + $0x88] ss:$16 sps:$4 sm:$0xff]  }
 0xeee   :  { %v10498_v34 = vadd.f32 %v5385_v19, %v5384_v53  ;;  %v10708_v19 = vld [vmem:[%s11395_s8 + $0x84] ss:$16 sps:$4 sm:$0xff]   ;;  %v10713_v53 = vld [vmem:[%s11395_s8 + $0x8c] ss:$16 sps:$4 sm:$0xff]  }
 0xef0   :  { %8511 = vtanh.f32 %v10498_v34 }
 0xefa   :  { %v8512_v38 = vpop.eup %8511 }
 0xefb   :  { %v10501_v37 = vmul.f32 %v8512_v38, %v5383_v29  ;;  %v10732_v29 = vld [vmem:[%s11395_s8 + $0xa4] ss:$16 sps:$4 sm:$0xff]   ;;  %v10737_v38 = vld [vmem:[%s11395_s8 + $0xac] ss:$16 sps:$4 sm:$0xff]  }
 0xefd   :  { %v5394_v43 = vpack.c.bf16 %v10501_v37, %v10501_v37 }
 0xeff   :  { %5620 = vmatmul.mubr.bf16.vlgmr.msra.gmra.mrb[92].mxu0 %v5394_v43  ;;  %5661 = vmatmul.mubr.bf16.vlgmr.msra.gmra.mrb[92].mxu1 %v5394_v43  ;;  %v10756_v43 = vld [vmem:[%s11395_s8 + $0xc4] ss:$16 sps:$4 sm:$0xff]  }
 0xf00   :  { %5919 = vmatpush1.bf16.msra.mxu0 %v8259_v9  ;;  %5992 = vmatpush1.bf16.msra.mxu1 %v8262_v6  ;;  %v10742_v9 = vld [vmem:[%s11395_s8 + $0xa0] ss:$16 sps:$4 sm:$0xff]   ;;  %v10747_v6 = vld [vmem:[%s11395_s8 + $0xa8] ss:$16 sps:$4 sm:$0xff]  }
 0xf01   :  { %5920 = vmatprep.subr.bf16.mxu0 %v8267_v46  ;;  %5993 = vmatprep.subr.bf16.mxu1 %v8270_v60  ;;  %v10761_v46 = vld [vmem:[%s11395_s8 + $0xcc] ss:$16 sps:$4 sm:$0xff]   ;;  %v10766_v60 = vld [vmem:[%s11395_s8 + $0xc0] ss:$16 sps:$4 sm:$0xff]  }
 0xf02   :  { %5950 = vmatprep.mubr.bf16.mxu0 %v11438_v45  ;;  %6023 = vmatprep.mubr.bf16.mxu1 %v11438_v45 }
 0xf04   :  { %5921 = vmatpush1.bf16.msra.mxu0 %v8265_v42  ;;  %5994 = vmatpush1.bf16.msra.mxu1 %v8268_v44  ;;  %v10771_v42 = vld [vmem:[%s11395_s8 + $0xc8] ss:$16 sps:$4 sm:$0xff]   ;;  %v10780_v44 = vld [vmem:[%s11395_s8 + $0xe4] ss:$16 sps:$4 sm:$0xff]  }
 0xf05   :  { %5922 = vmatprep.subr.bf16.mxu0 %v8273_v7  ;;  %5995 = vmatprep.subr.bf16.mxu1 %v8276_v1  ;;  %v10785_v7 = vld [vmem:[%s11395_s8 + $0xec] ss:$16 sps:$4 sm:$0xff]   ;;  %v10790_v1 = vld [vmem:[%s11395_s8 + $0xe0] ss:$16 sps:$4 sm:$0xff]  }
 0xf08   :  { %5923 = vmatpush1.bf16.msra.mxu0 %v8271_v49  ;;  %5996 = vmatpush1.bf16.msra.mxu1 %v8274_v47  ;;  %v10795_v49 = vld [vmem:[%s11395_s8 + $0xe8] ss:$16 sps:$4 sm:$0xff]   ;;  %v11510_v47 = vld [vmem:[#allocation28_spill] sm:$0xff] }
 0xf09   :  { %5924 = vmatprep.subr.bf16.mxu0 %v8279_v16  ;;  %5997 = vmatprep.subr.bf16.mxu1 %v8282_v21  ;;  %v3168_v16 = vadd.f32 %v11510_v47, %v10011_v33  ;;  %v11511_v21 = vld [vmem:[#allocation29_spill] sm:$0xff] }
 0xf0c   :  { %5925 = vmatpush1.bf16.msra.mxu0 %v8277_v52  ;;  %5998 = vmatpush1.bf16.msra.mxu1 %v8280_v59  ;;  %v3241_v52 = vadd.f32 %v11511_v21, %v10014_v23  ;;  %v11512_v59 = vld [vmem:[#allocation30_spill] sm:$0xff] }
 0xf0d   :  { %5926 = vmatprep.subr.bf16.mxu0 %v8285_v18  ;;  %5999 = vmatprep.subr.bf16.mxu1 %v8288_v51  ;;  %v3170_v18 = vadd.f32 %v11512_v59, %v10021_v48  ;;  %v11513_v51 = vld [vmem:[#allocation31_spill] sm:$0xff] }
 0xf10   :  { %5927 = vmatpush1.bf16.msra.mxu0 %v8283_v39  ;;  %6000 = vmatpush1.bf16.msra.mxu1 %v8286_v15  ;;  %v3243_v39 = vadd.f32 %v11513_v51, %v10024_v20 }
 0xf11   :  { %5928 = vmatprep.subr.bf16.mxu0 %v8291_v27  ;;  %6001 = vmatprep.subr.bf16.mxu1 %v8294_v31 }
 0xf14   :  { %5929 = vmatpush1.bf16.msra.mxu0 %v8289_v22  ;;  %6002 = vmatpush1.bf16.msra.mxu1 %v8292_v5 }
 0xf15   :  { %5930 = vmatprep.subr.bf16.mxu0 %v8297_v63  ;;  %6003 = vmatprep.subr.bf16.mxu1 %v8300_v0 }
 0xf18   :  { %5931 = vmatpush1.bf16.msra.mxu0 %v8295_v13  ;;  %6004 = vmatpush1.bf16.msra.mxu1 %v8298_v56 }
 0xf19   :  { %5932 = vmatprep.subr.bf16.mxu0 %v8303_v41  ;;  %6005 = vmatprep.subr.bf16.mxu1 %v8306_v62 }
 0xf1c   :  { %5933 = vmatpush1.bf16.msra.mxu0 %v8301_v4  ;;  %6006 = vmatpush1.bf16.msra.mxu1 %v8304_v2 }
 0xf1d   :  { %6292 = vmatprep.subr.bf16.mxu0 %v10612_v14  ;;  %6333 = vmatprep.subr.bf16.mxu1 %v10617_v24 }
 0xf1f   :  { %5951 = vmatmul.mubr.bf16.vlgmr.msra.gmra.mrb[96].mxu0 %v5701_v50  ;;  %6024 = vmatmul.mubr.bf16.vlgmr.msra.gmra.mrb[96].mxu1 %v5701_v50 }
 0xf20   :  { %5960 = vmatprep.mubr.bf16.mxu0 %v11438_v45  ;;  %6033 = vmatprep.mubr.bf16.mxu1 %v11438_v45 }
 0xf21   :  { %6293 = vmatpush1.bf16.msra.mxu0 %v10623_v54  ;;  %6334 = vmatpush1.bf16.msra.mxu1 %v10628_v8 }
 0xf22   :  { %6294 = vmatprep.subr.bf16.mxu0 %v10636_v61  ;;  %6335 = vmatprep.subr.bf16.mxu1 %v10641_v26 }
 0xf25   :  { %6295 = vmatpush1.bf16.msra.mxu0 %v10646_v30  ;;  %6336 = vmatpush1.bf16.msra.mxu1 %v10651_v17 }
 0xf26   :  { %6296 = vmatprep.subr.bf16.mxu0 %v10660_v12  ;;  %6337 = vmatprep.subr.bf16.mxu1 %v10665_v32 }
 0xf27   :  { %5961 = vmatmul.mubr.bf16.gmra.mrb[100].mxu0 %v5702_v3  ;;  %6034 = vmatmul.mubr.bf16.gmra.mrb[100].mxu1 %v5702_v3 }
 0xf28   :  { %5970 = vmatprep.mubr.bf16.mxu0 %v11438_v45  ;;  %6043 = vmatprep.mubr.bf16.mxu1 %v11438_v45 }
 0xf29   :  { %6297 = vmatpush1.bf16.msra.mxu0 %v10670_v11  ;;  %6338 = vmatpush1.bf16.msra.mxu1 %v10675_v35 }
 0xf2a   :  { %6298 = vmatprep.subr.bf16.mxu0 %v10682_v40  ;;  %6339 = vmatprep.subr.bf16.mxu1 %v10687_v10 }
 0xf2d   :  { %6299 = vmatpush1.bf16.msra.mxu0 %v10692_v55  ;;  %6340 = vmatpush1.bf16.msra.mxu1 %v10697_v58 }
 0xf2e   :  { %6300 = vmatprep.subr.bf16.mxu0 %v10708_v19  ;;  %6341 = vmatprep.subr.bf16.mxu1 %v10713_v53 }
 0xf2f   :  { %5971 = vmatmul.mubr.bf16.gmra.mrb[104].mxu0 %v5703_v28  ;;  %6044 = vmatmul.mubr.bf16.gmra.mrb[104].mxu1 %v5703_v28 }
 0xf30   :  { %5980 = vmatprep.mubr.bf16.mxu0 %v11438_v45  ;;  %6053 = vmatprep.mubr.bf16.mxu1 %v11438_v45 }
 0xf31   :  { %6301 = vmatpush1.bf16.msra.mxu0 %v10718_v36  ;;  %6342 = vmatpush1.bf16.msra.mxu1 %v10723_v25 }
 0xf32   :  { %6302 = vmatprep.subr.bf16.mxu0 %v10732_v29  ;;  %6343 = vmatprep.subr.bf16.mxu1 %v10737_v38 }
 0xf35   :  { %6303 = vmatpush1.bf16.msra.mxu0 %v10742_v9  ;;  %6344 = vmatpush1.bf16.msra.mxu1 %v10747_v6 }
 0xf36   :  { %6304 = vmatprep.subr.bf16.mxu0 %v10756_v43  ;;  %6345 = vmatprep.subr.bf16.mxu1 %v10761_v46 }
 0xf39   :  { %6305 = vmatpush1.bf16.msra.mxu0 %v10766_v60  ;;  %6346 = vmatpush1.bf16.msra.mxu1 %v10771_v42 }
 0xf3a   :  { %6306 = vmatprep.subr.bf16.mxu0 %v10780_v44  ;;  %6347 = vmatprep.subr.bf16.mxu1 %v10785_v7 }
 0xf3d   :  { %6307 = vmatpush1.bf16.msra.mxu0 %v10790_v1  ;;  %6348 = vmatpush1.bf16.msra.mxu1 %v10795_v49 }
 0xf3e   :  { %6401 = vmatprep.subr.bf16.mxu0 %v10612_v14  ;;  %6442 = vmatprep.subr.bf16.mxu1 %v10617_v24 }
 0xfd2   :  { %v5621_v15 = vpop.f32.mrb[92].mxu0  ;;  %v5662_v27 = vpop.f32.mrb[92].mxu1 }
 0xfd3   :  { %v5669_v31 = vadd.f32 %v5621_v15, %v3168_v16  ;;  %v5671_v22 = vadd.f32 %v5662_v27, %v3241_v52  ;;  %v5623_v5 = vpop.f32.mrb[93].mxu0  ;;  %v5664_v63 = vpop.f32.mrb[93].mxu1 }
 0xfd4   :  { %v5670_v0 = vadd.f32 %v5623_v5, %v3170_v18  ;;  %v5672_v13 = vadd.f32 %v5664_v63, %v3243_v39  ;;  %v5625_v56 = vpop.f32.mrb[94].mxu0  ;;  %v5666_v41 = vpop.f32.mrb[94].mxu1 }
 0xfd5   :  { %v5673_v33 = vmul.f32 0.5, %v5669_v31  ;;  %v5626_v62 = vpop.f32.mrb[95].mxu0  ;;  %v5667_v4 = vpop.f32.mrb[95].mxu1 }
 0xfd6   :  { %v5677_v23 = vmul.f32 0.5, %v5670_v0  ;;  %v5682_v48 = vmul.f32 0.5, %v5672_v13 }
 0xfd7   :  { %8513 = vtanh.f32 %v5673_v33 }
 0xfd8   :  { %8515 = vtanh.f32 %v5677_v23 }
 0xfd9   :  { %8517 = vtanh.f32 %v5671_v22 }
 0xfda   :  { %8519 = vtanh.f32 %v5682_v48 }
 0xfe1   :  { %v8514_v2 = vpop.eup %8513 }
 0xfe2   :  { %v8516_v20 = vpop.eup %8515  ;;  %v5675_v50 = vadd.f32 1.0, %v8514_v2 }
 0xfe3   :  { %v5679_v57 = vadd.f32 1.0, %v8516_v20  ;;  %v8518_v28 = vpop.eup %8517 }
 0xfe4   :  { %v5676_v3 = vmul.f32 0.5, %v5675_v50  ;;  %v8520_v59 = vpop.eup %8519 }
 0xfe5   :  { %v5680_v47 = vmul.f32 0.5, %v5679_v57  ;;  %v5684_v18 = vadd.f32 1.0, %v8520_v59 }
 0xfe6   :  { %v5687_v16 = vmul.f32 %v8518_v28, %v5676_v3 }
 0xfe7   :  { %v5686_v21 = vmul.f32 %v5680_v47, %v10498_v34  ;;  %v5685_v31 = vmul.f32 0.5, %v5684_v18 }
 0xfe9   :  { %v5688_v52 = vadd.f32 %v5687_v16, %v5686_v21 }
 0xfeb   :  { %8521 = vtanh.f32 %v5688_v52  ;;  %v5692_v52 = vld [vmem:[%s11396_s9] sm:$0xf] }
 0xff2   :  { %v10812_v51 = vpop.f32.mrb[96].mxu0  ;;  %v10814_v39 = vpop.f32.mrb[96].mxu1 }
 0xff3   :  { %v10816_v15 = vpop.f32.mrb[97].mxu0  ;;  %v10818_v27 = vpop.f32.mrb[97].mxu1 }
 0xff4   :  { %v10820_v22 = vpop.f32.mrb[98].mxu0  ;;  %v10822_v5 = vpop.f32.mrb[98].mxu1 }
 0xff5   :  { %v8522_v63 = vpop.eup %8521  ;;  %v10824_v0 = vpop.f32.mrb[99].mxu0 }
 0xff6   :  { %v10826_v34 = vpop.f32.mrb[99].mxu1  ;;  %v5690_v13 = vmul.f32 %v8522_v63, %v5685_v31 }
 0xff8   :  { %v5704_v56 = vpack.c.bf16 %v5690_v13, %v10501_v37 }
 0xffa   :  { %v10829_v41 = vpop.f32.mrb[100].mxu0  ;;  %v10831_v33 = vpop.f32.mrb[100].mxu1  ;;  %5981 = vmatmul.mubr.bf16.gmra.mrb[108].mxu0 %v5704_v56  ;;  %6054 = vmatmul.mubr.bf16.gmra.mrb[108].mxu1 %v5704_v56 }
 0xffb   :  { %11514 = vst [vmem:[#allocation9_spill] sm:$0xff] %v10829_v41  ;;  %11515 = vst [vmem:[#allocation10_spill] sm:$0xff] %v10831_v33  ;;  %v10833_v62 = vpop.f32.mrb[101].mxu0  ;;  %v10835_v4 = vpop.f32.mrb[101].mxu1  ;;  %6324 = vmatprep.mubr.bf16.mxu0 %v11438_v45  ;;  %6365 = vmatprep.mubr.bf16.mxu1 %v11438_v45 }
 0xffc   :  { %11516 = vst [vmem:[#allocation11_spill] sm:$0xff] %v10833_v62  ;;  %11517 = vst [vmem:[#allocation12_spill] sm:$0xff] %v10835_v4  ;;  %v10839_v23 = vpop.f32.mrb[102].mxu0  ;;  %v10841_v48 = vpop.f32.mrb[102].mxu1 }
 0xffd   :  { %11518 = vst [vmem:[#allocation13_spill] sm:$0xff] %v10839_v23  ;;  %11519 = vst [vmem:[#allocation14_spill] sm:$0xff] %v10841_v48  ;;  %v10843_v2 = vpop.f32.mrb[103].mxu0  ;;  %v10845_v37 = vpop.f32.mrb[103].mxu1 }
 0xffe   :  { %11520 = vst [vmem:[#allocation15_spill] sm:$0xff] %v10843_v2  ;;  %11521 = vst [vmem:[#allocation16_spill] sm:$0xff] %v10845_v37 }
0x1002   :  { %v10847_v20 = vpop.f32.mrb[104].mxu0  ;;  %v10849_v50 = vpop.f32.mrb[104].mxu1  ;;  %6325 = vmatmul.mubr.bf16.vlgmr.msra.gmra.mrb[112].mxu0 %v11438_v45  ;;  %6366 = vmatmul.mubr.bf16.vlgmr.msra.gmra.mrb[112].mxu1 %v11438_v45 }
0x1003   :  { %11522 = vst [vmem:[#allocation17_spill] sm:$0xff] %v10847_v20  ;;  %11523 = vst [vmem:[#allocation18_spill] sm:$0xff] %v10849_v50  ;;  %v10853_v57 = vpop.f32.mrb[105].mxu0  ;;  %v10855_v3 = vpop.f32.mrb[105].mxu1  ;;  %6402 = vmatpush1.bf16.msra.mxu0 %v10623_v54  ;;  %6443 = vmatpush1.bf16.msra.mxu1 %v10628_v8 }
0x1004   :  { %11524 = vst [vmem:[#allocation19_spill] sm:$0xff] %v10853_v57  ;;  %11525 = vst [vmem:[#allocation20_spill] sm:$0xff] %v10855_v3  ;;  %v10859_v28 = vpop.f32.mrb[106].mxu0  ;;  %v10861_v47 = vpop.f32.mrb[106].mxu1  ;;  %6403 = vmatprep.subr.bf16.mxu0 %v10636_v61  ;;  %6444 = vmatprep.subr.bf16.mxu1 %v10641_v26 }
0x1005   :  { %11526 = vst [vmem:[#allocation21_spill] sm:$0xff] %v10859_v28  ;;  %11527 = vst [vmem:[#allocation22_spill] sm:$0xff] %v10861_v47  ;;  %v10865_v16 = vpop.f32.mrb[107].mxu0  ;;  %v10867_v21 = vpop.f32.mrb[107].mxu1  ;;  %6433 = vmatprep.mubr.bf16.mxu0 %v11438_v45  ;;  %6474 = vmatprep.mubr.bf16.mxu1 %v11438_v45  ;;  %v11537_v47 = vld [vmem:[#allocation5_spill] sm:$0xff] }
0x1006   :  { %11528 = vst [vmem:[#allocation23_spill] sm:$0xff] %v10865_v16  ;;  %11529 = vst [vmem:[#allocation24_spill] sm:$0xff] %v10867_v21  ;;  %v11536_v21 = vld [vmem:[#allocation4_spill] sm:$0xff]  ;;  %v10918_v28 = vrot.slane %v5692_v52, %v11537_v47 }
0x1007   :  { %6404 = vmatpush1.bf16.msra.mxu0 %v10646_v30  ;;  %6445 = vmatpush1.bf16.msra.mxu1 %v10651_v17  ;;  %v10915_v16 = vrot.slane %v5692_v52, %v11536_v21 }
0x1008   :  { %6405 = vmatprep.subr.bf16.mxu0 %v10660_v12  ;;  %6446 = vmatprep.subr.bf16.mxu1 %v10665_v32  ;;  %v6026_v21 = vadd.f32 %v10814_v39, %v10918_v28 }
0x100b   :  { %6406 = vmatpush1.bf16.msra.mxu0 %v10670_v11  ;;  %6447 = vmatpush1.bf16.msra.mxu1 %v10675_v35 }
0x100c   :  { %6407 = vmatprep.subr.bf16.mxu0 %v10682_v40  ;;  %6448 = vmatprep.subr.bf16.mxu1 %v10687_v10 }
0x100f   :  { %6408 = vmatpush1.bf16.msra.mxu0 %v10692_v55  ;;  %6449 = vmatpush1.bf16.msra.mxu1 %v10697_v58 }
0x1010   :  { %6409 = vmatprep.subr.bf16.mxu0 %v10708_v19  ;;  %6450 = vmatprep.subr.bf16.mxu1 %v10713_v53 }
0x1013   :  { %6410 = vmatpush1.bf16.msra.mxu0 %v10718_v36  ;;  %6451 = vmatpush1.bf16.msra.mxu1 %v10723_v25 }
0x1014   :  { %6411 = vmatprep.subr.bf16.mxu0 %v10732_v29  ;;  %6452 = vmatprep.subr.bf16.mxu1 %v10737_v38 }
0x1017   :  { %6412 = vmatpush1.bf16.msra.mxu0 %v10742_v9  ;;  %6453 = vmatpush1.bf16.msra.mxu1 %v10747_v6 }
0x1018   :  { %6413 = vmatprep.subr.bf16.mxu0 %v10756_v43  ;;  %6454 = vmatprep.subr.bf16.mxu1 %v10761_v46 }
0x101b   :  { %6414 = vmatpush1.bf16.msra.mxu0 %v10766_v60  ;;  %6455 = vmatpush1.bf16.msra.mxu1 %v10771_v42 }
0x101c   :  { %6415 = vmatprep.subr.bf16.mxu0 %v10780_v44  ;;  %6456 = vmatprep.subr.bf16.mxu1 %v10785_v7 }
0x101f   :  { %6416 = vmatpush1.bf16.msra.mxu0 %v10790_v1  ;;  %6457 = vmatpush1.bf16.msra.mxu1 %v10795_v49 }
0x1020   :  { %6510 = vmatprep.subr.bf16.mxu0 %v10612_v14  ;;  %6551 = vmatprep.subr.bf16.mxu1 %v10617_v24 }
0x10cd   :  { %v10902_v59 = vpop.f32.mrb[108].mxu0  ;;  %v10904_v18 = vpop.f32.mrb[108].mxu1 }
0x10ce   :  { %11530 = vst [vmem:[#allocation25_spill] sm:$0xff] %v10902_v59  ;;  %11531 = vst [vmem:[#allocation26_spill] sm:$0xff] %v10904_v18  ;;  %v10906_v31 = vpop.f32.mrb[109].mxu0  ;;  %v10908_v63 = vpop.f32.mrb[109].mxu1  ;;  %v11540_v59 = vld [vmem:[#allocation6_spill] sm:$0xff] }
0x10cf   :  { %11532 = vst [vmem:[#allocation27_spill] sm:$0xff] %v10906_v31  ;;  %11533 = vst [vmem:[#allocation8_spill] sm:$0xff] %v10908_v63  ;;  %v10910_v13 = vpop.f32.mrb[110].mxu0  ;;  %v10912_v56 = vpop.f32.mrb[110].mxu1  ;;  %v10925_v18 = vrot.slane %v5692_v52, %v11540_v59  ;;  %v11541_v31 = vld [vmem:[#allocation7_spill] sm:$0xff] }
0x10d0   :  { %11534 = vst [vmem:[#allocation28_spill] sm:$0xff] %v10910_v13  ;;  %11535 = vst [vmem:[#allocation29_spill] sm:$0xff] %v10912_v56  ;;  %v10920_v3 = vpop.f32.mrb[111].mxu0  ;;  %v10922_v57 = vpop.f32.mrb[111].mxu1  ;;  %v10928_v50 = vrot.slane %v5692_v52, %v11541_v31  ;;  %v5953_v13 = vadd.f32 %v10812_v51, %v10915_v16 }
0x10d1   :  { %11538 = vst [vmem:[#allocation30_spill] sm:$0xff] %v10920_v3  ;;  %11539 = vst [vmem:[#allocation31_spill] sm:$0xff] %v10922_v57  ;;  %v5955_v47 = vadd.f32 %v10816_v15, %v10925_v18 }
0x10d2   :  { %v6028_v3 = vadd.f32 %v10818_v27, %v10928_v50 }
0x10d5   :  { %v6326_v56 = vpop.f32.mrb[112].mxu0  ;;  %v6367_v57 = vpop.f32.mrb[112].mxu1 }
0x10d6   :  { %v6374_v63 = vadd.f32 %v6326_v56, %v5953_v13  ;;  %v6376_v59 = vadd.f32 %v6367_v57, %v6026_v21  ;;  %v6328_v20 = vpop.f32.mrb[113].mxu0  ;;  %v6369_v37 = vpop.f32.mrb[113].mxu1 }
0x10d7   :  { %v6375_v52 = vadd.f32 %v6328_v20, %v5955_v47  ;;  %v6377_v31 = vadd.f32 %v6369_v37, %v6028_v3  ;;  %v6330_v2 = vpop.f32.mrb[114].mxu0  ;;  %v6371_v48 = vpop.f32.mrb[114].mxu1  ;;  %v6032_v47 = vadd.f32 %v10826_v34, %v10928_v50 }
0x10d8   :  { %v6378_v51 = vmul.f32 0.5, %v6374_v63  ;;  %v6331_v23 = vpop.f32.mrb[115].mxu0  ;;  %v6372_v4 = vpop.f32.mrb[115].mxu1 }
0x10d9   :  { %v6382_v39 = vmul.f32 0.5, %v6375_v52  ;;  %v6387_v15 = vmul.f32 0.5, %v6377_v31 }
0x10da   :  { %8523 = vtanh.f32 %v6378_v51 }
0x10db   :  { %8525 = vtanh.f32 %v6382_v39 }
0x10dc   :  { %8527 = vtanh.f32 %v6376_v59 }
0x10dd   :  { %8529 = vtanh.f32 %v6387_v15 }
0x10e4   :  { %v8524_v62 = vpop.eup %8523 }
0x10e5   :  { %v8526_v27 = vpop.eup %8525  ;;  %v6380_v33 = vadd.f32 1.0, %v8524_v62  ;;  %v5959_v62 = vadd.f32 %v10824_v0, %v10925_v18 }
0x10e6   :  { %v6384_v41 = vadd.f32 1.0, %v8526_v27  ;;  %v8528_v13 = vpop.eup %8527 }
0x10e7   :  { %v6381_v57 = vmul.f32 0.5, %v6380_v33  ;;  %v8530_v4 = vpop.eup %8529  ;;  %v6030_v33 = vadd.f32 %v10822_v5, %v10918_v28 }
0x10e8   :  { %v6385_v56 = vmul.f32 0.5, %v6384_v41  ;;  %v6389_v23 = vadd.f32 1.0, %v8530_v4  ;;  %v5957_v41 = vadd.f32 %v10820_v22, %v10915_v16 }
0x10e9   :  { %v6392_v20 = vmul.f32 %v8528_v13, %v6381_v57 }
0x10ea   :  { %v6391_v37 = vmul.f32 0.0, %v6385_v56  ;;  %v6390_v48 = vmul.f32 0.5, %v6389_v23 }
0x10ec   :  { %v10938_v2 = vadd.f32 %v6392_v20, %v6391_v37 }
0x10ee   :  { %8531 = vtanh.f32 %v10938_v2 }
0x10f8   :  { %v8532_v3 = vpop.eup %8531 }
0x10f9   :  { %v6395_v63 = vmul.f32 %v8532_v3, %v6390_v48 }
0x10fb   :  { %v6400_v21 = vpack.c.bf16 %v6395_v63, %v6395_v63 }
0x10fd   :  { %6434 = vmatmul.mubr.bf16.vlgmr.msra.gmra.mrb[116].mxu0 %v6400_v21  ;;  %6475 = vmatmul.mubr.bf16.vlgmr.msra.gmra.mrb[116].mxu1 %v6400_v21 }
0x10fe   :  { %6511 = vmatpush1.bf16.msra.mxu0 %v10623_v54  ;;  %6552 = vmatpush1.bf16.msra.mxu1 %v10628_v8 }
0x10ff   :  { %6512 = vmatprep.subr.bf16.mxu0 %v10636_v61  ;;  %6553 = vmatprep.subr.bf16.mxu1 %v10641_v26 }
0x1100   :  { %6542 = vmatprep.mubr.bf16.mxu0 %v11438_v45  ;;  %6583 = vmatprep.mubr.bf16.mxu1 %v11438_v45 }
0x1102   :  { %6513 = vmatpush1.bf16.msra.mxu0 %v10646_v30  ;;  %6554 = vmatpush1.bf16.msra.mxu1 %v10651_v17 }
0x1103   :  { %6514 = vmatprep.subr.bf16.mxu0 %v10660_v12  ;;  %6555 = vmatprep.subr.bf16.mxu1 %v10665_v32 }
0x1106   :  { %6515 = vmatpush1.bf16.msra.mxu0 %v10670_v11  ;;  %6556 = vmatpush1.bf16.msra.mxu1 %v10675_v35 }
0x1107   :  { %6516 = vmatprep.subr.bf16.mxu0 %v10682_v40  ;;  %6557 = vmatprep.subr.bf16.mxu1 %v10687_v10 }
0x110a   :  { %6517 = vmatpush1.bf16.msra.mxu0 %v10692_v55  ;;  %6558 = vmatpush1.bf16.msra.mxu1 %v10697_v58 }
0x110b   :  { %6518 = vmatprep.subr.bf16.mxu0 %v10708_v19  ;;  %6559 = vmatprep.subr.bf16.mxu1 %v10713_v53 }
0x110e   :  { %6519 = vmatpush1.bf16.msra.mxu0 %v10718_v36  ;;  %6560 = vmatpush1.bf16.msra.mxu1 %v10723_v25 }
0x110f   :  { %6520 = vmatprep.subr.bf16.mxu0 %v10732_v29  ;;  %6561 = vmatprep.subr.bf16.mxu1 %v10737_v38 }
0x1112   :  { %6521 = vmatpush1.bf16.msra.mxu0 %v10742_v9  ;;  %6562 = vmatpush1.bf16.msra.mxu1 %v10747_v6 }
0x1113   :  { %6522 = vmatprep.subr.bf16.mxu0 %v10756_v43  ;;  %6563 = vmatprep.subr.bf16.mxu1 %v10761_v46 }
0x1116   :  { %6523 = vmatpush1.bf16.msra.mxu0 %v10766_v60  ;;  %6564 = vmatpush1.bf16.msra.mxu1 %v10771_v42 }
0x1117   :  { %6524 = vmatprep.subr.bf16.mxu0 %v10780_v44  ;;  %6565 = vmatprep.subr.bf16.mxu1 %v10785_v7 }
0x111a   :  { %6525 = vmatpush1.bf16.msra.mxu0 %v10790_v1  ;;  %6566 = vmatpush1.bf16.msra.mxu1 %v10795_v49 }
0x111b   :  { %6619 = vmatprep.subr.bf16.mxu0 %v10612_v14  ;;  %6660 = vmatprep.subr.bf16.mxu1 %v10617_v24 }
0x11d0   :  { %v6435_v59 = vpop.f32.mrb[116].mxu0  ;;  %v6476_v52 = vpop.f32.mrb[116].mxu1 }
0x11d1   :  { %v6483_v31 = vadd.f32 %v6435_v59, %v5957_v41  ;;  %v6485_v51 = vadd.f32 %v6476_v52, %v6030_v33  ;;  %v6437_v39 = vpop.f32.mrb[117].mxu0  ;;  %v6478_v15 = vpop.f32.mrb[117].mxu1 }
0x11d2   :  { %v6484_v27 = vadd.f32 %v6437_v39, %v5959_v62  ;;  %v6486_v57 = vadd.f32 %v6478_v15, %v6032_v47  ;;  %v6439_v13 = vpop.f32.mrb[118].mxu0  ;;  %v6480_v56 = vpop.f32.mrb[118].mxu1 }
0x11d3   :  { %v6487_v22 = vmul.f32 0.5, %v6483_v31  ;;  %v6440_v20 = vpop.f32.mrb[119].mxu0  ;;  %v6481_v37 = vpop.f32.mrb[119].mxu1  ;;  %v11544_v13 = vld [vmem:[#allocation11_spill] sm:$0xff] }
0x11d4   :  { %v6491_v5 = vmul.f32 0.5, %v6484_v27  ;;  %v6496_v0 = vmul.f32 0.5, %v6486_v57  ;;  %v11543_v27 = vld [vmem:[#allocation10_spill] sm:$0xff]  ;;  %v5965_v56 = vadd.f32 %v11544_v13, %v10925_v18 }
0x11d5   :  { %8533 = vtanh.f32 %v6487_v22  ;;  %v6036_v57 = vadd.f32 %v11543_v27, %v10918_v28  ;;  %v11545_v22 = vld [vmem:[#allocation12_spill] sm:$0xff] }
0x11d6   :  { %8535 = vtanh.f32 %v6491_v5  ;;  %v6038_v20 = vadd.f32 %v11545_v22, %v10928_v50 }
0x11d7   :  { %8537 = vtanh.f32 %v6485_v51 }
0x11d8   :  { %8539 = vtanh.f32 %v6496_v0 }
0x11df   :  { %v8534_v4 = vpop.eup %8533 }
0x11e0   :  { %v8536_v34 = vpop.eup %8535  ;;  %v6489_v23 = vadd.f32 1.0, %v8534_v4 }
0x11e1   :  { %v6493_v48 = vadd.f32 1.0, %v8536_v34  ;;  %v8538_v63 = vpop.eup %8537 }
0x11e2   :  { %v6490_v3 = vmul.f32 0.5, %v6489_v23  ;;  %v8540_v47 = vpop.eup %8539 }
0x11e3   :  { %v6494_v21 = vmul.f32 0.5, %v6493_v48  ;;  %v6498_v59 = vadd.f32 1.0, %v8540_v47 }
0x11e4   :  { %v6501_v41 = vmul.f32 %v8538_v63, %v6490_v3 }
0x11e5   :  { %v6500_v33 = vmul.f32 %v6494_v21, %v10938_v2  ;;  %v6499_v52 = vmul.f32 0.5, %v6498_v59  ;;  %v11542_v2 = vld [vmem:[#allocation9_spill] sm:$0xff] }
0x11e6   :  { %v5963_v15 = vadd.f32 %v11542_v2, %v10915_v16 }
0x11e7   :  { %v10984_v62 = vadd.f32 %v6501_v41, %v6500_v33 }
0x11e9   :  { %8541 = vtanh.f32 %v10984_v62 }
0x11f3   :  { %v8542_v31 = vpop.eup %8541 }
0x11f4   :  { %v6504_v51 = vmul.f32 %v8542_v31, %v6499_v52 }
0x11f6   :  { %v6509_v39 = vpack.c.bf16 %v6504_v51, %v6504_v51 }
0x11f8   :  { %6543 = vmatmul.mubr.bf16.vlgmr.msra.gmra.mrb[120].mxu0 %v6509_v39  ;;  %6584 = vmatmul.mubr.bf16.vlgmr.msra.gmra.mrb[120].mxu1 %v6509_v39 }
0x11f9   :  { %6620 = vmatpush1.bf16.msra.mxu0 %v10623_v54  ;;  %6661 = vmatpush1.bf16.msra.mxu1 %v10628_v8 }
0x11fa   :  { %6621 = vmatprep.subr.bf16.mxu0 %v10636_v61  ;;  %6662 = vmatprep.subr.bf16.mxu1 %v10641_v26 }
0x11fb   :  { %6651 = vmatprep.mubr.bf16.mxu0 %v11438_v45  ;;  %6692 = vmatprep.mubr.bf16.mxu1 %v11438_v45 }
0x11fd   :  { %6622 = vmatpush1.bf16.msra.mxu0 %v10646_v30  ;;  %6663 = vmatpush1.bf16.msra.mxu1 %v10651_v17 }
0x11fe   :  { %6623 = vmatprep.subr.bf16.mxu0 %v10660_v12  ;;  %6664 = vmatprep.subr.bf16.mxu1 %v10665_v32 }
0x1201   :  { %6624 = vmatpush1.bf16.msra.mxu0 %v10670_v11  ;;  %6665 = vmatpush1.bf16.msra.mxu1 %v10675_v35 }
0x1202   :  { %6625 = vmatprep.subr.bf16.mxu0 %v10682_v40  ;;  %6666 = vmatprep.subr.bf16.mxu1 %v10687_v10 }
0x1205   :  { %6626 = vmatpush1.bf16.msra.mxu0 %v10692_v55  ;;  %6667 = vmatpush1.bf16.msra.mxu1 %v10697_v58 }
0x1206   :  { %6627 = vmatprep.subr.bf16.mxu0 %v10708_v19  ;;  %6668 = vmatprep.subr.bf16.mxu1 %v10713_v53 }
0x1209   :  { %6628 = vmatpush1.bf16.msra.mxu0 %v10718_v36  ;;  %6669 = vmatpush1.bf16.msra.mxu1 %v10723_v25 }
0x120a   :  { %6629 = vmatprep.subr.bf16.mxu0 %v10732_v29  ;;  %6670 = vmatprep.subr.bf16.mxu1 %v10737_v38 }
0x120d   :  { %6630 = vmatpush1.bf16.msra.mxu0 %v10742_v9  ;;  %6671 = vmatpush1.bf16.msra.mxu1 %v10747_v6 }
0x120e   :  { %6631 = vmatprep.subr.bf16.mxu0 %v10756_v43  ;;  %6672 = vmatprep.subr.bf16.mxu1 %v10761_v46 }
0x1211   :  { %6632 = vmatpush1.bf16.msra.mxu0 %v10766_v60  ;;  %6673 = vmatpush1.bf16.msra.mxu1 %v10771_v42 }
0x1212   :  { %6633 = vmatprep.subr.bf16.mxu0 %v10780_v44  ;;  %6674 = vmatprep.subr.bf16.mxu1 %v10785_v7 }
0x1215   :  { %6634 = vmatpush1.bf16.msra.mxu0 %v10790_v1  ;;  %6675 = vmatpush1.bf16.msra.mxu1 %v10795_v49 }
0x1216   :  { %6728 = vmatprep.subr.bf16.mxu0 %v10612_v14  ;;  %6769 = vmatprep.subr.bf16.mxu1 %v10617_v24 }
0x12cb   :  { %v6544_v37 = vpop.f32.mrb[120].mxu0  ;;  %v6585_v5 = vpop.f32.mrb[120].mxu1 }
0x12cc   :  { %v6592_v0 = vadd.f32 %v6544_v37, %v5963_v15  ;;  %v6594_v4 = vadd.f32 %v6585_v5, %v6036_v57  ;;  %v6546_v34 = vpop.f32.mrb[121].mxu0  ;;  %v6587_v23 = vpop.f32.mrb[121].mxu1 }
0x12cd   :  { %v6593_v48 = vadd.f32 %v6546_v34, %v5965_v56  ;;  %v6595_v3 = vadd.f32 %v6587_v23, %v6038_v20  ;;  %v6548_v63 = vpop.f32.mrb[122].mxu0  ;;  %v6589_v21 = vpop.f32.mrb[122].mxu1 }
0x12ce   :  { %v6596_v41 = vmul.f32 0.5, %v6592_v0  ;;  %v6549_v33 = vpop.f32.mrb[123].mxu0  ;;  %v6590_v47 = vpop.f32.mrb[123].mxu1  ;;  %v11548_v63 = vld [vmem:[#allocation15_spill] sm:$0xff] }
0x12cf   :  { %v6600_v59 = vmul.f32 0.5, %v6593_v48  ;;  %v6605_v52 = vmul.f32 0.5, %v6595_v3  ;;  %v11547_v48 = vld [vmem:[#allocation14_spill] sm:$0xff]  ;;  %v5969_v21 = vadd.f32 %v11548_v63, %v10925_v18 }
0x12d0   :  { %8543 = vtanh.f32 %v6596_v41  ;;  %v6040_v3 = vadd.f32 %v11547_v48, %v10918_v28  ;;  %v11549_v41 = vld [vmem:[#allocation16_spill] sm:$0xff] }
0x12d1   :  { %8545 = vtanh.f32 %v6600_v59  ;;  %v6042_v33 = vadd.f32 %v11549_v41, %v10928_v50 }
0x12d2   :  { %8547 = vtanh.f32 %v6594_v4 }
0x12d3   :  { %8549 = vtanh.f32 %v6605_v52 }
0x12da   :  { %v8544_v31 = vpop.eup %8543 }
0x12db   :  { %v8546_v51 = vpop.eup %8545  ;;  %v6598_v39 = vadd.f32 1.0, %v8544_v31 }
0x12dc   :  { %v6602_v2 = vadd.f32 1.0, %v8546_v51  ;;  %v8548_v27 = vpop.eup %8547 }
0x12dd   :  { %v6599_v15 = vmul.f32 0.5, %v6598_v39  ;;  %v8550_v20 = vpop.eup %8549 }
0x12de   :  { %v6603_v57 = vmul.f32 0.5, %v6602_v2  ;;  %v6607_v37 = vadd.f32 1.0, %v8550_v20 }
0x12df   :  { %v6610_v13 = vmul.f32 %v8548_v27, %v6599_v15 }
0x12e0   :  { %v6609_v56 = vmul.f32 %v6603_v57, %v10984_v62  ;;  %v6608_v5 = vmul.f32 0.5, %v6607_v37  ;;  %v11546_v62 = vld [vmem:[#allocation13_spill] sm:$0xff] }
0x12e1   :  { %v5967_v23 = vadd.f32 %v11546_v62, %v10915_v16 }
0x12e2   :  { %v11030_v22 = vadd.f32 %v6610_v13, %v6609_v56 }
0x12e4   :  { %8551 = vtanh.f32 %v11030_v22 }
0x12ee   :  { %v8552_v0 = vpop.eup %8551 }
0x12ef   :  { %v6613_v4 = vmul.f32 %v8552_v0, %v6608_v5 }
0x12f1   :  { %v6618_v34 = vpack.c.bf16 %v6613_v4, %v6613_v4 }
0x12f3   :  { %6652 = vmatmul.mubr.bf16.vlgmr.msra.gmra.mrb[124].mxu0 %v6618_v34  ;;  %6693 = vmatmul.mubr.bf16.vlgmr.msra.gmra.mrb[124].mxu1 %v6618_v34 }
0x12f4   :  { %6729 = vmatpush1.bf16.msra.mxu0 %v10623_v54  ;;  %6770 = vmatpush1.bf16.msra.mxu1 %v10628_v8 }
0x12f5   :  { %6730 = vmatprep.subr.bf16.mxu0 %v10636_v61  ;;  %6771 = vmatprep.subr.bf16.mxu1 %v10641_v26 }
0x12f6   :  { %6760 = vmatprep.mubr.bf16.mxu0 %v11438_v45  ;;  %6801 = vmatprep.mubr.bf16.mxu1 %v11438_v45 }
0x12f8   :  { %6731 = vmatpush1.bf16.msra.mxu0 %v10646_v30  ;;  %6772 = vmatpush1.bf16.msra.mxu1 %v10651_v17 }
0x12f9   :  { %6732 = vmatprep.subr.bf16.mxu0 %v10660_v12  ;;  %6773 = vmatprep.subr.bf16.mxu1 %v10665_v32 }
0x12fc   :  { %6733 = vmatpush1.bf16.msra.mxu0 %v10670_v11  ;;  %6774 = vmatpush1.bf16.msra.mxu1 %v10675_v35 }
0x12fd   :  { %6734 = vmatprep.subr.bf16.mxu0 %v10682_v40  ;;  %6775 = vmatprep.subr.bf16.mxu1 %v10687_v10 }
0x1300   :  { %6735 = vmatpush1.bf16.msra.mxu0 %v10692_v55  ;;  %6776 = vmatpush1.bf16.msra.mxu1 %v10697_v58 }
0x1301   :  { %6736 = vmatprep.subr.bf16.mxu0 %v10708_v19  ;;  %6777 = vmatprep.subr.bf16.mxu1 %v10713_v53 }
0x1304   :  { %6737 = vmatpush1.bf16.msra.mxu0 %v10718_v36  ;;  %6778 = vmatpush1.bf16.msra.mxu1 %v10723_v25 }
0x1305   :  { %6738 = vmatprep.subr.bf16.mxu0 %v10732_v29  ;;  %6779 = vmatprep.subr.bf16.mxu1 %v10737_v38 }
0x1308   :  { %6739 = vmatpush1.bf16.msra.mxu0 %v10742_v9  ;;  %6780 = vmatpush1.bf16.msra.mxu1 %v10747_v6 }
0x1309   :  { %6740 = vmatprep.subr.bf16.mxu0 %v10756_v43  ;;  %6781 = vmatprep.subr.bf16.mxu1 %v10761_v46 }
0x130c   :  { %6741 = vmatpush1.bf16.msra.mxu0 %v10766_v60  ;;  %6782 = vmatpush1.bf16.msra.mxu1 %v10771_v42 }
0x130d   :  { %6742 = vmatprep.subr.bf16.mxu0 %v10780_v44  ;;  %6783 = vmatprep.subr.bf16.mxu1 %v10785_v7 }
0x1310   :  { %6743 = vmatpush1.bf16.msra.mxu0 %v10790_v1  ;;  %6784 = vmatpush1.bf16.msra.mxu1 %v10795_v49 }
0x1311   :  { %6837 = vmatprep.subr.bf16.mxu0 %v10612_v14  ;;  %6878 = vmatprep.subr.bf16.mxu1 %v10617_v24 }
0x13c6   :  { %v6653_v47 = vpop.f32.mrb[124].mxu0  ;;  %v6694_v59 = vpop.f32.mrb[124].mxu1 }
0x13c7   :  { %v6701_v52 = vadd.f32 %v6653_v47, %v5967_v23  ;;  %v6703_v31 = vadd.f32 %v6694_v59, %v6040_v3  ;;  %v6655_v51 = vpop.f32.mrb[125].mxu0  ;;  %v6696_v14 = vpop.f32.mrb[125].mxu1 }
0x13c8   :  { %v6702_v39 = vadd.f32 %v6655_v51, %v5969_v21  ;;  %v6704_v24 = vadd.f32 %v6696_v14, %v6042_v33  ;;  %v6657_v2 = vpop.f32.mrb[126].mxu0  ;;  %v6698_v15 = vpop.f32.mrb[126].mxu1 }
0x13c9   :  { %v6705_v27 = vmul.f32 0.5, %v6701_v52  ;;  %v6658_v57 = vpop.f32.mrb[127].mxu0  ;;  %v6699_v13 = vpop.f32.mrb[127].mxu1 }
0x13ca   :  { %v6709_v56 = vmul.f32 0.5, %v6702_v39  ;;  %v6714_v20 = vmul.f32 0.5, %v6704_v24 }
0x13cb   :  { %8553 = vtanh.f32 %v6705_v27 }
0x13cc   :  { %8555 = vtanh.f32 %v6709_v56 }
0x13cd   :  { %8557 = vtanh.f32 %v6703_v31 }
0x13ce   :  { %8559 = vtanh.f32 %v6714_v20 }
0x13d5   :  { %v8554_v37 = vpop.eup %8553 }
0x13d6   :  { %v8556_v5 = vpop.eup %8555  ;;  %v6707_v0 = vadd.f32 1.0, %v8554_v37 }
0x13d7   :  { %v6711_v4 = vadd.f32 1.0, %v8556_v5  ;;  %v8558_v62 = vpop.eup %8557 }
0x13d8   :  { %v6708_v34 = vmul.f32 0.5, %v6707_v0  ;;  %v8560_v21 = vpop.eup %8559 }
0x13d9   :  { %v6712_v23 = vmul.f32 0.5, %v6711_v4  ;;  %v6716_v41 = vadd.f32 1.0, %v8560_v21 }
0x13da   :  { %v6719_v48 = vmul.f32 %v8558_v62, %v6708_v34 }
0x13db   :  { %v6718_v3 = vmul.f32 %v6712_v23, %v11030_v22  ;;  %v6717_v33 = vmul.f32 0.5, %v6716_v41  ;;  %v11138_v41 = vld [vmem:[%s11395_s8] ss:$16 sps:$4 sm:$0xff]  }
0x13dd   :  { %v11076_v63 = vadd.f32 %v6719_v48, %v6718_v3 }
0x13df   :  { %8561 = vtanh.f32 %v11076_v63 }
0x13e9   :  { %v8562_v47 = vpop.eup %8561 }
0x13ea   :  { %v6722_v59 = vmul.f32 %v8562_v47, %v6717_v33  ;;  %v11150_v33 = vld [vmem:[%s11395_s8 + $0x24] ss:$16 sps:$4 sm:$0xff]   ;;  %v11156_v47 = vld [vmem:[%s11395_s8 + $0x2c] ss:$16 sps:$4 sm:$0xff]  }
0x13ec   :  { %v6727_v52 = vpack.c.bf16 %v6722_v59, %v6722_v59  ;;  %v11164_v59 = vld [vmem:[%s11395_s8 + $0x20] ss:$16 sps:$4 sm:$0xff]  }
0x13ee   :  { %6761 = vmatmul.mubr.bf16.vlgmr.msra.gmra.mrb[128].mxu0 %v6727_v52  ;;  %6802 = vmatmul.mubr.bf16.vlgmr.msra.gmra.mrb[128].mxu1 %v6727_v52  ;;  %v11170_v52 = vld [vmem:[%s11395_s8 + $0x28] ss:$16 sps:$4 sm:$0xff]  }
0x13ef   :  { %6838 = vmatpush1.bf16.msra.mxu0 %v10623_v54  ;;  %6879 = vmatpush1.bf16.msra.mxu1 %v10628_v8  ;;  %v11114_v54 = vld [vmem:[%s11395_s8 + $0x4] ss:$16 sps:$4 sm:$0xff]   ;;  %v11120_v8 = vld [vmem:[%s11395_s8 + $0xc] ss:$16 sps:$4 sm:$0xff]  }
0x13f0   :  { %6839 = vmatprep.subr.bf16.mxu0 %v10636_v61  ;;  %6880 = vmatprep.subr.bf16.mxu1 %v10641_v26  ;;  %v11550_v61 = vld [vmem:[#allocation17_spill] sm:$0xff] }
0x13f1   :  { %6869 = vmatprep.mubr.bf16.mxu0 %v11438_v45  ;;  %6910 = vmatprep.mubr.bf16.mxu1 %v11438_v45  ;;  %v5973_v26 = vadd.f32 %v11550_v61, %v10915_v16  ;;  %v11176_v61 = vld [vmem:[%s11395_s8 + $0x44] ss:$16 sps:$4 sm:$0xff]  }
0x13f3   :  { %6840 = vmatpush1.bf16.msra.mxu0 %v10646_v30  ;;  %6881 = vmatpush1.bf16.msra.mxu1 %v10651_v17  ;;  %v11551_v30 = vld [vmem:[#allocation18_spill] sm:$0xff] }
0x13f4   :  { %6841 = vmatprep.subr.bf16.mxu0 %v10660_v12  ;;  %6882 = vmatprep.subr.bf16.mxu1 %v10665_v32  ;;  %v6046_v17 = vadd.f32 %v11551_v30, %v10918_v28  ;;  %v11552_v12 = vld [vmem:[#allocation19_spill] sm:$0xff]  ;;  %v11188_v30 = vld [vmem:[%s11395_s8 + $0x40] ss:$16 sps:$4 sm:$0xff]  }
0x13f5   :  { %v5975_v32 = vadd.f32 %v11552_v12, %v10925_v18  ;;  %v11200_v12 = vld [vmem:[%s11395_s8 + $0x64] ss:$16 sps:$4 sm:$0xff]  }
0x13f7   :  { %6842 = vmatpush1.bf16.msra.mxu0 %v10670_v11  ;;  %6883 = vmatpush1.bf16.msra.mxu1 %v10675_v35  ;;  %v11553_v11 = vld [vmem:[#allocation20_spill] sm:$0xff] }
0x13f8   :  { %6843 = vmatprep.subr.bf16.mxu0 %v10682_v40  ;;  %6884 = vmatprep.subr.bf16.mxu1 %v10687_v10  ;;  %v6048_v35 = vadd.f32 %v11553_v11, %v10928_v50  ;;  %v11212_v11 = vld [vmem:[%s11395_s8 + $0x60] ss:$16 sps:$4 sm:$0xff]  }
0x13fb   :  { %6844 = vmatpush1.bf16.msra.mxu0 %v10692_v55  ;;  %6885 = vmatpush1.bf16.msra.mxu1 %v10697_v58 }
0x13fc   :  { %6845 = vmatprep.subr.bf16.mxu0 %v10708_v19  ;;  %6886 = vmatprep.subr.bf16.mxu1 %v10713_v53 }
0x13ff   :  { %6846 = vmatpush1.bf16.msra.mxu0 %v10718_v36  ;;  %6887 = vmatpush1.bf16.msra.mxu1 %v10723_v25 }
0x1400   :  { %6847 = vmatprep.subr.bf16.mxu0 %v10732_v29  ;;  %6888 = vmatprep.subr.bf16.mxu1 %v10737_v38 }
0x1403   :  { %6848 = vmatpush1.bf16.msra.mxu0 %v10742_v9  ;;  %6889 = vmatpush1.bf16.msra.mxu1 %v10747_v6 }
0x1404   :  { %6849 = vmatprep.subr.bf16.mxu0 %v10756_v43  ;;  %6890 = vmatprep.subr.bf16.mxu1 %v10761_v46 }
0x1407   :  { %6850 = vmatpush1.bf16.msra.mxu0 %v10766_v60  ;;  %6891 = vmatpush1.bf16.msra.mxu1 %v10771_v42 }
0x1408   :  { %6851 = vmatprep.subr.bf16.mxu0 %v10780_v44  ;;  %6892 = vmatprep.subr.bf16.mxu1 %v10785_v7 }
0x140b   :  { %6852 = vmatpush1.bf16.msra.mxu0 %v10790_v1  ;;  %6893 = vmatpush1.bf16.msra.mxu1 %v10795_v49 }
0x140c   :  { %6946 = vmatprep.subr.bf16.mxu0 %v11114_v54  ;;  %6987 = vmatprep.subr.bf16.mxu1 %v11120_v8 }
0x14c1   :  { %v6762_v40 = vpop.f32.mrb[128].mxu0  ;;  %v6803_v10 = vpop.f32.mrb[128].mxu1 }
0x14c2   :  { %v6810_v55 = vadd.f32 %v6762_v40, %v5973_v26  ;;  %v6812_v58 = vadd.f32 %v6803_v10, %v6046_v17  ;;  %v6764_v19 = vpop.f32.mrb[129].mxu0  ;;  %v6805_v53 = vpop.f32.mrb[129].mxu1  ;;  %v11182_v26 = vld [vmem:[%s11395_s8 + $0x4c] ss:$16 sps:$4 sm:$0xff]   ;;  %v11194_v17 = vld [vmem:[%s11395_s8 + $0x48] ss:$16 sps:$4 sm:$0xff]  }
0x14c3   :  { %v6811_v36 = vadd.f32 %v6764_v19, %v5975_v32  ;;  %v6813_v25 = vadd.f32 %v6805_v53, %v6048_v35  ;;  %v6766_v22 = vpop.f32.mrb[130].mxu0  ;;  %v6807_v31 = vpop.f32.mrb[130].mxu1  ;;  %v11206_v32 = vld [vmem:[%s11395_s8 + $0x6c] ss:$16 sps:$4 sm:$0xff]   ;;  %v11218_v35 = vld [vmem:[%s11395_s8 + $0x68] ss:$16 sps:$4 sm:$0xff]  }
0x14c4   :  { %v6814_v51 = vmul.f32 0.5, %v6810_v55  ;;  %v6767_v14 = vpop.f32.mrb[131].mxu0  ;;  %v6808_v39 = vpop.f32.mrb[131].mxu1  ;;  %v11224_v40 = vld [vmem:[%s11395_s8 + $0x84] ss:$16 sps:$4 sm:$0xff]  }
0x14c5   :  { %v6818_v24 = vmul.f32 0.5, %v6811_v36  ;;  %v6823_v2 = vmul.f32 0.5, %v6813_v25  ;;  %v11230_v10 = vld [vmem:[%s11395_s8 + $0x8c] ss:$16 sps:$4 sm:$0xff]   ;;  %v11236_v55 = vld [vmem:[%s11395_s8 + $0x80] ss:$16 sps:$4 sm:$0xff]  }
0x14c6   :  { %8563 = vtanh.f32 %v6814_v51 }
0x14c7   :  { %8565 = vtanh.f32 %v6818_v24 }
0x14c8   :  { %8567 = vtanh.f32 %v6812_v58  ;;  %v11242_v58 = vld [vmem:[%s11395_s8 + $0x88] ss:$16 sps:$4 sm:$0xff]  }
0x14c9   :  { %8569 = vtanh.f32 %v6823_v2 }
0x14d0   :  { %v8564_v15 = vpop.eup %8563 }
0x14d1   :  { %v8566_v27 = vpop.eup %8565  ;;  %v6816_v57 = vadd.f32 1.0, %v8564_v15 }
0x14d2   :  { %v6820_v13 = vadd.f32 1.0, %v8566_v27  ;;  %v8568_v20 = vpop.eup %8567 }
0x14d3   :  { %v6817_v56 = vmul.f32 0.5, %v6816_v57  ;;  %v8570_v34 = vpop.eup %8569 }
0x14d4   :  { %v6821_v37 = vmul.f32 0.5, %v6820_v13  ;;  %v6825_v62 = vadd.f32 1.0, %v8570_v34 }
0x14d5   :  { %v6828_v5 = vmul.f32 %v8568_v20, %v6817_v56 }
0x14d6   :  { %v6827_v0 = vmul.f32 %v6821_v37, %v11076_v63  ;;  %v6826_v23 = vmul.f32 0.5, %v6825_v62  ;;  %v11144_v63 = vld [vmem:[%s11395_s8 + $0x8] ss:$16 sps:$4 sm:$0xff]  }
0x14d8   :  { %v11132_v4 = vadd.f32 %v6828_v5, %v6827_v0 }
0x14da   :  { %8571 = vtanh.f32 %v11132_v4 }
0x14e4   :  { %v8572_v48 = vpop.eup %8571 }
0x14e5   :  { %v6831_v3 = vmul.f32 %v8572_v48, %v6826_v23 }
0x14e7   :  { %v6836_v21 = vpack.c.bf16 %v6831_v3, %v6831_v3 }
0x14e9   :  { %6870 = vmatmul.mubr.bf16.vlgmr.msra.gmra.mrb[132].mxu0 %v6836_v21  ;;  %6911 = vmatmul.mubr.bf16.vlgmr.msra.gmra.mrb[132].mxu1 %v6836_v21  ;;  %v8629_v21 = vld [vmem:[%s11395_s8 + $0xa0] ss:$16 sps:$4 sm:$0xff]  }
0x14ea   :  { %6947 = vmatpush1.bf16.msra.mxu0 %v11138_v41  ;;  %6988 = vmatpush1.bf16.msra.mxu1 %v11144_v63 }
0x14eb   :  { %6948 = vmatprep.subr.bf16.mxu0 %v11150_v33  ;;  %6989 = vmatprep.subr.bf16.mxu1 %v11156_v47 }
0x14ec   :  { %6978 = vmatprep.mubr.bf16.mxu0 %v11438_v45  ;;  %7019 = vmatprep.mubr.bf16.mxu1 %v11438_v45 }
0x14ee   :  { %6949 = vmatpush1.bf16.msra.mxu0 %v11164_v59  ;;  %6990 = vmatpush1.bf16.msra.mxu1 %v11170_v52 }
0x14ef   :  { %6950 = vmatprep.subr.bf16.mxu0 %v11176_v61  ;;  %6991 = vmatprep.subr.bf16.mxu1 %v11182_v26 }
0x14f2   :  { %6951 = vmatpush1.bf16.msra.mxu0 %v11188_v30  ;;  %6992 = vmatpush1.bf16.msra.mxu1 %v11194_v17 }
0x14f3   :  { %6952 = vmatprep.subr.bf16.mxu0 %v11200_v12  ;;  %6993 = vmatprep.subr.bf16.mxu1 %v11206_v32 }
0x14f6   :  { %6953 = vmatpush1.bf16.msra.mxu0 %v11212_v11  ;;  %6994 = vmatpush1.bf16.msra.mxu1 %v11218_v35 }
0x14f7   :  { %6954 = vmatprep.subr.bf16.mxu0 %v11224_v40  ;;  %6995 = vmatprep.subr.bf16.mxu1 %v11230_v10 }
0x14fa   :  { %6955 = vmatpush1.bf16.msra.mxu0 %v11236_v55  ;;  %6996 = vmatpush1.bf16.msra.mxu1 %v11242_v58 }
0x14fb   :  { %6956 = vmatprep.subr.bf16.mxu0 %v10732_v29  ;;  %6997 = vmatprep.subr.bf16.mxu1 %v10737_v38  ;;  %v11554_v29 = vld [vmem:[#allocation21_spill] sm:$0xff] }
0x14fc   :  { %v5977_v38 = vadd.f32 %v11554_v29, %v10915_v16 }
0x14fe   :  { %6957 = vmatpush1.bf16.msra.mxu0 %v10742_v9  ;;  %6998 = vmatpush1.bf16.msra.mxu1 %v10747_v6  ;;  %v11555_v9 = vld [vmem:[#allocation22_spill] sm:$0xff] }
0x14ff   :  { %6958 = vmatprep.subr.bf16.mxu0 %v10756_v43  ;;  %6999 = vmatprep.subr.bf16.mxu1 %v10761_v46  ;;  %v6050_v6 = vadd.f32 %v11555_v9, %v10918_v28  ;;  %v11556_v43 = vld [vmem:[#allocation23_spill] sm:$0xff] }
0x1500   :  { %v5979_v46 = vadd.f32 %v11556_v43, %v10925_v18 }
0x1502   :  { %6959 = vmatpush1.bf16.msra.mxu0 %v10766_v60  ;;  %7000 = vmatpush1.bf16.msra.mxu1 %v10771_v42  ;;  %v11557_v60 = vld [vmem:[#allocation24_spill] sm:$0xff] }
0x1503   :  { %6960 = vmatprep.subr.bf16.mxu0 %v10780_v44  ;;  %7001 = vmatprep.subr.bf16.mxu1 %v10785_v7  ;;  %v6052_v42 = vadd.f32 %v11557_v60, %v10928_v50 }
0x1506   :  { %6961 = vmatpush1.bf16.msra.mxu0 %v10790_v1  ;;  %7002 = vmatpush1.bf16.msra.mxu1 %v10795_v49 }
0x1507   :  { %7055 = vmatprep.subr.bf16.mxu0 %v11114_v54  ;;  %7096 = vmatprep.subr.bf16.mxu1 %v11120_v8 }
0x15bc   :  { %v6871_v44 = vpop.f32.mrb[132].mxu0  ;;  %v6912_v7 = vpop.f32.mrb[132].mxu1 }
0x15bd   :  { %v6919_v1 = vadd.f32 %v6871_v44, %v5977_v38  ;;  %v6921_v49 = vadd.f32 %v6912_v7, %v6050_v6  ;;  %v6873_v19 = vpop.f32.mrb[133].mxu0  ;;  %v6914_v54 = vpop.f32.mrb[133].mxu1 }
0x15be   :  { %v6920_v53 = vadd.f32 %v6873_v19, %v5979_v46  ;;  %v6922_v8 = vadd.f32 %v6914_v54, %v6052_v42  ;;  %v6875_v36 = vpop.f32.mrb[134].mxu0  ;;  %v6916_v25 = vpop.f32.mrb[134].mxu1 }
0x15bf   :  { %v6923_v22 = vmul.f32 0.5, %v6919_v1  ;;  %v6876_v31 = vpop.f32.mrb[135].mxu0  ;;  %v6917_v51 = vpop.f32.mrb[135].mxu1 }
0x15c0   :  { %v6927_v14 = vmul.f32 0.5, %v6920_v53  ;;  %v6932_v39 = vmul.f32 0.5, %v6922_v8 }
0x15c1   :  { %8573 = vtanh.f32 %v6923_v22 }
0x15c2   :  { %8575 = vtanh.f32 %v6927_v14 }
0x15c3   :  { %8577 = vtanh.f32 %v6921_v49 }
0x15c4   :  { %8579 = vtanh.f32 %v6932_v39 }
0x15cb   :  { %v8574_v24 = vpop.eup %8573 }
0x15cc   :  { %v8576_v2 = vpop.eup %8575  ;;  %v6925_v15 = vadd.f32 1.0, %v8574_v24 }
0x15cd   :  { %v6929_v27 = vadd.f32 1.0, %v8576_v2  ;;  %v8578_v13 = vpop.eup %8577 }
0x15ce   :  { %v6926_v57 = vmul.f32 0.5, %v6925_v15  ;;  %v8580_v0 = vpop.eup %8579 }
0x15cf   :  { %v6930_v56 = vmul.f32 0.5, %v6929_v27  ;;  %v6934_v34 = vadd.f32 1.0, %v8580_v0  ;;  %v8357_v0 = vld [vmem:[%s11397_s10 + $0x10] sm:$0xff]  }
0x15d0   :  { %v6937_v20 = vmul.f32 %v8578_v13, %v6926_v57 }
0x15d1   :  { %v6936_v37 = vmul.f32 %v6930_v56, %v11132_v4  ;;  %v6935_v62 = vmul.f32 0.5, %v6934_v34  ;;  %v8628_v4 = vld [vmem:[%s11395_s8 + $0xac] ss:$16 sps:$4 sm:$0xff]  }
0x15d2   :  { %v8358_v34 = vld [vmem:[%s11397_s10 + $0x18] sm:$0xff]  }
0x15d3   :  { %v11268_v5 = vadd.f32 %v6937_v20, %v6936_v37  ;;  %v8355_v37 = vld [vmem:[%s11397_s10] sm:$0xff]  }
0x15d5   :  { %8581 = vtanh.f32 %v11268_v5 }
0x15df   :  { %v8582_v23 = vpop.eup %8581 }
0x15e0   :  { %v6940_v48 = vmul.f32 %v8582_v23, %v6935_v62  ;;  %v8359_v62 = vld [vmem:[%s11397_s10 + $0x20] sm:$0xff]   ;;  %v8360_v23 = vld [vmem:[%s11397_s10 + $0x28] sm:$0xff]  }
0x15e2   :  { %v6945_v3 = vpack.c.bf16 %v6940_v48, %v6940_v48  ;;  %v8361_v48 = vld [vmem:[%s11397_s10 + $0x30] sm:$0xff]  }
0x15e4   :  { %6979 = vmatmul.mubr.bf16.vlgmr.msra.gmra.mrb[136].mxu0 %v6945_v3  ;;  %7020 = vmatmul.mubr.bf16.vlgmr.msra.gmra.mrb[136].mxu1 %v6945_v3  ;;  %v8362_v3 = vld [vmem:[%s11397_s10 + $0x38] sm:$0xff]  }
0x15e5   :  { %7056 = vmatpush1.bf16.msra.mxu0 %v11138_v41  ;;  %7097 = vmatpush1.bf16.msra.mxu1 %v11144_v63  ;;  %v8630_v41 = vld [vmem:[%s11395_s8 + $0xa8] ss:$16 sps:$4 sm:$0xff]   ;;  %v8631_v63 = vld [vmem:[%s11395_s8 + $0xc4] ss:$16 sps:$4 sm:$0xff]  }
0x15e6   :  { %7057 = vmatprep.subr.bf16.mxu0 %v11150_v33  ;;  %7098 = vmatprep.subr.bf16.mxu1 %v11156_v47  ;;  %v8632_v33 = vld [vmem:[%s11395_s8 + $0xcc] ss:$16 sps:$4 sm:$0xff]   ;;  %v8633_v47 = vld [vmem:[%s11395_s8 + $0xc0] ss:$16 sps:$4 sm:$0xff]  }
0x15e7   :  { %7087 = vmatprep.mubr.bf16.mxu0 %v11438_v45  ;;  %7128 = vmatprep.mubr.bf16.mxu1 %v11438_v45  ;;  %v8627_v45 = vld [vmem:[%s11395_s8 + $0xa4] ss:$16 sps:$4 sm:$0xff]  }
0x15e9   :  { %7058 = vmatpush1.bf16.msra.mxu0 %v11164_v59  ;;  %7099 = vmatpush1.bf16.msra.mxu1 %v11170_v52  ;;  %v8634_v59 = vld [vmem:[%s11395_s8 + $0xc8] ss:$16 sps:$4 sm:$0xff]   ;;  %v8635_v52 = vld [vmem:[%s11395_s8 + $0xe4] ss:$16 sps:$4 sm:$0xff]  }
0x15ea   :  { %7059 = vmatprep.subr.bf16.mxu0 %v11176_v61  ;;  %7100 = vmatprep.subr.bf16.mxu1 %v11182_v26  ;;  %v8636_v61 = vld [vmem:[%s11395_s8 + $0xec] ss:$16 sps:$4 sm:$0xff]   ;;  %v8637_v26 = vld [vmem:[%s11395_s8 + $0xe0] ss:$16 sps:$4 sm:$0xff]  }
0x15ed   :  { %7060 = vmatpush1.bf16.msra.mxu0 %v11188_v30  ;;  %7101 = vmatpush1.bf16.msra.mxu1 %v11194_v17  ;;  %v8638_v30 = vld [vmem:[%s11395_s8 + $0xe8] ss:$16 sps:$4 sm:$0xff]   ;;  %v11558_v17 = vmov 0.0  }
0x15ee   :  { %7061 = vmatprep.subr.bf16.mxu0 %v11200_v12  ;;  %7102 = vmatprep.subr.bf16.mxu1 %v11206_v32  ;;  %v11559_v12 = vld [vmem:[#allocation25_spill] sm:$0xff] }
0x15ef   :  { %v5983_v32 = vadd.f32 %v11559_v12, %v10915_v16 }
0x15f1   :  { %7062 = vmatpush1.bf16.msra.mxu0 %v11212_v11  ;;  %7103 = vmatpush1.bf16.msra.mxu1 %v11218_v35  ;;  %v11560_v11 = vld [vmem:[#allocation26_spill] sm:$0xff] }
0x15f2   :  { %7063 = vmatprep.subr.bf16.mxu0 %v11224_v40  ;;  %7104 = vmatprep.subr.bf16.mxu1 %v11230_v10  ;;  %v6056_v35 = vadd.f32 %v11560_v11, %v10918_v28  ;;  %v11561_v40 = vld [vmem:[#allocation27_spill] sm:$0xff] }
0x15f3   :  { %v5985_v10 = vadd.f32 %v11561_v40, %v10925_v18 }
0x15f5   :  { %7064 = vmatpush1.bf16.msra.mxu0 %v11236_v55  ;;  %7105 = vmatpush1.bf16.msra.mxu1 %v11242_v58  ;;  %v11562_v55 = vld [vmem:[#allocation8_spill] sm:$0xff] }
0x15f6   :  { %7065 = vmatprep.subr.bf16.mxu0 %v8627_v45  ;;  %7106 = vmatprep.subr.bf16.mxu1 %v8628_v4  ;;  %v6058_v58 = vadd.f32 %v11562_v55, %v10928_v50  ;;  %v11563_v45 = vld [vmem:[#allocation28_spill] sm:$0xff] }
0x15f7   :  { %v5987_v4 = vadd.f32 %v11563_v45, %v10915_v16 }
0x15f9   :  { %7066 = vmatpush1.bf16.msra.mxu0 %v8629_v21  ;;  %7107 = vmatpush1.bf16.msra.mxu1 %v8630_v41  ;;  %v11564_v21 = vld [vmem:[#allocation29_spill] sm:$0xff] }
0x15fa   :  { %7067 = vmatprep.subr.bf16.mxu0 %v8631_v63  ;;  %7108 = vmatprep.subr.bf16.mxu1 %v8632_v33  ;;  %v6060_v41 = vadd.f32 %v11564_v21, %v10918_v28  ;;  %v11565_v63 = vld [vmem:[#allocation30_spill] sm:$0xff] }
0x15fb   :  { %v5989_v33 = vadd.f32 %v11565_v63, %v10925_v18 }
0x15fd   :  { %7068 = vmatpush1.bf16.msra.mxu0 %v8633_v47  ;;  %7109 = vmatpush1.bf16.msra.mxu1 %v8634_v59  ;;  %v11566_v47 = vld [vmem:[#allocation31_spill] sm:$0xff] }
0x15fe   :  { %7069 = vmatprep.subr.bf16.mxu0 %v8635_v52  ;;  %7110 = vmatprep.subr.bf16.mxu1 %v8636_v61  ;;  %v6062_v59 = vadd.f32 %v11566_v47, %v10928_v50 }
0x1601   :  { %7070 = vmatpush1.bf16.msra.mxu0 %v8637_v26  ;;  %7111 = vmatpush1.bf16.msra.mxu1 %v8638_v30 }
0x1602   :  { %7948 = vmatprep.subr.bf16.mxu0 %v11558_v17 }
0x16b7   :  { %v6980_v29 = vpop.f32.mrb[136].mxu0  ;;  %v7021_v38 = vpop.f32.mrb[136].mxu1 }
0x16b8   :  { %v7028_v9 = vadd.f32 %v6980_v29, %v5983_v32  ;;  %v7030_v6 = vadd.f32 %v7021_v38, %v6056_v35  ;;  %v6982_v43 = vpop.f32.mrb[137].mxu0  ;;  %v7023_v46 = vpop.f32.mrb[137].mxu1 }
0x16b9   :  { %v7029_v60 = vadd.f32 %v6982_v43, %v5985_v10  ;;  %v7031_v42 = vadd.f32 %v7023_v46, %v6058_v58  ;;  %v6984_v44 = vpop.f32.mrb[138].mxu0  ;;  %v7025_v7 = vpop.f32.mrb[138].mxu1 }
0x16ba   :  { %v7032_v1 = vmul.f32 0.5, %v7028_v9  ;;  %v6985_v49 = vpop.f32.mrb[139].mxu0  ;;  %v7026_v19 = vpop.f32.mrb[139].mxu1 }
0x16bb   :  { %v7036_v54 = vmul.f32 0.5, %v7029_v60  ;;  %v7041_v53 = vmul.f32 0.5, %v7031_v42 }
0x16bc   :  { %8583 = vtanh.f32 %v7032_v1 }
0x16bd   :  { %8585 = vtanh.f32 %v7036_v54 }
0x16be   :  { %8587 = vtanh.f32 %v7030_v6 }
0x16bf   :  { %8589 = vtanh.f32 %v7041_v53  ;;  %v7930_v53 = vld [vmem:[%s11398_s11] ss:$0 sm:$0xff] }
0x16c6   :  { %v8584_v8 = vpop.eup %8583 }
0x16c7   :  { %v8586_v36 = vpop.eup %8585  ;;  %v7034_v25 = vadd.f32 1.0, %v8584_v8 }
0x16c8   :  { %v7038_v22 = vadd.f32 1.0, %v8586_v36  ;;  %v8588_v51 = vpop.eup %8587 }
0x16c9   :  { %v7035_v31 = vmul.f32 0.5, %v7034_v25  ;;  %v8590_v15 = vpop.eup %8589 }
0x16ca   :  { %v7039_v14 = vmul.f32 0.5, %v7038_v22  ;;  %v7043_v27 = vadd.f32 1.0, %v8590_v15 }
0x16cb   :  { %v7046_v39 = vmul.f32 %v8588_v51, %v7035_v31 }
0x16cc   :  { %v7045_v24 = vmul.f32 %v7039_v14, %v11268_v5  ;;  %v7044_v57 = vmul.f32 0.5, %v7043_v27  ;;  %v8356_v5 = vld [vmem:[%s11397_s10 + $0x8] sm:$0xff]  }
0x16ce   :  { %v11337_v2 = vadd.f32 %v7046_v39, %v7045_v24 }
0x16d0   :  { %8591 = vtanh.f32 %v11337_v2 }
0x16da   :  { %v8592_v13 = vpop.eup %8591 }
0x16db   :  { %v7049_v56 = vmul.f32 %v8592_v13, %v7044_v57 }
0x16dd   :  { %v7054_v20 = vpack.c.bf16 %v7049_v56, %v7049_v56 }
0x16df   :  { %7088 = vmatmul.mubr.bf16.vlgmr.msra.gmra.mrb[140].mxu0 %v7054_v20  ;;  %7129 = vmatmul.mubr.bf16.vlgmr.msra.gmra.mrb[140].mxu1 %v7054_v20 }
0x16e0   :  { %7949 = vmatpush3.bf16.msra.mxu0 %v8355_v37  ;;  %7964 = vmatprep.mubr.msk.bf16.mxu0 %vm8641_vm0, %v11558_v17 }
0x16e1   :  { %7950 = vmatprep.subr.bf16.mxu0 %v11558_v17 }
0x16e4   :  { %7951 = vmatpush3.bf16.msra.mxu0 %v8356_v5 }
0x16e5   :  { %7952 = vmatprep.subr.bf16.mxu0 %v11558_v17 }
0x16e8   :  { %7953 = vmatpush3.bf16.msra.mxu0 %v8357_v0 }
0x16e9   :  { %7954 = vmatprep.subr.bf16.mxu0 %v11558_v17 }
0x16ec   :  { %7955 = vmatpush3.bf16.msra.mxu0 %v8358_v34 }
0x16ed   :  { %7956 = vmatprep.subr.bf16.mxu0 %v11558_v17 }
0x16f0   :  { %7957 = vmatpush3.bf16.msra.mxu0 %v8359_v62 }
0x16f1   :  { %7958 = vmatprep.subr.bf16.mxu0 %v11558_v17 }
0x16f4   :  { %7959 = vmatpush3.bf16.msra.mxu0 %v8360_v23 }
0x16f5   :  { %7960 = vmatprep.subr.bf16.mxu0 %v11558_v17 }
0x16f8   :  { %7961 = vmatpush3.bf16.msra.mxu0 %v8361_v48 }
0x16f9   :  { %7962 = vmatprep.subr.bf16.mxu0 %v11558_v17 }
0x16fc   :  { %7963 = vmatpush3.bf16.msra.mxu0 %v8362_v3 }
0x17b2   :  { %v7089_v52 = vpop.f32.mrb[140].mxu0  ;;  %v7130_v61 = vpop.f32.mrb[140].mxu1 }
0x17b3   :  { %v7137_v26 = vadd.f32 %v7089_v52, %v5987_v4  ;;  %v7139_v30 = vadd.f32 %v7130_v61, %v6060_v41  ;;  %v7091_v12 = vpop.f32.mrb[141].mxu0  ;;  %v7132_v32 = vpop.f32.mrb[141].mxu1 }
0x17b4   :  { %v7138_v11 = vadd.f32 %v7091_v12, %v5989_v33  ;;  %v7140_v17 = vadd.f32 %v7132_v32, %v6062_v59  ;;  %v7093_v35 = vpop.f32.mrb[142].mxu0  ;;  %v7134_v40 = vpop.f32.mrb[142].mxu1 }
0x17b5   :  { %v7141_v16 = vmul.f32 0.5, %v7137_v26  ;;  %v7094_v10 = vpop.f32.mrb[143].mxu0  ;;  %v7135_v55 = vpop.f32.mrb[143].mxu1 }
0x17b6   :  { %v7145_v28 = vmul.f32 0.5, %v7138_v11  ;;  %v7150_v18 = vmul.f32 0.5, %v7140_v17 }
0x17b7   :  { %8593 = vtanh.f32 %v7141_v16 }
0x17b8   :  { %8595 = vtanh.f32 %v7145_v28 }
0x17b9   :  { %8597 = vtanh.f32 %v7139_v30 }
0x17ba   :  { %8599 = vtanh.f32 %v7150_v18 }
0x17c1   :  { %v8594_v58 = vpop.eup %8593 }
0x17c2   :  { %v8596_v50 = vpop.eup %8595  ;;  %v7143_v29 = vadd.f32 1.0, %v8594_v58 }
0x17c3   :  { %v7147_v38 = vadd.f32 1.0, %v8596_v50  ;;  %v8598_v6 = vpop.eup %8597 }
0x17c4   :  { %v7144_v9 = vmul.f32 0.5, %v7143_v29  ;;  %v8600_v44 = vpop.eup %8599 }
0x17c5   :  { %v7148_v43 = vmul.f32 0.5, %v7147_v38  ;;  %v7152_v7 = vadd.f32 1.0, %v8600_v44 }
0x17c6   :  { %v7155_v46 = vmul.f32 %v8598_v6, %v7144_v9 }
0x17c7   :  { %v7154_v60 = vmul.f32 %v7148_v43, %v11337_v2  ;;  %v7153_v1 = vmul.f32 0.5, %v7152_v7 }
0x17c9   :  { %v7156_v42 = vadd.f32 %v7155_v46, %v7154_v60 }
0x17cb   :  { %8601 = vtanh.f32 %v7156_v42 }
0x17d5   :  { %v8602_v49 = vpop.eup %8601 }
0x17d6   :  { %v7158_v19 = vmul.f32 %v8602_v49, %v7153_v1 }
0x17d8   :  { %v7159_v54 = vpack.c.bf16 %v7158_v19, %v7158_v19 }
0x17da   :  { %7965 = vmatmul.mubr.bf16.vlgmr.msra.gmra.mrb[144].mxu0 %v7159_v54 }
0x18ad   :  { %v7265_v8 = vpop.f32.mrb[144].mxu0 }
0x18ae   :  { %v7266_v36 = vadd.f32 %v7930_v53, %v7265_v8  ;;  %v7966_v25 = vpop.f32.mrb[145].mxu0 }
0x18af   :  { %v7268_v22 = vpop.f32.mrb[146].mxu0 }
0x18b0   :  { %v7271_v31 = vmax.f32 %v7266_v36, 0.0  ;;  %v7967_v51 = vpop.f32.mrb[147].mxu0 }
0x18b2   :  { %v7272_v14 = vmul.f32 %v7271_v31, %v7271_v31 }
0x18b4   :  { %7273 = vadd.xlane.f32.xlu0 %v7272_v14 }
0x1941   :  { %v7274_v39 = vpop.xlane.xlu0 %7273 }
0x1942   :  { %8603 = vrsqrt.f32 %v7274_v39  ;;  %vm7277_vm1 = vcmp.eq.f32.partialorder %v7274_v39, inf  ;;  %v7280_v15 = vand.u32 2147483648, %v7274_v39  ;;  %vm7279_vm2 = vcmp.eq.f32.partialorder %v7274_v39, 0.0 }
0x194c   :  { %v8604_v24 = vpop.eup %8603 }
0x194d   :  { %v7276_v2 = vmul.f32 %v8604_v24, %v7274_v39 }
0x194f   :  { %v7278_v27 = vsel %vm7277_vm1, %v7274_v39, %v7276_v2 }
0x1950   :  { %v7281_v57 = vsel %vm7279_vm2, %v7280_v15, %v7278_v27 }
0x1951   :  { %v7282_v13 = vadd.f32 1e-05, %v7281_v57 }
0x1953   :  { %8605 = vrcp.f32 %v7282_v13 }
0x195d   :  { %v8606_v56 = vpop.eup %8605 }
0x195e   :  { %v7284_v20 = vmul.f32 %v8606_v56, %v7271_v31 }
0x1960   :  { %7285 = vst [vmem:[%s11399_s12] sm:$0xff] %v7284_v20 }

</bundles_post_ra>
